<compile_context>
chip_gen: v5e
topology: v5e:2x2
jax: 0.10.0
libtpu: 0.0.40
codegen_flags: <defaults>
</compile_context>

<pallas_src>
import math

import jax
import jax.numpy as jnp
from jax.experimental import pallas as pl
from jax.experimental.pallas import tpu as pltpu

# ---------------------------------------------------------------------------
# model hyper-parameters (small synthetic sizes)
# ---------------------------------------------------------------------------
C_IMG = 3        # image channels
C_LAT = 4        # latent channels
C_MID = 32       # UNet hidden width
C_DEC = 16       # decoder hidden width
HID = 32         # text-encoder hidden size
SEQ = 8          # prompt sequence length
TEMB_DIM = 32    # sinusoidal timestep embedding dim
TEMB_HID = 64    # timestep MLP hidden
VOCAB = 512      # synthetic tokenizer vocab
SCALING = 0.18215          # vae.config.scaling_factor
TIMESTEP = 999
NUM_TRAIN_TIMESTEPS = 1000
DTYPE = jnp.float32
WDTYPE = jnp.bfloat16      # MXU operand dtype (f32 accumulation)

_PARALLEL = pltpu.CompilerParams(dimension_semantics=("parallel",))


# ---------------------------------------------------------------------------
# BlockSpec helpers
# ---------------------------------------------------------------------------
def _spec_full(shape):
    """Whole array as one block (weights / context); constant index map so the
    buffer stays VMEM-resident across grid steps."""
    nd = len(shape)
    return pl.BlockSpec(tuple(shape), lambda b, _n=nd: (0,) * _n)


def _spec_batch(shape):
    """Block over the leading batch dim only; trailing dims stay full, so the
    (8,128) constraint is satisfied by 'equals full array dims'."""
    nd = len(shape)
    return pl.BlockSpec((1,) + tuple(shape[1:]),
                        lambda b, _n=nd: (b,) + (0,) * (_n - 1))


# ---------------------------------------------------------------------------
# DDPM scheduler coefficients (scaled_linear betas, 1 inference step, t = 999)
# Matches diffusers' DDPMScheduler.step: prev_t < 0 -> alpha_prod_prev = 1.0,
# which makes the "sample" coefficient 0 and the variance ~0 (clamped 1e-20).
# ---------------------------------------------------------------------------
def _ddpm_coeffs(t=TIMESTEP, num_train=NUM_TRAIN_TIMESTEPS):
    betas = jnp.linspace(0.00085 ** 0.5, 0.012 ** 0.5, num_train,
                         dtype=jnp.float32) ** 2
    acp = jnp.cumprod(1.0 - betas)
    alpha_t = float(acp[t])
    alpha_prev = 1.0
    beta_t = 1.0 - alpha_t
    cur_alpha = alpha_t / alpha_prev
    cur_beta = 1.0 - cur_alpha
    coeff_orig = (alpha_prev ** 0.5) * cur_beta / beta_t
    coeff_sample = (cur_alpha ** 0.5) * (1.0 - alpha_prev) / beta_t
    variance = max((1.0 - alpha_prev) / (1.0 - alpha_t) * cur_beta, 1e-20)
    return dict(inv_sqrt_alpha_t=1.0 / (alpha_t ** 0.5),
                sqrt_beta_t=beta_t ** 0.5,
                coeff_orig=coeff_orig, coeff_sample=coeff_sample,
                sigma=variance ** 0.5)


_DDPM = _ddpm_coeffs()   # Python floats -> compile-time constants in the kernel


# ---------------------------------------------------------------------------
# THE fused kernel: one grid step == one batch element, end to end.
# ---------------------------------------------------------------------------
def _osediff_kernel(xph_ref, noise_ref,
                    enc_w_ref, enc_b_ref,
                    uin_w_ref, uin_b_ref,
                    q_w_ref, q_b_ref, kT_ref, v_ref, o_w_ref, o_b_ref,
                    uout_w_ref, uout_b_ref,
                    d1_w_ref, d1_b_ref, d2_w_ref, d2_b_ref,
                    out_ref):
    oh = xph_ref.shape[2] - 1
    ow = xph_ref.shape[3] - 1
    rows = oh * ow

    # ---- trace-time helpers (all values stay in VMEM / vregs) --------------
    def pad1(x):                                   # (oh, ow, c) -> (oh+2, ow+2, c)
        c = x.shape[-1]
        zr = jnp.zeros((1, ow, c), x.dtype)
        x = jnp.concatenate([zr, x, zr], axis=0)   # pad H (major dim)
        zc = jnp.zeros((oh + 2, 1, c), x.dtype)
        return jnp.concatenate([zc, x, zc], axis=1)   # pad W (sublane dim)

    def im2col(xp):                                # (oh+2, ow+2, c) -> (rows, 9c) bf16
        c = xp.shape[-1]
        # column order (kh, kw, c) == weight flatten order
        w3 = jnp.concatenate([xp[:, kw:kw + ow, :] for kw in range(3)], axis=-1)
        s9 = jnp.concatenate([w3[kh:kh + oh] for kh in range(3)], axis=-1)
        return s9.reshape(rows, 9 * c).astype(WDTYPE)      # cast ONCE per conv

    def mm(a_bf16, w_ref_, b_ref_=None):
        out = jnp.dot(a_bf16, w_ref_[...], preferred_element_type=jnp.float32)
        return out if b_ref_ is None else out + b_ref_[...]

    def conv3x3(x_rows, w_ref_, b_ref_):           # 3x3 / stride-1 / pad-1 conv
        c = x_rows.shape[-1]
        return mm(im2col(pad1(x_rows.reshape(oh, ow, c))), w_ref_, b_ref_)

    # ---- 1. VAE encode: 3x3 stride-2 conv -> [mean|logvar]; sample; *scale --
    # Input arrives as the 4 spatial phases of the padded image, so stride-2
    # taps become stride-1 slices; the 9 taps form ONE (rows, 27) slab.
    xph = xph_ref[0]                               # (4, oh+1, ow+1, C_IMG)
    cols = []
    for kh in range(3):
        for kw in range(3):
            ph = xph[(kh % 2) * 2 + (kw % 2)]
            cols.append(ph[kh // 2:kh // 2 + oh, kw // 2:kw // 2 + ow, :])
    slab = jnp.concatenate(cols, axis=-1).reshape(rows, 9 * C_IMG).astype(WDTYPE)
    moments = mm(slab, enc_w_ref, enc_b_ref)       # (rows, 2*C_LAT)
    mean = moments[:, :C_LAT]
    logvar = moments[:, C_LAT:]
    eps = noise_ref[0, 0]
    lat = (mean + jnp.exp(0.5 * logvar) * eps) * SCALING       # lq_latent (f32)

    # ---- 2. UNet: conv_in (+temb baked into bias) + SiLU + cross-attn + conv_out
    h = conv3x3(lat, uin_w_ref, uin_b_ref)         # bias already holds conv_b + temb(999)
    h = h * jax.nn.sigmoid(h)                      # SiLU (f32 epilogue)

    q = mm(h.astype(WDTYPE), q_w_ref, q_b_ref)                 # (rows, C_MID)
    s = mm(q.astype(WDTYPE), kT_ref)               # (rows, SEQ); 1/sqrt(d) folded in kT
    s = s - jnp.max(s, axis=-1, keepdims=True)
    p = jnp.exp(s)
    p = p * pl.reciprocal(jnp.sum(p, axis=-1, keepdims=True), approx=True)
    a = mm(p.astype(WDTYPE), v_ref)                             # (rows, C_MID)
    h = h + mm(a.astype(WDTYPE), o_w_ref, o_b_ref)              # out-proj + residual

    pred = conv3x3(h, uout_w_ref, uout_b_ref)                   # model_pred (rows, C_LAT)

    # ---- 3. DDPM step at t=999 (single inference step), then / scaling ------
    step_noise = noise_ref[0, 1]
    pred_orig = (lat - _DDPM["sqrt_beta_t"] * pred) * _DDPM["inv_sqrt_alpha_t"]
    prev = (_DDPM["coeff_orig"] * pred_orig
            + _DDPM["coeff_sample"] * lat
            + _DDPM["sigma"] * step_noise)
    z = prev * (1.0 / SCALING)

    # ---- 4. VAE decode: conv+SiLU, then upsample-fused conv + clamp ---------
    hd = conv3x3(z, d1_w_ref, d1_b_ref)
    hd = hd * jax.nn.sigmoid(hd)
    # d2_w is the phase-combined weight (9*C_DEC, 4*C_IMG): ONE matmul yields
    # all 4 nearest-upsample output phases along the lane axis.
    img = conv3x3(hd, d2_w_ref, d2_b_ref)                       # (rows, 4*C_IMG)
    out_ref[0] = jnp.clip(img, -1.0, 1.0).astype(out_ref.dtype)


# ---------------------------------------------------------------------------
# parameters (deterministic synthetic init)
# ---------------------------------------------------------------------------
def init_params(key):
    ks = jax.random.split(key, 13)

    def w(k, shape, sc=0.05):
        return sc * jax.random.normal(k, shape, jnp.float32)

    conv = lambda k, ci, co: w(k, (3, 3, ci, co))          # HWIO
    z = lambda *s: jnp.zeros(s, DTYPE)
    return dict(
        text_emb=w(ks[0], (VOCAB, HID), 0.1),
        text_proj_w=w(ks[1], (HID, HID)), text_proj_b=z(HID),
        enc_w=conv(ks[2], C_IMG, 2 * C_LAT), enc_b=z(2 * C_LAT),
        temb_w1=w(ks[3], (TEMB_DIM, TEMB_HID)), temb_b1=z(TEMB_HID),
        temb_w2=w(ks[4], (TEMB_HID, C_MID)), temb_b2=z(C_MID),
        unet_in_w=conv(ks[5], C_LAT, C_MID), unet_in_b=z(C_MID),
        attn_q_w=w(ks[6], (C_MID, C_MID)), attn_q_b=z(C_MID),
        attn_k_w=w(ks[7], (HID, C_MID)), attn_k_b=z(C_MID),
        attn_v_w=w(ks[8], (HID, C_MID)), attn_v_b=z(C_MID),
        attn_o_w=w(ks[9], (C_MID, C_MID)), attn_o_b=z(C_MID),
        unet_out_w=conv(ks[10], C_MID, C_LAT), unet_out_b=z(C_LAT),
        dec_w1=conv(ks[11], C_LAT, C_DEC), dec_b1=z(C_DEC),
        dec_w2=conv(ks[12], C_DEC, C_IMG), dec_b2=z(C_IMG),
    )


def pack_weights(params):
    """One-time constant precompute hoisted off the per-inference path."""
    # sinusoidal(t=999) -> temb MLP -> folded into the UNet conv_in bias
    half = TEMB_DIM // 2
    freqs = jnp.exp(-math.log(10000.0) *
                    jnp.arange(half, dtype=jnp.float32) / half)
    ang = float(TIMESTEP) * freqs
    emb = jnp.concatenate([jnp.cos(ang), jnp.sin(ang)])
    t = emb @ params["temb_w1"] + params["temb_b1"]
    t = t * jax.nn.sigmoid(t)
    temb = t @ params["temb_w2"] + params["temb_b2"]            # (C_MID,)

    flat = lambda w: w.reshape(9 * w.shape[2], w.shape[3]).astype(WDTYPE)
    row = lambda b: b.reshape(1, -1)

    # decoder conv2: fold the nearest-2x upsample into a phase-combined weight
    # so out[2i+ry, 2j+rx] for all (ry,rx) comes from ONE matmul of the shared
    # 3x3 im2col slab against a (9*C_DEC, 4*C_IMG) weight.
    w2 = params["dec_w2"]                                       # (3,3,C_DEC,C_IMG)
    w2_eff = jnp.zeros((3, 3, C_DEC, 2, 2, C_IMG), jnp.float32)
    for ry in range(2):
        for rx in range(2):
            for kh in range(3):
                for kw in range(3):
                    r0, c0 = (ry + kh + 1) // 2, (rx + kw + 1) // 2
                    w2_eff = w2_eff.at[r0, c0, :, ry, rx, :].add(w2[kh, kw])
    w2_eff = w2_eff.reshape(9 * C_DEC, 4 * C_IMG).astype(WDTYPE)

    return dict(
        enc_w=flat(params["enc_w"]), enc_b=row(params["enc_b"]),
        uin_w=flat(params["unet_in_w"]),
        uin_b=row(params["unet_in_b"] + temb),
        q_w=params["attn_q_w"].astype(WDTYPE), q_b=row(params["attn_q_b"]),
        o_w=params["attn_o_w"].astype(WDTYPE), o_b=row(params["attn_o_b"]),
        uout_w=flat(params["unet_out_w"]), uout_b=row(params["unet_out_b"]),
        d1_w=flat(params["dec_w1"]), d1_b=row(params["dec_b1"]),
        d2_w=w2_eff, d2_b=row(jnp.tile(params["dec_b2"], 4)),
    )


def encode_prompt(params, prompt):
    """Synthetic tokenizer + text encoder, plus the hoisted (batch- and
    pixel-independent) cross-attention K/V projections and 1/sqrt(d) scale."""
    # TODO(synk): the real CLIP tokenizer / text encoder has no in-script equivalent.
    ids = [ord(c) % VOCAB for c in prompt][:SEQ]
    ids += [0] * (SEQ - len(ids))
    ids = jnp.array(ids, jnp.int32)
    ctx = jnp.take(params["text_emb"], ids, axis=0)             # (SEQ, HID)
    ctx = ctx @ params["text_proj_w"] + params["text_proj_b"]
    k = ctx @ params["attn_k_w"] + params["attn_k_b"]           # (SEQ, C_MID)
    v = ctx @ params["attn_v_w"] + params["attn_v_b"]
    kT = (k.T * (1.0 / math.sqrt(C_MID))).astype(WDTYPE)        # (C_MID, SEQ)
    return kT, v.astype(WDTYPE)


# ---------------------------------------------------------------------------
# forward: ONE fused pallas_call per forward, grid over batch
# ---------------------------------------------------------------------------
@jax.jit
def osediff_forward(weights, kT, v, lq_nchw, sample_key, step_key):
    B, _, H, W = lq_nchw.shape
    OH, OW = H // 2, W // 2
    x = jnp.transpose(lq_nchw, (0, 2, 3, 1)).astype(DTYPE)      # NCHW -> NHWC

    # input prep only: pad + 4-phase space-to-depth of the raw image so the
    # stride-2 encoder conv becomes stride-1 slices inside the kernel.
    xp = jnp.pad(x, ((0, 0), (1, 1), (1, 1), (0, 0)))
    xph = jnp.stack([xp[:, p::2, q::2, :] for p in (0, 1) for q in (0, 1)],
                    axis=1)                                     # (B,4,OH+1,OW+1,C_IMG)

    eps = jax.random.normal(sample_key, (B, OH * OW, C_LAT), DTYPE)
    stp = jax.random.normal(step_key, (B, OH * OW, C_LAT), DTYPE)
    noise = jnp.stack([eps, stp], axis=1)                       # (B,2,rows,C_LAT)

    operands = (xph, noise,
                weights["enc_w"], weights["enc_b"],
                weights["uin_w"], weights["uin_b"],
                weights["q_w"], weights["q_b"], kT, v,
                weights["o_w"], weights["o_b"],
                weights["uout_w"], weights["uout_b"],
                weights["d1_w"], weights["d1_b"],
                weights["d2_w"], weights["d2_b"])
    in_specs = ([_spec_batch(xph.shape), _spec_batch(noise.shape)]
                + [_spec_full(o.shape) for o in operands[2:]])

    out = pl.pallas_call(
        _osediff_kernel,
        out_shape=jax.ShapeDtypeStruct((B, OH * OW, 4 * C_IMG), DTYPE),
        grid=(B,),
        in_specs=in_specs,
        out_specs=_spec_batch((B, OH * OW, 4 * C_IMG)),
        compiler_params=_PARALLEL,
    )(*operands)

    # interleave the 2x2 output phases (ry, rx) back to full resolution; the
    # image is already clamped, this is pure layout glue on 3 KB/batch.
    img = out.reshape(B, OH, OW, 2, 2, C_IMG)
    img = jnp.transpose(img, (0, 1, 3, 2, 4, 5)).reshape(B, 2 * OH, 2 * OW, C_IMG)
    return jnp.transpose(img, (0, 3, 1, 2))                     # NHWC -> NCHW


# ---------------------------------------------------------------------------
if __name__ == "__main__":
    key = jax.random.PRNGKey(0)
    kp, kx, ks1, ks2 = jax.random.split(key, 4)

    params = init_params(kp)
    weights = pack_weights(params)             # temb + upsample folded into weights
    kT, v = encode_prompt(params, "a photo of a cat")

    B, H, W = 2, 16, 16                        # B=2 so both v7x TensorCores get work
    lq = jax.random.uniform(kx, (B, C_IMG, H, W), DTYPE, -1.0, 1.0)

    out = osediff_forward(weights, kT, v, lq, ks1, ks2)
    out = jax.block_until_ready(out)

    assert out.shape == (B, C_IMG, H, W), out.shape
    assert bool(jnp.all(jnp.isfinite(out)))
    assert bool(jnp.all(out >= -1.0)) and bool(jnp.all(out <= 1.0))
    print("KERNEL_OK")
</pallas_src>

<mosaic_0001>
module attributes {stable_mosaic.version = 11 : i64} {
  func.func @_osediff_kernel(%arg0: i32, %arg1: memref<1x4x9x9x3xf32, #tpu.memory_space<vmem>>, %arg2: memref<1x2x64x4xf32, #tpu.memory_space<vmem>>, %arg3: memref<27x8xbf16, #tpu.memory_space<vmem>>, %arg4: memref<1x8xf32, #tpu.memory_space<vmem>>, %arg5: memref<36x32xbf16, #tpu.memory_space<vmem>>, %arg6: memref<1x32xf32, #tpu.memory_space<vmem>>, %arg7: memref<32x32xbf16, #tpu.memory_space<vmem>>, %arg8: memref<1x32xf32, #tpu.memory_space<vmem>>, %arg9: memref<32x8xbf16, #tpu.memory_space<vmem>>, %arg10: memref<8x32xbf16, #tpu.memory_space<vmem>>, %arg11: memref<32x32xbf16, #tpu.memory_space<vmem>>, %arg12: memref<1x32xf32, #tpu.memory_space<vmem>>, %arg13: memref<288x4xbf16, #tpu.memory_space<vmem>>, %arg14: memref<1x4xf32, #tpu.memory_space<vmem>>, %arg15: memref<36x16xbf16, #tpu.memory_space<vmem>>, %arg16: memref<1x16xf32, #tpu.memory_space<vmem>>, %arg17: memref<144x12xbf16, #tpu.memory_space<vmem>>, %arg18: memref<1x12xf32, #tpu.memory_space<vmem>>, %arg19: memref<1x64x12xf32, #tpu.memory_space<vmem>>) attributes {dimension_semantics = [#tpu.dimension_semantics<parallel>], iteration_bounds = array<i64: 2>, scalar_prefetch = 0 : i64, scratch_operands = 0 : i64, tpu.core_type = #tpu.core_type<tc>, window_params = [{transform_indices = @transform_0, window_bounds = array<i64: 1, 4, 9, 9, 3>}, {transform_indices = @transform_1, window_bounds = array<i64: 1, 2, 64, 4>}, {pipeline_mode = #tpu.pipeline_mode<synchronous>, transform_indices = @transform_2, window_bounds = array<i64: 27, 8>}, {pipeline_mode = #tpu.pipeline_mode<synchronous>, transform_indices = @transform_3, window_bounds = array<i64: 1, 8>}, {pipeline_mode = #tpu.pipeline_mode<synchronous>, transform_indices = @transform_4, window_bounds = array<i64: 36, 32>}, {pipeline_mode = #tpu.pipeline_mode<synchronous>, transform_indices = @transform_5, window_bounds = array<i64: 1, 32>}, {pipeline_mode = #tpu.pipeline_mode<synchronous>, transform_indices = @transform_6, window_bounds = array<i64: 32, 32>}, {pipeline_mode = #tpu.pipeline_mode<synchronous>, transform_indices = @transform_7, window_bounds = array<i64: 1, 32>}, {pipeline_mode = #tpu.pipeline_mode<synchronous>, transform_indices = @transform_8, window_bounds = array<i64: 32, 8>}, {pipeline_mode = #tpu.pipeline_mode<synchronous>, transform_indices = @transform_9, window_bounds = array<i64: 8, 32>}, {pipeline_mode = #tpu.pipeline_mode<synchronous>, transform_indices = @transform_10, window_bounds = array<i64: 32, 32>}, {pipeline_mode = #tpu.pipeline_mode<synchronous>, transform_indices = @transform_11, window_bounds = array<i64: 1, 32>}, {pipeline_mode = #tpu.pipeline_mode<synchronous>, transform_indices = @transform_12, window_bounds = array<i64: 288, 4>}, {pipeline_mode = #tpu.pipeline_mode<synchronous>, transform_indices = @transform_13, window_bounds = array<i64: 1, 4>}, {pipeline_mode = #tpu.pipeline_mode<synchronous>, transform_indices = @transform_14, window_bounds = array<i64: 36, 16>}, {pipeline_mode = #tpu.pipeline_mode<synchronous>, transform_indices = @transform_15, window_bounds = array<i64: 1, 16>}, {pipeline_mode = #tpu.pipeline_mode<synchronous>, transform_indices = @transform_16, window_bounds = array<i64: 144, 12>}, {pipeline_mode = #tpu.pipeline_mode<synchronous>, transform_indices = @transform_17, window_bounds = array<i64: 1, 12>}, {transform_indices = @transform_18, window_bounds = array<i64: 1, 64, 12>}]} {
    %c0 = arith.constant 0 : index
    %c0_0 = arith.constant 0 : index
    %c0_1 = arith.constant 0 : index
    %c0_2 = arith.constant 0 : index
    %c0_3 = arith.constant 0 : index
    %0 = vector.load %arg1[%c0, %c0_0, %c0_1, %c0_2, %c0_3] : memref<1x4x9x9x3xf32, #tpu.memory_space<vmem>>, vector<1x4x9x9x3xf32>
    %1 = vector.shape_cast %0 : vector<1x4x9x9x3xf32> to vector<4x9x9x3xf32>
    %2 = vector.extract_strided_slice %1 {offsets = [0, 0, 0, 0], sizes = [1, 9, 9, 3], strides = [1, 1, 1, 1]} : vector<4x9x9x3xf32> to vector<1x9x9x3xf32>
    %3 = vector.shape_cast %2 : vector<1x9x9x3xf32> to vector<9x9x3xf32>
    %4 = vector.extract_strided_slice %3 {offsets = [0, 0, 0], sizes = [8, 8, 3], strides = [1, 1, 1]} : vector<9x9x3xf32> to vector<8x8x3xf32>
    %5 = vector.extract_strided_slice %1 {offsets = [1, 0, 0, 0], sizes = [1, 9, 9, 3], strides = [1, 1, 1, 1]} : vector<4x9x9x3xf32> to vector<1x9x9x3xf32>
    %6 = vector.shape_cast %5 : vector<1x9x9x3xf32> to vector<9x9x3xf32>
    %7 = vector.extract_strided_slice %6 {offsets = [0, 0, 0], sizes = [8, 8, 3], strides = [1, 1, 1]} : vector<9x9x3xf32> to vector<8x8x3xf32>
    %8 = vector.extract_strided_slice %1 {offsets = [0, 0, 0, 0], sizes = [1, 9, 9, 3], strides = [1, 1, 1, 1]} : vector<4x9x9x3xf32> to vector<1x9x9x3xf32>
    %9 = vector.shape_cast %8 : vector<1x9x9x3xf32> to vector<9x9x3xf32>
    %10 = vector.extract_strided_slice %9 {offsets = [0, 1, 0], sizes = [8, 8, 3], strides = [1, 1, 1]} : vector<9x9x3xf32> to vector<8x8x3xf32>
    %11 = vector.extract_strided_slice %1 {offsets = [2, 0, 0, 0], sizes = [1, 9, 9, 3], strides = [1, 1, 1, 1]} : vector<4x9x9x3xf32> to vector<1x9x9x3xf32>
    %12 = vector.shape_cast %11 : vector<1x9x9x3xf32> to vector<9x9x3xf32>
    %13 = vector.extract_strided_slice %12 {offsets = [0, 0, 0], sizes = [8, 8, 3], strides = [1, 1, 1]} : vector<9x9x3xf32> to vector<8x8x3xf32>
    %14 = vector.extract_strided_slice %1 {offsets = [3, 0, 0, 0], sizes = [1, 9, 9, 3], strides = [1, 1, 1, 1]} : vector<4x9x9x3xf32> to vector<1x9x9x3xf32>
    %15 = vector.shape_cast %14 : vector<1x9x9x3xf32> to vector<9x9x3xf32>
    %16 = vector.extract_strided_slice %15 {offsets = [0, 0, 0], sizes = [8, 8, 3], strides = [1, 1, 1]} : vector<9x9x3xf32> to vector<8x8x3xf32>
    %17 = vector.extract_strided_slice %1 {offsets = [2, 0, 0, 0], sizes = [1, 9, 9, 3], strides = [1, 1, 1, 1]} : vector<4x9x9x3xf32> to vector<1x9x9x3xf32>
    %18 = vector.shape_cast %17 : vector<1x9x9x3xf32> to vector<9x9x3xf32>
    %19 = vector.extract_strided_slice %18 {offsets = [0, 1, 0], sizes = [8, 8, 3], strides = [1, 1, 1]} : vector<9x9x3xf32> to vector<8x8x3xf32>
    %20 = vector.extract_strided_slice %1 {offsets = [0, 0, 0, 0], sizes = [1, 9, 9, 3], strides = [1, 1, 1, 1]} : vector<4x9x9x3xf32> to vector<1x9x9x3xf32>
    %21 = vector.shape_cast %20 : vector<1x9x9x3xf32> to vector<9x9x3xf32>
    %22 = vector.extract_strided_slice %21 {offsets = [1, 0, 0], sizes = [8, 8, 3], strides = [1, 1, 1]} : vector<9x9x3xf32> to vector<8x8x3xf32>
    %23 = vector.extract_strided_slice %1 {offsets = [1, 0, 0, 0], sizes = [1, 9, 9, 3], strides = [1, 1, 1, 1]} : vector<4x9x9x3xf32> to vector<1x9x9x3xf32>
    %24 = vector.shape_cast %23 : vector<1x9x9x3xf32> to vector<9x9x3xf32>
    %25 = vector.extract_strided_slice %24 {offsets = [1, 0, 0], sizes = [8, 8, 3], strides = [1, 1, 1]} : vector<9x9x3xf32> to vector<8x8x3xf32>
    %26 = vector.extract_strided_slice %1 {offsets = [0, 0, 0, 0], sizes = [1, 9, 9, 3], strides = [1, 1, 1, 1]} : vector<4x9x9x3xf32> to vector<1x9x9x3xf32>
    %27 = vector.shape_cast %26 : vector<1x9x9x3xf32> to vector<9x9x3xf32>
    %28 = vector.extract_strided_slice %27 {offsets = [1, 1, 0], sizes = [8, 8, 3], strides = [1, 1, 1]} : vector<9x9x3xf32> to vector<8x8x3xf32>
    %29 = tpu.concatenate %4, %7, %10, %13, %16, %19, %22, %25, %28 in 2 : vector<8x8x3xf32>, vector<8x8x3xf32>, vector<8x8x3xf32>, vector<8x8x3xf32>, vector<8x8x3xf32>, vector<8x8x3xf32>, vector<8x8x3xf32>, vector<8x8x3xf32>, vector<8x8x3xf32> -> vector<8x8x27xf32>
    %30 = vector.shape_cast %29 : vector<8x8x27xf32> to vector<64x27xf32>
    %31 = arith.truncf %30 : vector<64x27xf32> to vector<64x27xbf16>
    %c0_4 = arith.constant 0 : index
    %c0_5 = arith.constant 0 : index
    %32 = vector.load %arg3[%c0_4, %c0_5] : memref<27x8xbf16, #tpu.memory_space<vmem>>, vector<27x8xbf16>
    %cst = arith.constant dense<0.000000e+00> : vector<64x8xf32>
    %33 = tpu.matmul %31, %32, %cst {dimension_numbers = #tpu.dot_dimension_numbers<[1], [0], [0], [1], [0, 0, 1, 1], [], []>} : vector<64x27xbf16>, vector<27x8xbf16>, vector<64x8xf32> -> vector<64x8xf32>
    %c0_6 = arith.constant 0 : index
    %c0_7 = arith.constant 0 : index
    %34 = vector.load %arg4[%c0_6, %c0_7] : memref<1x8xf32, #tpu.memory_space<vmem>>, vector<1x8xf32>
    %35 = vector.broadcast %34 : vector<1x8xf32> to vector<64x8xf32>
    %36 = arith.addf %33, %35 : vector<64x8xf32>
    %37 = vector.extract_strided_slice %36 {offsets = [0, 0], sizes = [64, 4], strides = [1, 1]} : vector<64x8xf32> to vector<64x4xf32>
    %38 = vector.extract_strided_slice %36 {offsets = [0, 4], sizes = [64, 4], strides = [1, 1]} : vector<64x8xf32> to vector<64x4xf32>
    %c0_8 = arith.constant 0 : index
    %c0_9 = arith.constant 0 : index
    %c0_10 = arith.constant 0 : index
    %c0_11 = arith.constant 0 : index
    %39 = vector.load %arg2[%c0_8, %c0_9, %c0_10, %c0_11] : memref<1x2x64x4xf32, #tpu.memory_space<vmem>>, vector<1x1x64x4xf32>
    %40 = vector.shape_cast %39 : vector<1x1x64x4xf32> to vector<64x4xf32>
    %cst_12 = arith.constant 5.000000e-01 : f32
    %41 = vector.broadcast %cst_12 : f32 to vector<64x4xf32>
    %42 = arith.mulf %41, %38 : vector<64x4xf32>
    %43 = math.exp %42 : vector<64x4xf32>
    %44 = arith.mulf %43, %40 : vector<64x4xf32>
    %45 = arith.addf %37, %44 : vector<64x4xf32>
    %cst_13 = arith.constant 1.821500e-01 : f32
    %46 = vector.broadcast %cst_13 : f32 to vector<64x4xf32>
    %47 = arith.mulf %45, %46 : vector<64x4xf32>
    %48 = vector.shape_cast %47 : vector<64x4xf32> to vector<8x8x4xf32>
    %cst_14 = arith.constant 0.000000e+00 : f32
    %49 = vector.broadcast %cst_14 : f32 to vector<1x8x4xf32>
    %50 = tpu.concatenate %49, %48, %49 in 0 : vector<1x8x4xf32>, vector<8x8x4xf32>, vector<1x8x4xf32> -> vector<10x8x4xf32>
    %cst_15 = arith.constant 0.000000e+00 : f32
    %51 = vector.broadcast %cst_15 : f32 to vector<10x1x4xf32>
    %52 = tpu.concatenate %51, %50, %51 in 1 : vector<10x1x4xf32>, vector<10x8x4xf32>, vector<10x1x4xf32> -> vector<10x10x4xf32>
    %53 = vector.extract_strided_slice %52 {offsets = [0, 0, 0], sizes = [10, 8, 4], strides = [1, 1, 1]} : vector<10x10x4xf32> to vector<10x8x4xf32>
    %54 = vector.extract_strided_slice %52 {offsets = [0, 1, 0], sizes = [10, 8, 4], strides = [1, 1, 1]} : vector<10x10x4xf32> to vector<10x8x4xf32>
    %55 = vector.extract_strided_slice %52 {offsets = [0, 2, 0], sizes = [10, 8, 4], strides = [1, 1, 1]} : vector<10x10x4xf32> to vector<10x8x4xf32>
    %56 = tpu.concatenate %53, %54, %55 in 2 : vector<10x8x4xf32>, vector<10x8x4xf32>, vector<10x8x4xf32> -> vector<10x8x12xf32>
    %57 = vector.extract_strided_slice %56 {offsets = [0, 0, 0], sizes = [8, 8, 12], strides = [1, 1, 1]} : vector<10x8x12xf32> to vector<8x8x12xf32>
    %58 = vector.extract_strided_slice %56 {offsets = [1, 0, 0], sizes = [8, 8, 12], strides = [1, 1, 1]} : vector<10x8x12xf32> to vector<8x8x12xf32>
    %59 = vector.extract_strided_slice %56 {offsets = [2, 0, 0], sizes = [8, 8, 12], strides = [1, 1, 1]} : vector<10x8x12xf32> to vector<8x8x12xf32>
    %60 = tpu.concatenate %57, %58, %59 in 2 : vector<8x8x12xf32>, vector<8x8x12xf32>, vector<8x8x12xf32> -> vector<8x8x36xf32>
    %61 = vector.shape_cast %60 : vector<8x8x36xf32> to vector<64x36xf32>
    %62 = arith.truncf %61 : vector<64x36xf32> to vector<64x36xbf16>
    %c0_16 = arith.constant 0 : index
    %c0_17 = arith.constant 0 : index
    %63 = vector.load %arg5[%c0_16, %c0_17] : memref<36x32xbf16, #tpu.memory_space<vmem>>, vector<36x32xbf16>
    %cst_18 = arith.constant dense<0.000000e+00> : vector<64x32xf32>
    %64 = tpu.matmul %62, %63, %cst_18 {dimension_numbers = #tpu.dot_dimension_numbers<[1], [0], [0], [1], [0, 0, 1, 1], [], []>} : vector<64x36xbf16>, vector<36x32xbf16>, vector<64x32xf32> -> vector<64x32xf32>
    %c0_19 = arith.constant 0 : index
    %c0_20 = arith.constant 0 : index
    %65 = vector.load %arg6[%c0_19, %c0_20] : memref<1x32xf32, #tpu.memory_space<vmem>>, vector<1x32xf32>
    %66 = vector.broadcast %65 : vector<1x32xf32> to vector<64x32xf32>
    %67 = arith.addf %64, %66 : vector<64x32xf32>
    %68 = arith.negf %67 : vector<64x32xf32>
    %69 = math.exp %68 : vector<64x32xf32>
    %cst_21 = arith.constant 1.000000e+00 : f32
    %70 = vector.broadcast %cst_21 : f32 to vector<64x32xf32>
    %71 = arith.addf %70, %69 : vector<64x32xf32>
    %72 = arith.divf %70, %71 : vector<64x32xf32>
    %73 = arith.mulf %67, %72 : vector<64x32xf32>
    %74 = arith.truncf %73 : vector<64x32xf32> to vector<64x32xbf16>
    %c0_22 = arith.constant 0 : index
    %c0_23 = arith.constant 0 : index
    %75 = vector.load %arg7[%c0_22, %c0_23] : memref<32x32xbf16, #tpu.memory_space<vmem>>, vector<32x32xbf16>
    %cst_24 = arith.constant dense<0.000000e+00> : vector<64x32xf32>
    %76 = tpu.matmul %74, %75, %cst_24 {dimension_numbers = #tpu.dot_dimension_numbers<[1], [0], [0], [1], [0, 0, 1, 1], [], []>} : vector<64x32xbf16>, vector<32x32xbf16>, vector<64x32xf32> -> vector<64x32xf32>
    %c0_25 = arith.constant 0 : index
    %c0_26 = arith.constant 0 : index
    %77 = vector.load %arg8[%c0_25, %c0_26] : memref<1x32xf32, #tpu.memory_space<vmem>>, vector<1x32xf32>
    %78 = vector.broadcast %77 : vector<1x32xf32> to vector<64x32xf32>
    %79 = arith.addf %76, %78 : vector<64x32xf32>
    %80 = arith.truncf %79 : vector<64x32xf32> to vector<64x32xbf16>
    %c0_27 = arith.constant 0 : index
    %c0_28 = arith.constant 0 : index
    %81 = vector.load %arg9[%c0_27, %c0_28] : memref<32x8xbf16, #tpu.memory_space<vmem>>, vector<32x8xbf16>
    %cst_29 = arith.constant dense<0.000000e+00> : vector<64x8xf32>
    %82 = tpu.matmul %80, %81, %cst_29 {dimension_numbers = #tpu.dot_dimension_numbers<[1], [0], [0], [1], [0, 0, 1, 1], [], []>} : vector<64x32xbf16>, vector<32x8xbf16>, vector<64x8xf32> -> vector<64x8xf32>
    %cst_30 = arith.constant dense<0xFF800000> : vector<64xf32>
    %83 = vector.multi_reduction <maximumf>, %82, %cst_30 [1] : vector<64x8xf32> to vector<64xf32>
    %84 = vector.shape_cast %83 : vector<64xf32> to vector<64x1xf32>
    %85 = vector.broadcast %84 : vector<64x1xf32> to vector<64x8xf32>
    %86 = arith.subf %82, %85 : vector<64x8xf32>
    %87 = math.exp %86 : vector<64x8xf32>
    %cst_31 = arith.constant dense<0.000000e+00> : vector<64xf32>
    %88 = vector.multi_reduction <add>, %87, %cst_31 [1] : vector<64x8xf32> to vector<64xf32>
    %89 = vector.shape_cast %88 : vector<64xf32> to vector<64x1xf32>
    %90 = tpu.reciprocal %89 {approx = true} : vector<64x1xf32> -> vector<64x1xf32>
    %91 = vector.broadcast %90 : vector<64x1xf32> to vector<64x8xf32>
    %92 = arith.mulf %87, %91 : vector<64x8xf32>
    %93 = arith.truncf %92 : vector<64x8xf32> to vector<64x8xbf16>
    %c0_32 = arith.constant 0 : index
    %c0_33 = arith.constant 0 : index
    %94 = vector.load %arg10[%c0_32, %c0_33] : memref<8x32xbf16, #tpu.memory_space<vmem>>, vector<8x32xbf16>
    %cst_34 = arith.constant dense<0.000000e+00> : vector<64x32xf32>
    %95 = tpu.matmul %93, %94, %cst_34 {dimension_numbers = #tpu.dot_dimension_numbers<[1], [0], [0], [1], [0, 0, 1, 1], [], []>} : vector<64x8xbf16>, vector<8x32xbf16>, vector<64x32xf32> -> vector<64x32xf32>
    %96 = arith.truncf %95 : vector<64x32xf32> to vector<64x32xbf16>
    %c0_35 = arith.constant 0 : index
    %c0_36 = arith.constant 0 : index
    %97 = vector.load %arg11[%c0_35, %c0_36] : memref<32x32xbf16, #tpu.memory_space<vmem>>, vector<32x32xbf16>
    %cst_37 = arith.constant dense<0.000000e+00> : vector<64x32xf32>
    %98 = tpu.matmul %96, %97, %cst_37 {dimension_numbers = #tpu.dot_dimension_numbers<[1], [0], [0], [1], [0, 0, 1, 1], [], []>} : vector<64x32xbf16>, vector<32x32xbf16>, vector<64x32xf32> -> vector<64x32xf32>
    %c0_38 = arith.constant 0 : index
    %c0_39 = arith.constant 0 : index
    %99 = vector.load %arg12[%c0_38, %c0_39] : memref<1x32xf32, #tpu.memory_space<vmem>>, vector<1x32xf32>
    %100 = vector.broadcast %99 : vector<1x32xf32> to vector<64x32xf32>
    %101 = arith.addf %98, %100 : vector<64x32xf32>
    %102 = arith.addf %73, %101 : vector<64x32xf32>
    %103 = vector.shape_cast %102 : vector<64x32xf32> to vector<8x8x32xf32>
    %cst_40 = arith.constant 0.000000e+00 : f32
    %104 = vector.broadcast %cst_40 : f32 to vector<1x8x32xf32>
    %105 = tpu.concatenate %104, %103, %104 in 0 : vector<1x8x32xf32>, vector<8x8x32xf32>, vector<1x8x32xf32> -> vector<10x8x32xf32>
    %cst_41 = arith.constant 0.000000e+00 : f32
    %106 = vector.broadcast %cst_41 : f32 to vector<10x1x32xf32>
    %107 = tpu.concatenate %106, %105, %106 in 1 : vector<10x1x32xf32>, vector<10x8x32xf32>, vector<10x1x32xf32> -> vector<10x10x32xf32>
    %108 = vector.extract_strided_slice %107 {offsets = [0, 0, 0], sizes = [10, 8, 32], strides = [1, 1, 1]} : vector<10x10x32xf32> to vector<10x8x32xf32>
    %109 = vector.extract_strided_slice %107 {offsets = [0, 1, 0], sizes = [10, 8, 32], strides = [1, 1, 1]} : vector<10x10x32xf32> to vector<10x8x32xf32>
    %110 = vector.extract_strided_slice %107 {offsets = [0, 2, 0], sizes = [10, 8, 32], strides = [1, 1, 1]} : vector<10x10x32xf32> to vector<10x8x32xf32>
    %111 = tpu.concatenate %108, %109, %110 in 2 : vector<10x8x32xf32>, vector<10x8x32xf32>, vector<10x8x32xf32> -> vector<10x8x96xf32>
    %112 = vector.extract_strided_slice %111 {offsets = [0, 0, 0], sizes = [8, 8, 96], strides = [1, 1, 1]} : vector<10x8x96xf32> to vector<8x8x96xf32>
    %113 = vector.extract_strided_slice %111 {offsets = [1, 0, 0], sizes = [8, 8, 96], strides = [1, 1, 1]} : vector<10x8x96xf32> to vector<8x8x96xf32>
    %114 = vector.extract_strided_slice %111 {offsets = [2, 0, 0], sizes = [8, 8, 96], strides = [1, 1, 1]} : vector<10x8x96xf32> to vector<8x8x96xf32>
    %115 = tpu.concatenate %112, %113, %114 in 2 : vector<8x8x96xf32>, vector<8x8x96xf32>, vector<8x8x96xf32> -> vector<8x8x288xf32>
    %116 = vector.shape_cast %115 : vector<8x8x288xf32> to vector<64x288xf32>
    %117 = arith.truncf %116 : vector<64x288xf32> to vector<64x288xbf16>
    %c0_42 = arith.constant 0 : index
    %c0_43 = arith.constant 0 : index
    %118 = vector.load %arg13[%c0_42, %c0_43] : memref<288x4xbf16, #tpu.memory_space<vmem>>, vector<288x4xbf16>
    %cst_44 = arith.constant dense<0.000000e+00> : vector<64x4xf32>
    %119 = tpu.matmul %117, %118, %cst_44 {dimension_numbers = #tpu.dot_dimension_numbers<[1], [0], [0], [1], [0, 0, 1, 1], [], []>} : vector<64x288xbf16>, vector<288x4xbf16>, vector<64x4xf32> -> vector<64x4xf32>
    %c0_45 = arith.constant 0 : index
    %c0_46 = arith.constant 0 : index
    %120 = vector.load %arg14[%c0_45, %c0_46] : memref<1x4xf32, #tpu.memory_space<vmem>>, vector<1x4xf32>
    %121 = vector.broadcast %120 : vector<1x4xf32> to vector<64x4xf32>
    %122 = arith.addf %119, %121 : vector<64x4xf32>
    %c0_47 = arith.constant 0 : index
    %c1 = arith.constant 1 : index
    %c0_48 = arith.constant 0 : index
    %c0_49 = arith.constant 0 : index
    %123 = vector.load %arg2[%c0_47, %c1, %c0_48, %c0_49] : memref<1x2x64x4xf32, #tpu.memory_space<vmem>>, vector<1x1x64x4xf32>
    %124 = vector.shape_cast %123 : vector<1x1x64x4xf32> to vector<64x4xf32>
    %cst_50 = arith.constant 0.997667253 : f32
    %125 = vector.broadcast %cst_50 : f32 to vector<64x4xf32>
    %126 = arith.mulf %125, %122 : vector<64x4xf32>
    %127 = arith.subf %47, %126 : vector<64x4xf32>
    %cst_51 = arith.constant 14.6488132 : f32
    %128 = vector.broadcast %cst_51 : f32 to vector<64x4xf32>
    %129 = arith.mulf %127, %128 : vector<64x4xf32>
    %cst_52 = arith.constant 1.000000e+00 : f32
    %130 = vector.broadcast %cst_52 : f32 to vector<64x4xf32>
    %131 = arith.mulf %130, %129 : vector<64x4xf32>
    %cst_53 = arith.constant 0.000000e+00 : f32
    %132 = vector.broadcast %cst_53 : f32 to vector<64x4xf32>
    %133 = arith.mulf %132, %47 : vector<64x4xf32>
    %134 = arith.addf %131, %133 : vector<64x4xf32>
    %cst_54 = arith.constant 1.000000e-10 : f32
    %135 = vector.broadcast %cst_54 : f32 to vector<64x4xf32>
    %136 = arith.mulf %135, %124 : vector<64x4xf32>
    %137 = arith.addf %134, %136 : vector<64x4xf32>
    %cst_55 = arith.constant 5.4899807 : f32
    %138 = vector.broadcast %cst_55 : f32 to vector<64x4xf32>
    %139 = arith.mulf %137, %138 : vector<64x4xf32>
    %140 = vector.shape_cast %139 : vector<64x4xf32> to vector<8x8x4xf32>
    %cst_56 = arith.constant 0.000000e+00 : f32
    %141 = vector.broadcast %cst_56 : f32 to vector<1x8x4xf32>
    %142 = tpu.concatenate %141, %140, %141 in 0 : vector<1x8x4xf32>, vector<8x8x4xf32>, vector<1x8x4xf32> -> vector<10x8x4xf32>
    %cst_57 = arith.constant 0.000000e+00 : f32
    %143 = vector.broadcast %cst_57 : f32 to vector<10x1x4xf32>
    %144 = tpu.concatenate %143, %142, %143 in 1 : vector<10x1x4xf32>, vector<10x8x4xf32>, vector<10x1x4xf32> -> vector<10x10x4xf32>
    %145 = vector.extract_strided_slice %144 {offsets = [0, 0, 0], sizes = [10, 8, 4], strides = [1, 1, 1]} : vector<10x10x4xf32> to vector<10x8x4xf32>
    %146 = vector.extract_strided_slice %144 {offsets = [0, 1, 0], sizes = [10, 8, 4], strides = [1, 1, 1]} : vector<10x10x4xf32> to vector<10x8x4xf32>
    %147 = vector.extract_strided_slice %144 {offsets = [0, 2, 0], sizes = [10, 8, 4], strides = [1, 1, 1]} : vector<10x10x4xf32> to vector<10x8x4xf32>
    %148 = tpu.concatenate %145, %146, %147 in 2 : vector<10x8x4xf32>, vector<10x8x4xf32>, vector<10x8x4xf32> -> vector<10x8x12xf32>
    %149 = vector.extract_strided_slice %148 {offsets = [0, 0, 0], sizes = [8, 8, 12], strides = [1, 1, 1]} : vector<10x8x12xf32> to vector<8x8x12xf32>
    %150 = vector.extract_strided_slice %148 {offsets = [1, 0, 0], sizes = [8, 8, 12], strides = [1, 1, 1]} : vector<10x8x12xf32> to vector<8x8x12xf32>
    %151 = vector.extract_strided_slice %148 {offsets = [2, 0, 0], sizes = [8, 8, 12], strides = [1, 1, 1]} : vector<10x8x12xf32> to vector<8x8x12xf32>
    %152 = tpu.concatenate %149, %150, %151 in 2 : vector<8x8x12xf32>, vector<8x8x12xf32>, vector<8x8x12xf32> -> vector<8x8x36xf32>
    %153 = vector.shape_cast %152 : vector<8x8x36xf32> to vector<64x36xf32>
    %154 = arith.truncf %153 : vector<64x36xf32> to vector<64x36xbf16>
    %c0_58 = arith.constant 0 : index
    %c0_59 = arith.constant 0 : index
    %155 = vector.load %arg15[%c0_58, %c0_59] : memref<36x16xbf16, #tpu.memory_space<vmem>>, vector<36x16xbf16>
    %cst_60 = arith.constant dense<0.000000e+00> : vector<64x16xf32>
    %156 = tpu.matmul %154, %155, %cst_60 {dimension_numbers = #tpu.dot_dimension_numbers<[1], [0], [0], [1], [0, 0, 1, 1], [], []>} : vector<64x36xbf16>, vector<36x16xbf16>, vector<64x16xf32> -> vector<64x16xf32>
    %c0_61 = arith.constant 0 : index
    %c0_62 = arith.constant 0 : index
    %157 = vector.load %arg16[%c0_61, %c0_62] : memref<1x16xf32, #tpu.memory_space<vmem>>, vector<1x16xf32>
    %158 = vector.broadcast %157 : vector<1x16xf32> to vector<64x16xf32>
    %159 = arith.addf %156, %158 : vector<64x16xf32>
    %160 = arith.negf %159 : vector<64x16xf32>
    %161 = math.exp %160 : vector<64x16xf32>
    %cst_63 = arith.constant 1.000000e+00 : f32
    %162 = vector.broadcast %cst_63 : f32 to vector<64x16xf32>
    %163 = arith.addf %162, %161 : vector<64x16xf32>
    %164 = arith.divf %162, %163 : vector<64x16xf32>
    %165 = arith.mulf %159, %164 : vector<64x16xf32>
    %166 = vector.shape_cast %165 : vector<64x16xf32> to vector<8x8x16xf32>
    %cst_64 = arith.constant 0.000000e+00 : f32
    %167 = vector.broadcast %cst_64 : f32 to vector<1x8x16xf32>
    %168 = tpu.concatenate %167, %166, %167 in 0 : vector<1x8x16xf32>, vector<8x8x16xf32>, vector<1x8x16xf32> -> vector<10x8x16xf32>
    %cst_65 = arith.constant 0.000000e+00 : f32
    %169 = vector.broadcast %cst_65 : f32 to vector<10x1x16xf32>
    %170 = tpu.concatenate %169, %168, %169 in 1 : vector<10x1x16xf32>, vector<10x8x16xf32>, vector<10x1x16xf32> -> vector<10x10x16xf32>
    %171 = vector.extract_strided_slice %170 {offsets = [0, 0, 0], sizes = [10, 8, 16], strides = [1, 1, 1]} : vector<10x10x16xf32> to vector<10x8x16xf32>
    %172 = vector.extract_strided_slice %170 {offsets = [0, 1, 0], sizes = [10, 8, 16], strides = [1, 1, 1]} : vector<10x10x16xf32> to vector<10x8x16xf32>
    %173 = vector.extract_strided_slice %170 {offsets = [0, 2, 0], sizes = [10, 8, 16], strides = [1, 1, 1]} : vector<10x10x16xf32> to vector<10x8x16xf32>
    %174 = tpu.concatenate %171, %172, %173 in 2 : vector<10x8x16xf32>, vector<10x8x16xf32>, vector<10x8x16xf32> -> vector<10x8x48xf32>
    %175 = vector.extract_strided_slice %174 {offsets = [0, 0, 0], sizes = [8, 8, 48], strides = [1, 1, 1]} : vector<10x8x48xf32> to vector<8x8x48xf32>
    %176 = vector.extract_strided_slice %174 {offsets = [1, 0, 0], sizes = [8, 8, 48], strides = [1, 1, 1]} : vector<10x8x48xf32> to vector<8x8x48xf32>
    %177 = vector.extract_strided_slice %174 {offsets = [2, 0, 0], sizes = [8, 8, 48], strides = [1, 1, 1]} : vector<10x8x48xf32> to vector<8x8x48xf32>
    %178 = tpu.concatenate %175, %176, %177 in 2 : vector<8x8x48xf32>, vector<8x8x48xf32>, vector<8x8x48xf32> -> vector<8x8x144xf32>
    %179 = vector.shape_cast %178 : vector<8x8x144xf32> to vector<64x144xf32>
    %180 = arith.truncf %179 : vector<64x144xf32> to vector<64x144xbf16>
    %c0_66 = arith.constant 0 : index
    %c0_67 = arith.constant 0 : index
    %181 = vector.load %arg17[%c0_66, %c0_67] : memref<144x12xbf16, #tpu.memory_space<vmem>>, vector<144x12xbf16>
    %cst_68 = arith.constant dense<0.000000e+00> : vector<64x12xf32>
    %182 = tpu.matmul %180, %181, %cst_68 {dimension_numbers = #tpu.dot_dimension_numbers<[1], [0], [0], [1], [0, 0, 1, 1], [], []>} : vector<64x144xbf16>, vector<144x12xbf16>, vector<64x12xf32> -> vector<64x12xf32>
    %c0_69 = arith.constant 0 : index
    %c0_70 = arith.constant 0 : index
    %183 = vector.load %arg18[%c0_69, %c0_70] : memref<1x12xf32, #tpu.memory_space<vmem>>, vector<1x12xf32>
    %184 = vector.broadcast %183 : vector<1x12xf32> to vector<64x12xf32>
    %185 = arith.addf %182, %184 : vector<64x12xf32>
    %cst_71 = arith.constant -1.000000e+00 : f32
    %cst_72 = arith.constant 1.000000e+00 : f32
    %186 = vector.broadcast %cst_71 : f32 to vector<64x12xf32>
    %187 = arith.maximumf %186, %185 : vector<64x12xf32>
    %188 = vector.broadcast %cst_72 : f32 to vector<64x12xf32>
    %189 = arith.minimumf %188, %187 : vector<64x12xf32>
    %c0_73 = arith.constant 0 : index
    %c0_74 = arith.constant 0 : index
    %c0_75 = arith.constant 0 : index
    %190 = vector.load %arg19[%c0_73, %c0_74, %c0_75] : memref<1x64x12xf32, #tpu.memory_space<vmem>>, vector<1x64x12xf32>
    %191 = vector.shape_cast %190 : vector<1x64x12xf32> to vector<64x12xf32>
    %192 = vector.shape_cast %189 : vector<64x12xf32> to vector<1x64x12xf32>
    tpu.vector_store %arg19[%c0_73, %c0_74, %c0_75], %192 {strides = array<i32>} : memref<1x64x12xf32, #tpu.memory_space<vmem>>, vector<1x64x12xf32>,
    return
  }
  func.func @transform_0(%arg0: i32) -> (i32, i32, i32, i32, i32) {
    %c0_i32 = arith.constant 0 : i32
    %c0_i32_0 = arith.constant 0 : i32
    %c0_i32_1 = arith.constant 0 : i32
    %c0_i32_2 = arith.constant 0 : i32
    %c0_i32_3 = arith.constant 0 : i32
    return %arg0, %c0_i32, %c0_i32_0, %c0_i32_1, %c0_i32_2 : i32, i32, i32, i32, i32
  }
  func.func @transform_1(%arg0: i32) -> (i32, i32, i32, i32) {
    %c0_i32 = arith.constant 0 : i32
    %c0_i32_0 = arith.constant 0 : i32
    %c0_i32_1 = arith.constant 0 : i32
    %c0_i32_2 = arith.constant 0 : i32
    return %arg0, %c0_i32, %c0_i32_0, %c0_i32_1 : i32, i32, i32, i32
  }
  func.func @transform_2(%arg0: i32) -> (i32, i32) {
    %c0_i32 = arith.constant 0 : i32
    %c0_i32_0 = arith.constant 0 : i32
    %c0_i32_1 = arith.constant 0 : i32
    return %c0_i32, %c0_i32_0 : i32, i32
  }
  func.func @transform_3(%arg0: i32) -> (i32, i32) {
    %c0_i32 = arith.constant 0 : i32
    %c0_i32_0 = arith.constant 0 : i32
    %c0_i32_1 = arith.constant 0 : i32
    return %c0_i32, %c0_i32_0 : i32, i32
  }
  func.func @transform_4(%arg0: i32) -> (i32, i32) {
    %c0_i32 = arith.constant 0 : i32
    %c0_i32_0 = arith.constant 0 : i32
    %c0_i32_1 = arith.constant 0 : i32
    return %c0_i32, %c0_i32_0 : i32, i32
  }
  func.func @transform_5(%arg0: i32) -> (i32, i32) {
    %c0_i32 = arith.constant 0 : i32
    %c0_i32_0 = arith.constant 0 : i32
    %c0_i32_1 = arith.constant 0 : i32
    return %c0_i32, %c0_i32_0 : i32, i32
  }
  func.func @transform_6(%arg0: i32) -> (i32, i32) {
    %c0_i32 = arith.constant 0 : i32
    %c0_i32_0 = arith.constant 0 : i32
    %c0_i32_1 = arith.constant 0 : i32
    return %c0_i32, %c0_i32_0 : i32, i32
  }
  func.func @transform_7(%arg0: i32) -> (i32, i32) {
    %c0_i32 = arith.constant 0 : i32
    %c0_i32_0 = arith.constant 0 : i32
    %c0_i32_1 = arith.constant 0 : i32
    return %c0_i32, %c0_i32_0 : i32, i32
  }
  func.func @transform_8(%arg0: i32) -> (i32, i32) {
    %c0_i32 = arith.constant 0 : i32
    %c0_i32_0 = arith.constant 0 : i32
    %c0_i32_1 = arith.constant 0 : i32
    return %c0_i32, %c0_i32_0 : i32, i32
  }
  func.func @transform_9(%arg0: i32) -> (i32, i32) {
    %c0_i32 = arith.constant 0 : i32
    %c0_i32_0 = arith.constant 0 : i32
    %c0_i32_1 = arith.constant 0 : i32
    return %c0_i32, %c0_i32_0 : i32, i32
  }
  func.func @transform_10(%arg0: i32) -> (i32, i32) {
    %c0_i32 = arith.constant 0 : i32
    %c0_i32_0 = arith.constant 0 : i32
    %c0_i32_1 = arith.constant 0 : i32
    return %c0_i32, %c0_i32_0 : i32, i32
  }
  func.func @transform_11(%arg0: i32) -> (i32, i32) {
    %c0_i32 = arith.constant 0 : i32
    %c0_i32_0 = arith.constant 0 : i32
    %c0_i32_1 = arith.constant 0 : i32
    return %c0_i32, %c0_i32_0 : i32, i32
  }
  func.func @transform_12(%arg0: i32) -> (i32, i32) {
    %c0_i32 = arith.constant 0 : i32
    %c0_i32_0 = arith.constant 0 : i32
    %c0_i32_1 = arith.constant 0 : i32
    return %c0_i32, %c0_i32_0 : i32, i32
  }
  func.func @transform_13(%arg0: i32) -> (i32, i32) {
    %c0_i32 = arith.constant 0 : i32
    %c0_i32_0 = arith.constant 0 : i32
    %c0_i32_1 = arith.constant 0 : i32
    return %c0_i32, %c0_i32_0 : i32, i32
  }
  func.func @transform_14(%arg0: i32) -> (i32, i32) {
    %c0_i32 = arith.constant 0 : i32
    %c0_i32_0 = arith.constant 0 : i32
    %c0_i32_1 = arith.constant 0 : i32
    return %c0_i32, %c0_i32_0 : i32, i32
  }
  func.func @transform_15(%arg0: i32) -> (i32, i32) {
    %c0_i32 = arith.constant 0 : i32
    %c0_i32_0 = arith.constant 0 : i32
    %c0_i32_1 = arith.constant 0 : i32
    return %c0_i32, %c0_i32_0 : i32, i32
  }
  func.func @transform_16(%arg0: i32) -> (i32, i32) {
    %c0_i32 = arith.constant 0 : i32
    %c0_i32_0 = arith.constant 0 : i32
    %c0_i32_1 = arith.constant 0 : i32
    return %c0_i32, %c0_i32_0 : i32, i32
  }
  func.func @transform_17(%arg0: i32) -> (i32, i32) {
    %c0_i32 = arith.constant 0 : i32
    %c0_i32_0 = arith.constant 0 : i32
    %c0_i32_1 = arith.constant 0 : i32
    return %c0_i32, %c0_i32_0 : i32, i32
  }
  func.func @transform_18(%arg0: i32) -> (i32, i32, i32) {
    %c0_i32 = arith.constant 0 : i32
    %c0_i32_0 = arith.constant 0 : i32
    %c0_i32_1 = arith.constant 0 : i32
    return %arg0, %c0_i32, %c0_i32_0 : i32, i32, i32
  }
}

</mosaic_0001>

<bundles_post_ra>
// kernel: osediff_forward.1
= control target key start
LH: loop header
LB: loop body
LE: loop exit
PB: predicated region body
PF: predicated region fallthrough
CT: control target
= control target key end

     0   :  { %s4591_s27 = smov 0   ;;  %s5923_s0 = inlined_call_operand.vmem [shape: f32[2,4,9,9,3], index: 0, kind: input, shape index: {}]   ;;  %s5924_s1 = inlined_call_operand.vmem [shape: f32[2,2,64,4], index: 1, kind: input, shape index: {}]   ;;  %s5925_s2 = inlined_call_operand.vmem [shape: bf16[27,8], index: 2, kind: input, shape index: {}]   ;;  %s5926_s3 = inlined_call_operand.vmem [shape: f32[1,8], index: 3, kind: input, shape index: {}]   ;;  %s5927_s4 = inlined_call_operand.vmem [shape: bf16[36,32], index: 4, kind: input, shape index: {}]   ;;  %s5928_s5 = inlined_call_operand.vmem [shape: f32[1,32], index: 5, kind: input, shape index: {}]   ;;  %s5929_s6 = inlined_call_operand.vmem [shape: bf16[32,32], index: 6, kind: input, shape index: {}]   ;;  %s5930_s7 = inlined_call_operand.vmem [shape: f32[1,32], index: 7, kind: input, shape index: {}]   ;;  %s5931_s8 = inlined_call_operand.vmem [shape: bf16[32,8], index: 8, kind: input, shape index: {}]   ;;  %s5932_s9 = inlined_call_operand.vmem [shape: bf16[8,32], index: 9, kind: input, shape index: {}]   ;;  %s5933_s10 = inlined_call_operand.vmem [shape: bf16[32,32], index: 10, kind: input, shape index: {}]   ;;  %s5934_s11 = inlined_call_operand.vmem [shape: f32[1,32], index: 11, kind: input, shape index: {}]   ;;  %s5935_s12 = inlined_call_operand.vmem [shape: bf16[288,4], index: 12, kind: input, shape index: {}]   ;;  %s5936_s13 = inlined_call_operand.vmem [shape: f32[1,4], index: 13, kind: input, shape index: {}]   ;;  %s5937_s14 = inlined_call_operand.vmem [shape: bf16[36,16], index: 14, kind: input, shape index: {}]   ;;  %s5938_s15 = inlined_call_operand.vmem [shape: f32[1,16], index: 15, kind: input, shape index: {}]   ;;  %s5939_s16 = inlined_call_operand.vmem [shape: bf16[144,12], index: 16, kind: input, shape index: {}]   ;;  %s5940_s17 = inlined_call_operand.vmem [shape: f32[1,12], index: 17, kind: input, shape index: {}]   ;;  %s5941_s18 = inlined_call_operand.vmem [shape: f32[2,64,12], index: 18, kind: output, shape index: {}]  }
   0x1   :  { %5959 = sst [smem:[#allocation2_spill]] %s5923_s0 }
   0x2   :  { %5960 = sst [smem:[#allocation3_spill]] %s5924_s1 }
   0x3   :  { %5961 = sst [smem:[#allocation4_spill]] %s5925_s2 }
   0x4 LB: > { %s3592_s28 = sadd.s32 4294967295, %s4476_s27   ;;  %p3596_p0 = scmp.ge.s32.totalorder %s4476_s27, 1  ;;  %s4476_s27 = sphi %s4591_s27, %s28_s27  }
   0x5   : > { %p522_p1 = scmp.lt.s32.totalorder %s4476_s27, 3 }
   0x7   : > { %p523_p2 = pnand %p3596_p0, %p522_p1 }
   0x8   : > { %p581_p3 = scmp.lt.s32.totalorder (!%p523_p2), %s3592_s28, 1  ;;  %s5962_s19 = sld [smem:[#allocation2_spill]] (!%p523_p2) }
   0x9   : > { %526 = sbr.rel (%p523_p2) target bundleno = 3049 (0xbe9), region = 92  ;;  %s4478_s20 = smov (!%p523_p2), 3  }
   0xa   : > { %s4479_s21 = smov (!%p523_p2), 9   ;;  %s4480_s22 = smov (!%p523_p2), 18  }
   0xb   : > { %s4481_s2 = smov (!%p523_p2), 6   ;;  %s5949_s23 = smov (!%p523_p2), 12  }
   0xc   : > { %s4483_s24 = smov (!%p523_p2), 15   ;;  %s4484_s25 = smov (!%p523_p2), 21  }
   0xd   : > { %s5947_s26 = smov (!%p523_p2), 24   ;;  %s5963_s0 = sld [smem:[#allocation4_spill]] (!%p523_p2) }
   0xe   : > { %s5985_s28 = smov (!%p581_p3, %s3592_s28), 1  ;;  %vm696_vm0 = vcmask 1046528   ;;  %vm1051_vm1 = vcmask 1044480   ;;  %vm1052_vm2 = vcmask 1045504   ;;  %vm943_vm3 = vcmask 23552   ;;  %s5951_s30 = smov 4  }
   0xf   : > { %s3869_s29 = smul.u32 576, %s5985_s28  ;;  %vm952_vm4 = vcmask 48128   ;;  %vm961_vm5 = vcmask 72704   ;;  %vm970_vm6 = vcmask 97280   ;;  %vm979_vm7 = vcmask 121856  }
  0x10   : > { %vm988_vm8 = vcmask 146432   ;;  %vm997_vm9 = vcmask 171008   ;;  %vm5944_vm10 = vcmask 195584   ;;  %vm1038_vm11 = vcmask 220160  }
  0x11   : > { %s4605_s1 = scalar_lea.vmem %s5962_s19, %s3869_s29  ;;  %vm1234_vm12 = vcmask 1040384   ;;  %vm1379_vm13 = vcmask 31744   ;;  %vm1389_vm14 = vcmask 64512   ;;  %vm1513_vm15 = vcmask 1041408   ;;  %s5968_s19 = smov 4  }
  0x12   : > { %v616_v0 = vld [vmem:[%s4605_s1 + $0xa0] sm:$0xff]  ;;  %v615_v1 = vld [vmem:[%s4605_s1 + $0x90] sm:$0xff]  ;;  %v598_v7 = vld [vmem:[%s4605_s1 + $0x8] sm:$0x1] }
  0x13   : > { %v3896_v2 = vpack.i.bf16 %v616_v0, %v615_v1  ;;  %v624_v3 = vld [vmem:[%s4605_s1 + $0x120] sm:$0xff]  ;;  %v626_v4 = vld [vmem:[%s4605_s1 + $0x130] sm:$0xff]  ;;  %v600_v10 = vld [vmem:[%s4605_s1 + $0x18] sm:$0x1]  ;;  %v698_v11 = vrot.slane %v598_v7, 1 }
  0x14   : > { %v4612_v5 = vld [vmem:[%s4605_s1] sm:$0xff]  ;;  %v3901_v6 = vpack.i.bf16 %v626_v4, %v624_v3  ;;  %v4616_v8 = vld [vmem:[%s4605_s1 + $0x10] sm:$0xff]  ;;  %v701_v13 = vrot.slane %v600_v10, 1  ;;  %v602_v19 = vld [vmem:[%s4605_s1 + $0x28] sm:$0x1]  ;;  %v817_v21 = vrot.slane %v624_v3, 1 }
  0x15   : > { %v697_v9 = vrot.slane %v4612_v5, 1  ;;  %3897 = vrot.lane.b32.xlu0 %v3896_v2, %s4478_s20  ;;  %v700_v12 = vrot.slane %v4616_v8, 1  ;;  %v640_v15 = vld [vmem:[%s4605_s1 + $0x1b0] sm:$0xff]  ;;  %v641_v16 = vld [vmem:[%s4605_s1 + $0x1c0] sm:$0xff]  ;;  %v625_v23 = vld [vmem:[%s4605_s1 + $0x128] sm:$0x1] }
  0x16   : > { %3902 = vrot.lane.b32.xlu1 %v3901_v6, %s4479_s21  ;;  %v4627_v17 = vld [vmem:[%s4605_s1 + $0x20] sm:$0xff]  ;;  %v820_v24 = vrot.slane %v626_v4, 1  ;;  %v3906_v25 = vpack.i.bf16 %v641_v16, %v640_v15  ;;  %v627_v26 = vld [vmem:[%s4605_s1 + $0x138] sm:$0x1]  ;;  %v704_v28 = vrot.slane %v602_v19, 1  ;;  %v818_v29 = vrot.slane %v625_v23, 1 }
  0x17   : > { %v699_v14 = vsel %vm696_vm0, %v697_v9, %v698_v11  ;;  %v702_v18 = vsel %vm696_vm0, %v700_v12, %v701_v13  ;;  %v3911_v20 = vpack.i.bf16 %v4627_v17, %v4616_v8  ;;  %v703_v27 = vrot.slane %v4627_v17, 1  ;;  %v617_v32 = vld [vmem:[%s4605_s1 + $0xb0] sm:$0xff]  ;;  %v604_v36 = vld [vmem:[%s4605_s1 + $0x38] sm:$0x1]  ;;  %v618_v42 = vld [vmem:[%s4605_s1 + $0xc0] sm:$0xff] }
  0x18   : > { %v3916_v22 = vpack.i.bf16 %v702_v18, %v699_v14  ;;  %v821_v30 = vrot.slane %v627_v26, 1  ;;  %v819_v31 = vsel %vm696_vm0, %v817_v21, %v818_v29  ;;  %v4644_v35 = vld [vmem:[%s4605_s1 + $0x30] sm:$0xff]  ;;  %v3921_v38 = vpack.i.bf16 %v617_v32, %v616_v0  ;;  %v628_v44 = vld [vmem:[%s4605_s1 + $0x140] sm:$0xff]  ;;  %v629_v47 = vld [vmem:[%s4605_s1 + $0x148] sm:$0x1] }
  0x19   : > { %3912 = vrot.lane.b32.xlu2 %v3911_v20, %s4480_s22  ;;  %v705_v34 = vsel %vm696_vm0, %v703_v27, %v704_v28  ;;  %v706_v40 = vrot.slane %v4644_v35, 1  ;;  %v707_v41 = vrot.slane %v604_v36, 1  ;;  %v3936_v45 = vpack.i.bf16 %v618_v42, %v617_v32  ;;  %v630_v46 = vld [vmem:[%s4605_s1 + $0x150] sm:$0xff]  ;;  %v631_v48 = vld [vmem:[%s4605_s1 + $0x158] sm:$0x1]  ;;  %v643_v56 = vld [vmem:[%s4605_s1 + $0x1e0] sm:$0xff] }
  0x1a   : > { %v822_v33 = vsel %vm696_vm0, %v820_v24, %v821_v30  ;;  %v3931_v39 = vpack.i.bf16 %v705_v34, %v702_v18  ;;  %v823_v50 = vrot.slane %v628_v44, 1  ;;  %v826_v51 = vrot.slane %v630_v46, 1  ;;  %v642_v55 = vld [vmem:[%s4605_s1 + $0x1d0] sm:$0xff]  ;;  %v4665_v60 = vld [vmem:[%s4605_s1 + $0x40] sm:$0xff]  ;;  %v606_v61 = vld [vmem:[%s4605_s1 + $0x48] sm:$0x1] }
  0x1b   : > { %v3926_v37 = vpack.i.bf16 %v822_v33, %v819_v31  ;;  %v708_v43 = vsel %vm696_vm0, %v706_v40, %v707_v41  ;;  %v3946_v52 = vpack.i.bf16 %v630_v46, %v628_v44  ;;  %v824_v53 = vrot.slane %v629_v47, 1  ;;  %v608_v2 = vld [vmem:[%s4605_s1 + $0x58] sm:$0x1]  ;;  %v619_v3 = vld [vmem:[%s4605_s1 + $0xd0] sm:$0xff]  ;;  %v620_v9 = vld [vmem:[%s4605_s1 + $0xe0] sm:$0xff] }
  0x1c   : > { %v3941_v49 = vpack.i.bf16 %v708_v43, %v705_v34  ;;  %v827_v54 = vrot.slane %v631_v48, 1  ;;  %v3951_v59 = vpack.i.bf16 %v643_v56, %v642_v55  ;;  %v709_v63 = vrot.slane %v4665_v60, 1  ;;  %v4678_v6 = vld [vmem:[%s4605_s1 + $0x50] sm:$0xff]  ;;  %v633_v15 = vld [vmem:[%s4605_s1 + $0x168] sm:$0x1]  ;;  %v632_v18 = vld [vmem:[%s4605_s1 + $0x160] sm:$0xff] }
  0x1d   : > { %3917 = vrot.lane.b32.xlu0 %v3916_v22, %s4481_s2  ;;  %v825_v57 = vsel %vm696_vm0, %v823_v50, %v824_v53  ;;  %v3961_v0 = vpack.i.bf16 %v4665_v60, %v4644_v35  ;;  %v710_v1 = vrot.slane %v606_v61, 1  ;;  %v3966_v7 = vpack.i.bf16 %v619_v3, %v618_v42  ;;  %v635_v16 = vld [vmem:[%s4605_s1 + $0x178] sm:$0x1]  ;;  %v634_v19 = vld [vmem:[%s4605_s1 + $0x170] sm:$0xff]  ;;  %v645_v24 = vld [vmem:[%s4605_s1 + $0x200] sm:$0xff] }
  0x1e   : > { %3907 = vrot.lane.b32.xlu1 %v3906_v25, %s5949_s23  ;;  %v828_v58 = vsel %vm696_vm0, %v826_v51, %v827_v54  ;;  %v712_v10 = vrot.slane %v4678_v6, 1  ;;  %v713_v11 = vrot.slane %v608_v2, 1  ;;  %v3976_v13 = vpack.i.bf16 %v620_v9, %v619_v3  ;;  %v644_v23 = vld [vmem:[%s4605_s1 + $0x1f0] sm:$0xff]  ;;  %v4698_v31 = vld [vmem:[%s4605_s1 + $0x60] sm:$0xff]  ;;  %v610_v32 = vld [vmem:[%s4605_s1 + $0x68] sm:$0x1] }
  0x1f   : > { %v3956_v62 = vpack.i.bf16 %v828_v58, %v825_v57  ;;  %v711_v4 = vsel %vm696_vm0, %v709_v63, %v710_v1  ;;  %v832_v21 = vrot.slane %v634_v19, 1  ;;  %v829_v22 = vrot.slane %v632_v18, 1  ;;  %v621_v34 = vld [vmem:[%s4605_s1 + $0xf0] sm:$0xff]  ;;  %v636_v48 = vld [vmem:[%s4605_s1 + $0x180] sm:$0xff]  ;;  %v639_v51 = vld [vmem:[%s4605_s1 + $0x198] sm:$0x1] }
  0x20   : > { %v3971_v12 = vpack.i.bf16 %v711_v4, %v708_v43  ;;  %v714_v14 = vsel %vm696_vm0, %v712_v10, %v713_v11  ;;  %v830_v25 = vrot.slane %v633_v15, 1  ;;  %v833_v26 = vrot.slane %v635_v16, 1  ;;  %v4703_v36 = vld [vmem:[%s4605_s1 + $0x70] sm:$0xff]  ;;  %v614_v1 = vld [vmem:[%s4605_s1 + $0x88] sm:$0x1] }
  0x21   : > { %3927 = vrot.lane.b32.xlu2 %v3926_v37, %s4483_s24  ;;  %v3981_v20 = vpack.i.bf16 %v714_v14, %v711_v4  ;;  %v3986_v27 = vpack.i.bf16 %v634_v19, %v632_v18  ;;  %v3991_v28 = vpack.i.bf16 %v645_v24, %v644_v23  ;;  %v612_v37 = vld [vmem:[%s4605_s1 + $0x78] sm:$0x1]  ;;  %v716_v40 = vrot.slane %v610_v32, 1  ;;  %v638_v50 = vld [vmem:[%s4605_s1 + $0x190] sm:$0xff]  ;;  %v3831_v15 = vld [vmem:[%s5963_s0 + $0x8] sm:$0x30] }
  0x22   : > { %v831_v29 = vsel %vm696_vm0, %v829_v22, %v830_v25  ;;  %v834_v30 = vsel %vm696_vm0, %v832_v21, %v833_v26  ;;  %v4006_v41 = vpack.i.bf16 %v621_v34, %v620_v9  ;;  %v718_v42 = vrot.slane %v4703_v36, 1  ;;  %v646_v58 = vld [vmem:[%s4605_s1 + $0x210] sm:$0xff]  ;;  %v3830_v23 = vld [vmem:[%s5963_s0] sm:$0xff] }
  0x23   : > { %v3996_v33 = vpack.i.bf16 %v834_v30, %v831_v29  ;;  %v719_v43 = vrot.slane %v612_v37, 1  ;;  %v835_v54 = vrot.slane %v636_v48, 1  ;;  %v838_v56 = vrot.slane %v638_v50, 1  ;;  %v623_v9 = vld [vmem:[%s4605_s1 + $0x110] sm:$0xff] }
  0x24   : > { %v839_v57 = vrot.slane %v639_v51, 1  ;;  %v4026_v61 = vpack.i.bf16 %v638_v50, %v636_v48  ;;  %v4486_v19 = vmov 65535  }
  0x25   : > { %3922 = vrot.lane.b32.xlu0 %v3921_v38, %s4484_s25  ;;  %v715_v38 = vrot.slane %v4698_v31, 1  ;;  %v720_v47 = vsel %vm696_vm0, %v718_v42, %v719_v43 }
  0x26   : > { %3932 = vrot.lane.b32.xlu1 %v3931_v39, %s5947_s26  ;;  %v4001_v39 = vpack.i.bf16 %v4698_v31, %v4678_v6  ;;  %v840_v63 = vsel %vm696_vm0, %v838_v56, %v839_v57 }
  0x27   : > { %v717_v44 = vsel %vm696_vm0, %v715_v38, %v716_v40 }
  0x28   : > { %v4011_v46 = vpack.i.bf16 %v717_v44, %v714_v14  ;;  %v4021_v53 = vpack.i.bf16 %v720_v47, %v717_v44  ;;  %v3608_v14 = vld [vmem:[%s5963_s0 + $0x8] sm:$0xf] }
  0x29   : > { %3937 = vrot.lane.b32.xlu2 %v3936_v45, %s4478_s20  ;;  %v622_v45 = vld [vmem:[%s4605_s1 + $0x100] sm:$0xff]  ;;  %v3609_v16 = vor.u32 %v3831_v15, %v3608_v14 }
  0x2d   : > { %3942 = vrot.lane.b32.xlu0 %v3941_v49, %s4481_s2  ;;  %v637_v49 = vld [vmem:[%s4605_s1 + $0x188] sm:$0x1] }
  0x2e   : > { %3947 = vrot.lane.b32.xlu1 %v3946_v52, %s4479_s21  ;;  %v4016_v52 = vpack.i.bf16 %v622_v45, %v621_v34  ;;  %v836_v55 = vrot.slane %v637_v49, 1 }
  0x31   : > { %3952 = vrot.lane.b32.xlu2 %v3951_v59, %s5949_s23  ;;  %v647_v59 = vld [vmem:[%s4605_s1 + $0x220] sm:$0xff] }
  0x32   : > { %v4031_v2 = vpack.i.bf16 %v647_v59, %v646_v58 }
  0x35   : > { %3957 = vrot.lane.b32.xlu0 %v3956_v62, %s4483_s24  ;;  %v837_v62 = vsel %vm696_vm0, %v835_v54, %v836_v55 }
  0x36   : > { %3962 = vrot.lane.b32.xlu1 %v3961_v0, %s4480_s22  ;;  %v613_v0 = vld [vmem:[%s4605_s1 + $0x80] sm:$0xff]  ;;  %v4036_v3 = vpack.i.bf16 %v840_v63, %v837_v62  ;;  %s4488_s1 = smov 124  }
  0x37   : > { %v916_v4 = vrot.slane %v613_v0, 1  ;;  %v4041_v10 = vpack.i.bf16 %v613_v0, %v4703_v36 }
  0x39   : > { %3967 = vrot.lane.b32.xlu2 %v3966_v7, %s4484_s25  ;;  %v917_v7 = vrot.slane %v614_v1, 1 }
  0x3b   : > { %v918_v11 = vsel %vm696_vm0, %v916_v4, %v917_v7 }
  0x3d   : > { %3972 = vrot.lane.b32.xlu0 %v3971_v12, %s5947_s26  ;;  %v4046_v12 = vpack.i.bf16 %v623_v9, %v622_v45 }
  0x3e   : > { %3977 = vrot.lane.b32.xlu1 %v3976_v13, %s4478_s20  ;;  %v4051_v13 = vpack.i.bf16 %v918_v11, %v720_v47 }
  0x41   : > { %3982 = vrot.lane.b32.xlu2 %v3981_v20, %s4481_s2  ;;  %v1053_v20 = vsel %vm1051_vm1, 4294967295, %v4486_v19  ;;  %vm5943_vm1 = vcmask 293888  }
  0x42   : > { %v1054_v21 = vsel %vm1052_vm2, %v1053_v20, 0 }
  0x43   : > { %v1056_v22 = vand.u32 %v3609_v16, %v1054_v21 }
  0x45   : > { %3987 = vrot.lane.b32.xlu0 %v3986_v27, %s4479_s21  ;;  %1064 = vmatpush.bf16.msra.mxu0 %v1056_v22 }
  0x46   : > { %3992 = vrot.lane.b32.xlu1 %v3991_v28, %s5949_s23 }
  0x49   : > { %3997 = vrot.lane.b32.xlu2 %v3996_v33, %s4483_s24  ;;  %1065 = vmatpush.bf16.msra.mxu0 %v3830_v23 }
  0x4d   : > { %4002 = vrot.lane.b32.xlu0 %v4001_v39, %s4480_s22 }
  0x4e   : > { %4007 = vrot.lane.b32.xlu1 %v4006_v41, %s4484_s25 }
  0x51   : > { %4012 = vrot.lane.b32.xlu2 %v4011_v46, %s5947_s26 }
  0x55   : > { %4017 = vrot.lane.b32.xlu0 %v4016_v52, %s4478_s20  ;;  %s5970_s20 = smov 24  }
  0x56   : > { %4022 = vrot.lane.b32.xlu1 %v4021_v53, %s4481_s2  ;;  %s5945_s2 = smov 32  }
  0x59   : > { %4027 = vrot.lane.b32.xlu2 %v4026_v61, %s4479_s21  ;;  %s5953_s21 = smov 8  }
  0x5d   : > { %4032 = vrot.lane.b32.xlu0 %v4031_v2, %s5949_s23 }
  0x5e   : > { %4037 = vrot.lane.b32.xlu1 %v4036_v3, %s4483_s24  ;;  %s5955_s24 = smov 96  }
  0x61   : > { %4042 = vrot.lane.b32.xlu2 %v4041_v10, %s4480_s22  ;;  %s3828_s22 = sshll.u32 %s5985_s28, 7 }
  0x65   : > { %4047 = vrot.lane.b32.xlu0 %v4046_v12, %s4484_s25  ;;  %s5964_s25 = sld [smem:[#allocation3_spill]] }
  0x66   : > { %4052 = vrot.lane.b32.xlu1 %v4051_v13, %s5947_s26 }
  0x6b   : > { %s4768_s29 = scalar_lea.vmem %s5964_s25, %s3828_s22  ;;  %s5957_s22 = smov 64  }
  0x6c   : > { %v1088_v7 = vld [vmem:[%s4768_s29 + $0x8] sm:$0xff]  ;;  %s5967_s25 = smov 8  }
  0x6d   : > { %1129 = vrot.lane.b32.xlu0 %v1088_v7, %s5951_s30 }
  0x73   : > { %v3913_v18 = vpop.permute.xlu2 %3912 }
  0x74   : > { %v3915_v52 = vunpack.i.h.bf16 %v3913_v18  ;;  %v3914_v53 = vunpack.i.l.bf16 %v3913_v18 }
  0x7b   : > { %v3928_v24 = vpop.permute.xlu2 %3927 }
  0x7c   : > { %v3930_v46 = vunpack.i.h.bf16 %v3928_v24  ;;  %v3929_v47 = vunpack.i.l.bf16 %v3928_v24 }
  0x83   : > { %v4748_v26 = vpop.permute.xlu2 %3937 }
  0x84   : > { %v3940_v9 = vunpack.i.h.bf16 %v4748_v26  ;;  %v3939_v10 = vunpack.i.l.bf16 %v4748_v26 }
  0x86   : > { %v947_v15 = vsel %vm943_vm3, %v4644_v35, %v3940_v9  ;;  %v946_v16 = vsel %vm943_vm3, %v4627_v17, %v3939_v10 }
  0x87   : > { %v3898_v25 = vpop.permute.xlu0 %3897 }
  0x88   : > { %v3903_v27 = vpop.permute.xlu1 %3902  ;;  %v3900_v28 = vunpack.i.h.bf16 %v3898_v25  ;;  %v3899_v29 = vunpack.i.l.bf16 %v3898_v25 }
  0x89   : > { %v3905_v32 = vunpack.i.h.bf16 %v3903_v27  ;;  %v3904_v33 = vunpack.i.l.bf16 %v3903_v27 }
  0x8a   : > { %v944_v39 = vsel %vm943_vm3, %v4612_v5, %v3899_v29  ;;  %v945_v40 = vsel %vm943_vm3, %v4616_v8, %v3900_v28 }
  0x8b   : > { %v3953_v43 = vpop.permute.xlu2 %3952 }
  0x8c   : > { %v3955_v23 = vunpack.i.h.bf16 %v3953_v43  ;;  %v3954_v24 = vunpack.i.l.bf16 %v3953_v43 }
  0x8f   : > { %v3918_v30 = vpop.permute.xlu0 %3917 }
  0x90   : > { %v3920_v34 = vunpack.i.h.bf16 %v3918_v30  ;;  %v3919_v37 = vunpack.i.l.bf16 %v3918_v30  ;;  %v3908_v38 = vpop.permute.xlu1 %3907 }
  0x91   : > { %v3910_v41 = vunpack.i.h.bf16 %v3908_v38  ;;  %v3909_v42 = vunpack.i.l.bf16 %v3908_v38  ;;  %v1089_v38 = vld [vmem:[%s4768_s29 + $0x10] sm:$0xff] }
  0x92   : > { %v954_v44 = vsel %vm952_vm4, %v945_v40, %v3920_v34  ;;  %v953_v45 = vsel %vm952_vm4, %v944_v39, %v3919_v37  ;;  %v1087_v39 = vld [vmem:[%s4768_s29] sm:$0xff]  ;;  %1131 = vrot.lane.b32.xlu1 %v1089_v38, %s5951_s30 }
  0x93   : > { %v962_v48 = vsel %vm961_vm5, %v953_v45, %v3904_v33  ;;  %v963_v49 = vsel %vm961_vm5, %v954_v44, %v3905_v32  ;;  %v3968_v3 = vpop.permute.xlu2 %3967  ;;  %1127 = vrot.lane.b32.xlu2 %v1087_v39, %s5951_s30 }
  0x94   : > { %v971_v5 = vsel %vm970_vm6, %v962_v48, %v3909_v42  ;;  %v972_v50 = vsel %vm970_vm6, %v963_v49, %v3910_v41  ;;  %v3970_v40 = vunpack.i.h.bf16 %v3968_v3  ;;  %v3969_v41 = vunpack.i.l.bf16 %v3968_v3 }
  0x95   : > { %v980_v8 = vsel %vm979_vm7, %v971_v5, %v3929_v47  ;;  %v981_v51 = vsel %vm979_vm7, %v972_v50, %v3930_v46 }
  0x96   : > { %v989_v58 = vsel %vm988_vm8, %v980_v8, %v3914_v53  ;;  %v990_v59 = vsel %vm988_vm8, %v981_v51, %v3915_v52 }
  0x97   : > { %v3923_v54 = vpop.permute.xlu0 %3922 }
  0x98   : > { %v3925_v55 = vunpack.i.h.bf16 %v3923_v54  ;;  %v3924_v56 = vunpack.i.l.bf16 %v3923_v54  ;;  %v3933_v57 = vpop.permute.xlu1 %3932 }
  0x99   : > { %v3935_v61 = vunpack.i.h.bf16 %v3933_v57  ;;  %v3934_v62 = vunpack.i.l.bf16 %v3933_v57 }
  0x9a   : > { %v998_v63 = vsel %vm997_vm9, %v989_v58, %v3924_v56  ;;  %v999_v0 = vsel %vm997_vm9, %v990_v59, %v3925_v55 }
  0x9b   : > { %v1007_v1 = vsel %vm5944_vm10, %v998_v63, %v3934_v62  ;;  %v1008_v2 = vsel %vm5944_vm10, %v999_v0, %v3935_v61  ;;  %v3983_v22 = vpop.permute.xlu2 %3982 }
  0x9c   : > { %v1015_v4 = vpack.c.bf16 %v1008_v2, %v1007_v1  ;;  %v3985_v54 = vunpack.i.h.bf16 %v3983_v22  ;;  %v3984_v55 = vunpack.i.l.bf16 %v3983_v22 }
  0x9e   : > { %3610 = vmatmul.msk.bf16.vlgmr.msra.gmra.mxu0 %vm1038_vm11, %v1015_v4 }
  0x9f   : > { %v3943_v11 = vpop.permute.xlu0 %3942 }
  0xa0   : > { %v3945_v12 = vunpack.i.h.bf16 %v3943_v11  ;;  %v3944_v13 = vunpack.i.l.bf16 %v3943_v11  ;;  %v3948_v14 = vpop.permute.xlu1 %3947  ;;  %v1091_v11 = vld [vmem:[%s4768_s29 + $0x20] sm:$0xff] }
  0xa1   : > { %v3950_v18 = vunpack.i.h.bf16 %v3948_v14  ;;  %v3949_v19 = vunpack.i.l.bf16 %v3948_v14  ;;  %1135 = vrot.lane.b32.xlu0 %v1091_v11, %s5951_s30 }
  0xa2   : > { %v956_v20 = vsel %vm952_vm4, %v947_v15, %v3945_v12  ;;  %v955_v21 = vsel %vm952_vm4, %v946_v16, %v3944_v13  ;;  %v1092_v12 = vld [vmem:[%s4768_s29 + $0x28] sm:$0xff]  ;;  %v1090_v13 = vld [vmem:[%s4768_s29 + $0x18] sm:$0xff] }
  0xa3   : > { %v964_v25 = vsel %vm961_vm5, %v955_v21, %v3949_v19  ;;  %v965_v26 = vsel %vm961_vm5, %v956_v20, %v3950_v18  ;;  %v3998_v45 = vpop.permute.xlu2 %3997  ;;  %1137 = vrot.lane.b32.xlu1 %v1092_v12, %s5951_s30  ;;  %1133 = vrot.lane.b32.xlu2 %v1090_v13, %s5951_s30 }
  0xa4   : > { %v973_v17 = vsel %vm970_vm6, %v964_v25, %v3954_v24  ;;  %v974_v30 = vsel %vm970_vm6, %v965_v26, %v3955_v23  ;;  %v4000_v7 = vunpack.i.h.bf16 %v3998_v45 }
  0xa7   : > { %v3958_v27 = vpop.permute.xlu0 %3957 }
  0xa8   : > { %v3960_v35 = vunpack.i.h.bf16 %v3958_v27  ;;  %v3959_v28 = vunpack.i.l.bf16 %v3958_v27  ;;  %v3963_v29 = vpop.permute.xlu1 %3962 }
  0xa9   : > { %v3965_v32 = vunpack.i.h.bf16 %v3963_v29  ;;  %v3964_v33 = vunpack.i.l.bf16 %v3963_v29 }
  0xaa   : > { %v982_v34 = vsel %vm979_vm7, %v973_v17, %v3959_v28  ;;  %v983_v37 = vsel %vm979_vm7, %v974_v30, %v3960_v35 }
  0xab   : > { %v991_v42 = vsel %vm988_vm8, %v982_v34, %v3964_v33  ;;  %v992_v43 = vsel %vm988_vm8, %v983_v37, %v3965_v32  ;;  %v4013_v63 = vpop.permute.xlu2 %4012  ;;  %v1093_v32 = vld [vmem:[%s4768_s29 + $0x30] sm:$0xff] }
  0xac   : > { %v1000_v49 = vsel %vm997_vm9, %v991_v42, %v3969_v41  ;;  %v1001_v5 = vsel %vm997_vm9, %v992_v43, %v3970_v40  ;;  %v4015_v19 = vunpack.i.h.bf16 %v4013_v63  ;;  %v4014_v20 = vunpack.i.l.bf16 %v4013_v63  ;;  %1139 = vrot.lane.b32.xlu2 %v1093_v32, %s5951_s30 }
  0xaf   : > { %v3973_v44 = vpop.permute.xlu0 %3972 }
  0xb0   : > { %v3975_v46 = vunpack.i.h.bf16 %v3973_v44  ;;  %v3974_v47 = vunpack.i.l.bf16 %v3973_v44  ;;  %v3978_v48 = vpop.permute.xlu1 %3977 }
  0xb1   : > { %v3980_v51 = vunpack.i.h.bf16 %v3978_v48  ;;  %v3979_v52 = vunpack.i.l.bf16 %v3978_v48 }
  0xb2   : > { %v1009_v50 = vsel %vm5944_vm10, %v1000_v49, %v3974_v47  ;;  %v1010_v8 = vsel %vm5944_vm10, %v1001_v5, %v3975_v46 }
  0xb3   : > { %v1016_v53 = vpack.c.bf16 %v1010_v8, %v1009_v50  ;;  %v949_v56 = vsel %vm943_vm3, %v4678_v6, %v3980_v51  ;;  %v948_v57 = vsel %vm943_vm3, %v4665_v60, %v3979_v52  ;;  %v3999_v60 = vunpack.i.l.bf16 %v3998_v45  ;;  %v4028_v28 = vpop.permute.xlu2 %4027 }
  0xb4   : > { %v957_v0 = vsel %vm952_vm4, %v948_v57, %v3984_v55  ;;  %v958_v1 = vsel %vm952_vm4, %v949_v56, %v3985_v54  ;;  %v4030_v39 = vunpack.i.h.bf16 %v4028_v28  ;;  %v4029_v40 = vunpack.i.l.bf16 %v4028_v28 }
  0xb5   : > { %3611 = vmatmul.msk.bf16.gmra.mxu0 %vm1038_vm11, %v1016_v53 }
  0xb7   : > { %v3988_v58 = vpop.permute.xlu0 %3987 }
  0xb8   : > { %v3990_v59 = vunpack.i.h.bf16 %v3988_v58  ;;  %v3989_v61 = vunpack.i.l.bf16 %v3988_v58  ;;  %v3993_v62 = vpop.permute.xlu1 %3992 }
  0xb9   : > { %v3995_v2 = vunpack.i.h.bf16 %v3993_v62  ;;  %v3994_v3 = vunpack.i.l.bf16 %v3993_v62 }
  0xba   : > { %v967_v4 = vsel %vm961_vm5, %v958_v1, %v3990_v59  ;;  %v966_v6 = vsel %vm961_vm5, %v957_v0, %v3989_v61 }
  0xbb   : > { %v975_v9 = vsel %vm970_vm6, %v966_v6, %v3994_v3  ;;  %v976_v10 = vsel %vm970_vm6, %v967_v4, %v3995_v2  ;;  %v4043_v49 = vpop.permute.xlu2 %4042 }
  0xbc   : > { %v984_v21 = vsel %vm979_vm7, %v975_v9, %v3999_v60  ;;  %v985_v22 = vsel %vm979_vm7, %v976_v10, %v4000_v7  ;;  %v4045_v52 = vunpack.i.h.bf16 %v4043_v49  ;;  %v4044_v53 = vunpack.i.l.bf16 %v4043_v49  ;;  %v4851_v9 = vld [vmem:[%s5926_s3] ss:$0 sm:$0xff] }
  0xbf   : > { %v4003_v14 = vpop.permute.xlu0 %4002 }
  0xc0   : > { %v4005_v15 = vunpack.i.h.bf16 %v4003_v14  ;;  %v4004_v16 = vunpack.i.l.bf16 %v4003_v14  ;;  %v4008_v18 = vpop.permute.xlu1 %4007 }
  0xc1   : > { %v4010_v23 = vunpack.i.h.bf16 %v4008_v18  ;;  %v4009_v24 = vunpack.i.l.bf16 %v4008_v18 }
  0xc2   : > { %v993_v25 = vsel %vm988_vm8, %v984_v21, %v4004_v16  ;;  %v994_v26 = vsel %vm988_vm8, %v985_v22, %v4005_v15 }
  0xc3   : > { %v1002_v27 = vsel %vm997_vm9, %v993_v25, %v4009_v24  ;;  %v1003_v35 = vsel %vm997_vm9, %v994_v26, %v4010_v23  ;;  %v1094_v24 = vld [vmem:[%s4768_s29 + $0x38] sm:$0xff] }
  0xc4   : > { %v1011_v29 = vsel %vm5944_vm10, %v1002_v27, %v4014_v20  ;;  %v1012_v17 = vsel %vm5944_vm10, %v1003_v35, %v4015_v19 }
  0xc5   : > { %v1017_v30 = vpack.c.bf16 %v1012_v17, %v1011_v29 }
  0xc7   : > { %v4018_v33 = vpop.permute.xlu0 %4017  ;;  %3612 = vmatmul.msk.bf16.gmra.mxu0 %vm1038_vm11, %v1017_v30 }
  0xc8   : > { %v4020_v34 = vunpack.i.h.bf16 %v4018_v33  ;;  %v4019_v37 = vunpack.i.l.bf16 %v4018_v33  ;;  %v4023_v38 = vpop.permute.xlu1 %4022 }
  0xc9   : > { %v4025_v41 = vunpack.i.h.bf16 %v4023_v38  ;;  %v4024_v42 = vunpack.i.l.bf16 %v4023_v38 }
  0xca   : > { %v951_v43 = vsel %vm943_vm3, %v4703_v36, %v4020_v34  ;;  %v950_v44 = vsel %vm943_vm3, %v4698_v31, %v4019_v37 }
  0xcb   : > { %v959_v45 = vsel %vm952_vm4, %v950_v44, %v4024_v42  ;;  %v960_v46 = vsel %vm952_vm4, %v951_v43, %v4025_v41 }
  0xcc   : > { %v968_v47 = vsel %vm961_vm5, %v959_v45, %v4029_v40  ;;  %v969_v48 = vsel %vm961_vm5, %v960_v46, %v4030_v39 }
  0xcf   : > { %v4033_v5 = vpop.permute.xlu0 %4032 }
  0xd0   : > { %v4035_v50 = vunpack.i.h.bf16 %v4033_v5  ;;  %v4034_v8 = vunpack.i.l.bf16 %v4033_v5  ;;  %v4038_v51 = vpop.permute.xlu1 %4037 }
  0xd1   : > { %v4040_v54 = vunpack.i.h.bf16 %v4038_v51  ;;  %v4039_v36 = vunpack.i.l.bf16 %v4038_v51 }
  0xd2   : > { %v977_v55 = vsel %vm970_vm6, %v968_v47, %v4034_v8  ;;  %v978_v31 = vsel %vm970_vm6, %v969_v48, %v4035_v50 }
  0xd3   : > { %v986_v56 = vsel %vm979_vm7, %v977_v55, %v4039_v36  ;;  %v987_v57 = vsel %vm979_vm7, %v978_v31, %v4040_v54 }
  0xd4   : > { %v995_v58 = vsel %vm988_vm8, %v986_v56, %v4044_v53  ;;  %v996_v59 = vsel %vm988_vm8, %v987_v57, %v4045_v52 }
  0xd7   : > { %v4048_v61 = vpop.permute.xlu0 %4047 }
  0xd8   : > { %v4050_v62 = vunpack.i.h.bf16 %v4048_v61  ;;  %v4049_v63 = vunpack.i.l.bf16 %v4048_v61  ;;  %v4053_v0 = vpop.permute.xlu1 %4052 }
  0xd9   : > { %v4055_v1 = vunpack.i.h.bf16 %v4053_v0  ;;  %v4054_v2 = vunpack.i.l.bf16 %v4053_v0 }
  0xda   : > { %v1004_v3 = vsel %vm997_vm9, %v995_v58, %v4049_v63  ;;  %v1005_v4 = vsel %vm997_vm9, %v996_v59, %v4050_v62 }
  0xdb   : > { %v1013_v6 = vsel %vm5944_vm10, %v1004_v3, %v4054_v2  ;;  %v1014_v7 = vsel %vm5944_vm10, %v1005_v4, %v4055_v1 }
  0xdc   : > { %v1018_v60 = vpack.c.bf16 %v1014_v7, %v1013_v6 }
  0xde   : > { %3613 = vmatmul.msk.bf16.gmra.mxu0 %vm1038_vm11, %v1018_v60 }
  0xdf   : > { %v1130_v22 = vpop.permute.xlu0 %1129 }
  0xed   : > { %v1128_v18 = vpop.permute.xlu2 %1127 }
  0xfd   : > { %v1134_v40 = vpop.permute.xlu2 %1133 }
 0x104   : > { %v1132_v32 = vpop.permute.xlu1 %1131 }
 0x106   : > { %v1140_v31 = vpop.permute.xlu2 %1139 }
 0x113   : > { %v1136_v48 = vpop.permute.xlu0 %1135 }
 0x115   : > { %v1138_v8 = vpop.permute.xlu1 %1137 }
 0x11b   : > { %v1067_v10 = vpop.f32.mrf.mxu0 }
 0x11c   : > { %v4854_v11 = vadd.f32 %v4851_v9, %v1067_v10 }
 0x11e   : > { %v1095_v12 = vmul.f32 0.5, %v4854_v11 }
 0x120   : > { %v1103_v13 = vmul.f32 1.442695, %v1095_v12 }
 0x122   : > { %4358 = vpow2.f32 %v1103_v13 }
 0x123   : > { %v1069_v14 = vpop.f32.mrf.mxu0 }
 0x124   : > { %v4858_v15 = vadd.f32 %v4851_v9, %v1069_v14 }
 0x126   : > { %v1096_v16 = vmul.f32 0.5, %v4858_v15 }
 0x128   : > { %v4359_v19 = vpop.eup %4358  ;;  %v1105_v20 = vmul.f32 1.442695, %v1096_v16 }
 0x129   : > { %v1151_v21 = vmul.f32 %v4359_v19, %v1128_v18 }
 0x12a   : > { %4360 = vpow2.f32 %v1105_v20 }
 0x12b   : > { %1167 = vrot.lane.b32.xlu0 %v1151_v21, %s4488_s1 }
 0x130   : > { %v4361_v23 = vpop.eup %4360 }
 0x131   : > { %v1152_v25 = vmul.f32 %v4361_v23, %v1130_v22 }
 0x132   : > { %v1072_v26 = vpop.f32.mrf.mxu0 }
 0x133   : > { %v1073_v27 = vadd.f32 %v4851_v9, %v1072_v26  ;;  %1169 = vrot.lane.b32.xlu1 %v1152_v25, %s4488_s1  ;;  %1141 = vrot.lane.b32.xlu0 %v1094_v24, %s5951_s30 }
 0x135   : > { %v1097_v35 = vmul.f32 0.5, %v1073_v27 }
 0x137   : > { %v1107_v28 = vmul.f32 1.442695, %v1097_v35 }
 0x139   : > { %4362 = vpow2.f32 %v1107_v28 }
 0x13a   : > { %v1074_v29 = vpop.f32.mrf.mxu0 }
 0x13b   : > { %v4867_v17 = vadd.f32 %v4851_v9, %v1074_v29 }
 0x13d   : > { %v1098_v30 = vmul.f32 0.5, %v4867_v17 }
 0x13f   : > { %v4363_v33 = vpop.eup %4362  ;;  %v1109_v34 = vmul.f32 1.442695, %v1098_v30 }
 0x140   : > { %v1153_v37 = vmul.f32 %v4363_v33, %v1132_v32 }
 0x141   : > { %4364 = vpow2.f32 %v1109_v34 }
 0x142   : > { %1171 = vrot.lane.b32.xlu2 %v1153_v37, %s4488_s1 }
 0x144   : > { %v1077_v38 = vpop.f32.mrf.mxu0 }
 0x145   : > { %v4872_v39 = vadd.f32 %v4851_v9, %v1077_v38 }
 0x147   : > { %v4365_v41 = vpop.eup %4364  ;;  %v1099_v42 = vmul.f32 0.5, %v4872_v39 }
 0x148   : > { %v1154_v43 = vmul.f32 %v4365_v41, %v1134_v40 }
 0x149   : > { %v1111_v44 = vmul.f32 1.442695, %v1099_v42 }
 0x14a   : > { %1173 = vrot.lane.b32.xlu1 %v1154_v43, %s4488_s1 }
 0x14b   : > { %4366 = vpow2.f32 %v1111_v44 }
 0x14c   : > { %v1079_v45 = vpop.f32.mrf.mxu0 }
 0x14d   : > { %v4877_v46 = vadd.f32 %v4851_v9, %v1079_v45 }
 0x14f   : > { %v1100_v47 = vmul.f32 0.5, %v4877_v46 }
 0x151   : > { %v4367_v49 = vpop.eup %4366  ;;  %v1113_v5 = vmul.f32 1.442695, %v1100_v47 }
 0x152   : > { %v1155_v50 = vmul.f32 %v4367_v49, %v1136_v48 }
 0x153   : > { %4368 = vpow2.f32 %v1113_v5 }
 0x154   : > { %1175 = vrot.lane.b32.xlu2 %v1155_v50, %s4488_s1 }
 0x159   : > { %v4369_v51 = vpop.eup %4368 }
 0x15a   : > { %v1156_v52 = vmul.f32 %v4369_v51, %v1138_v8 }
 0x15b   : > { %v1082_v53 = vpop.f32.mrf.mxu0 }
 0x15c   : > { %v4882_v54 = vadd.f32 %v4851_v9, %v1082_v53  ;;  %1177 = vrot.lane.b32.xlu0 %v1156_v52, %s4488_s1 }
 0x15e   : > { %v1101_v36 = vmul.f32 0.5, %v4882_v54 }
 0x160   : > { %v1115_v55 = vmul.f32 1.442695, %v1101_v36 }
 0x162   : > { %4370 = vpow2.f32 %v1115_v55 }
 0x163   : > { %v1084_v58 = vpop.f32.mrf.mxu0 }
 0x164   : > { %v4888_v59 = vadd.f32 %v4851_v9, %v1084_v58 }
 0x166   : > { %v1102_v61 = vmul.f32 0.5, %v4888_v59 }
 0x168   : > { %v4371_v56 = vpop.eup %4370  ;;  %v1117_v62 = vmul.f32 1.442695, %v1102_v61 }
 0x169   : > { %v1157_v57 = vmul.f32 %v4371_v56, %v1140_v31 }
 0x16a   : > { %4372 = vpow2.f32 %v1117_v62 }
 0x16b   : > { %1179 = vrot.lane.b32.xlu1 %v1157_v57, %s4488_s1 }
 0x170   : > { %v4373_v4 = vpop.eup %4372 }
 0x19c   : > { %v1172_v2 = vpop.permute.xlu2 %1171 }
 0x19d   : > { %v1168_v63 = vpop.permute.xlu0 %1167  ;;  %v1193_v60 = vadd.f32 %v1172_v2, %v1073_v27 }
 0x19e   : > { %v1191_v0 = vadd.f32 %v1168_v63, %v4854_v11 }
 0x19f   : > { %v4903_v14 = vmul.f32 0.18215, %v1193_v60 }
 0x1a0   : > { %v4892_v1 = vmul.f32 0.18215, %v1191_v0 }
 0x1a1   : > { %v1219_v27 = vrot.slane %v4903_v14, 7 }
 0x1a2   : > { %v1217_v3 = vrot.slane %v4892_v1, 7 }
 0x1a3   : > { %v4920_v37 = vsel %vm1234_vm12, 0.0, %v1219_v27  ;;  %v1247_v38 = vsel %vm1234_vm12, %v1219_v27, 0.0 }
 0x1a4   : > { %v4897_v12 = vsel %vm1234_vm12, 0.0, %v1217_v3  ;;  %v1245_v13 = vsel %vm1234_vm12, %v1217_v3, 0.0  ;;  %v1334_v41 = vrot.slane %v4920_v37, 2  ;;  %v1335_v42 = vrot.slane %v1247_v38, 2 }
 0x1a5   : > { %v1170_v6 = vpop.permute.xlu1 %1169  ;;  %v1142_v7 = vpop.permute.xlu0 %1141  ;;  %v1275_v18 = vrot.slane %v1245_v13, 1  ;;  %v1329_v19 = vrot.slane %v1245_v13, 2  ;;  %v1274_v20 = vrot.slane %v4897_v12, 1  ;;  %v1281_v51 = vrot.slane %v1247_v38, 1 }
 0x1a6   : > { %v1192_v9 = vadd.f32 %v1170_v6, %v4858_v15  ;;  %v1158_v10 = vmul.f32 %v4373_v4, %v1142_v7  ;;  %v1328_v15 = vrot.slane %v4897_v12, 2  ;;  %v1336_v44 = vsel %vm1052_vm2, %v1334_v41, %v1335_v42 }
 0x1a7   : > { %v1276_v35 = vsel %vm696_vm0, %v1274_v20, %v1275_v18  ;;  %v1280_v52 = vrot.slane %v4920_v37, 1 }
 0x1a8   : > { %v4900_v11 = vmul.f32 0.18215, %v1192_v9  ;;  %1181 = vrot.lane.b32.xlu2 %v1158_v10, %s4488_s1  ;;  %v1330_v29 = vsel %vm1052_vm2, %v1328_v15, %v1329_v19  ;;  %s5983_s1 = smov 32  }
 0x1a9   : > { %v1282_v58 = vsel %vm696_vm0, %v1280_v52, %v1281_v51 }
 0x1aa   : > { %v1218_v16 = vrot.slane %v4900_v11, 7 }
 0x1ac   : > { %v4909_v21 = vsel %vm1234_vm12, 0.0, %v1218_v16  ;;  %v1246_v22 = vsel %vm1234_vm12, %v1218_v16, 0.0 }
 0x1ad   : > { %v1278_v23 = vrot.slane %v1246_v22, 1  ;;  %v1332_v24 = vrot.slane %v1246_v22, 2  ;;  %v1277_v25 = vrot.slane %v4909_v21, 1  ;;  %v1331_v26 = vrot.slane %v4909_v21, 2 }
 0x1ae   : > { %v1176_v32 = vpop.permute.xlu2 %1175 }
 0x1af   : > { %v1279_v28 = vsel %vm696_vm0, %v1277_v25, %v1278_v23  ;;  %v1333_v30 = vsel %vm1052_vm2, %v1331_v26, %v1332_v24  ;;  %v1195_v40 = vadd.f32 %v1176_v32, %v4872_v39 }
 0x1b0   : > { %v4056_v33 = vpack.i.bf16 %v1279_v28, %v1276_v35  ;;  %v4066_v34 = vpack.i.bf16 %v1333_v30, %v1330_v29 }
 0x1b1   : > { %v4927_v43 = vmul.f32 0.18215, %v1195_v40 }
 0x1b2   : > { %4057 = vrot.lane.b32.xlu0 %v4056_v33, %s5951_s30  ;;  %4067 = vrot.lane.b32.xlu2 %v4066_v34, %s5953_s21 }
 0x1b3   : > { %v1221_v45 = vrot.slane %v4927_v43, 7 }
 0x1b5   : > { %v4934_v49 = vsel %vm1234_vm12, 0.0, %v1221_v45  ;;  %v1249_v5 = vsel %vm1234_vm12, %v1221_v45, 0.0 }
 0x1b6   : > { %v1341_v8 = vrot.slane %v1249_v5, 2  ;;  %v1340_v53 = vrot.slane %v4934_v49, 2  ;;  %v1287_v60 = vrot.slane %v1249_v5, 1  ;;  %v1286_v9 = vrot.slane %v4934_v49, 1 }
 0x1b8   : > { %v1342_v63 = vsel %vm1052_vm2, %v1340_v53, %v1341_v8  ;;  %v1288_v19 = vsel %vm696_vm0, %v1286_v9, %v1287_v60 }
 0x1ba   : > { %1358 = vrot.lane.b32.xlu0 %v1336_v44, %s5953_s21 }
 0x1bc   : > { %v1174_v47 = vpop.permute.xlu1 %1173 }
 0x1bd   : > { %v1194_v48 = vadd.f32 %v1174_v47, %v4867_v17 }
 0x1bf   : > { %v4937_v39 = vmul.f32 0.18215, %v1194_v48 }
 0x1c1   : > { %v1220_v50 = vrot.slane %v4937_v39, 7 }
 0x1c3   : > { %v4943_v36 = vsel %vm1234_vm12, 0.0, %v1220_v50  ;;  %v1248_v17 = vsel %vm1234_vm12, %v1220_v50, 0.0 }
 0x1c4   : > { %v1284_v55 = vrot.slane %v1248_v17, 1  ;;  %v1338_v31 = vrot.slane %v1248_v17, 2  ;;  %v1283_v56 = vrot.slane %v4943_v36, 1  ;;  %v1337_v57 = vrot.slane %v4943_v36, 2 }
 0x1c6   : > { %v1285_v61 = vsel %vm696_vm0, %v1283_v56, %v1284_v55  ;;  %v1339_v62 = vsel %vm1052_vm2, %v1337_v57, %v1338_v31 }
 0x1c7   : > { %v4061_v0 = vpack.i.bf16 %v1285_v61, %v1282_v58  ;;  %v4076_v2 = vpack.i.bf16 %v1342_v63, %v1339_v62 }
 0x1c9   : > { %4062 = vrot.lane.b32.xlu1 %v4061_v0, %s5951_s30  ;;  %4077 = vrot.lane.b32.xlu2 %v4076_v2, %s5953_s21 }
 0x1ce   : > { %v1178_v3 = vpop.permute.xlu0 %1177 }
 0x1cf   : > { %v1196_v4 = vadd.f32 %v1178_v3, %v4877_v46  ;;  %v4490_v46 = vmov 0.0  }
 0x1d0   : > { %v1216_v15 = vrot.slane %v4490_v46, 7 }
 0x1d1   : > { %v4955_v6 = vmul.f32 0.18215, %v1196_v4 }
 0x1d2   : > { %v4968_v23 = vsel %vm1234_vm12, 0.0, %v1216_v15  ;;  %v1244_v24 = vsel %vm1234_vm12, %v1216_v15, 0.0 }
 0x1d3   : > { %v1222_v7 = vrot.slane %v4955_v6, 7  ;;  %v1271_v27 = vrot.slane %v4968_v23, 1  ;;  %v1272_v35 = vrot.slane %v1244_v24, 1  ;;  %v1326_v40 = vrot.slane %v1244_v24, 2 }
 0x1d5   : > { %v4960_v10 = vsel %vm1234_vm12, 0.0, %v1222_v7  ;;  %v1250_v13 = vsel %vm1234_vm12, %v1222_v7, 0.0  ;;  %v4977_v32 = vsel %vm696_vm0, %v1271_v27, %v1272_v35 }
 0x1d6   : > { %v1290_v16 = vrot.slane %v1250_v13, 1  ;;  %v1289_v18 = vrot.slane %v4960_v10, 1  ;;  %v1344_v30 = vrot.slane %v1250_v13, 2  ;;  %v1343_v33 = vrot.slane %v4960_v10, 2 }
 0x1d8   : > { %v1291_v20 = vsel %vm696_vm0, %v1289_v18, %v1290_v16  ;;  %v1345_v5 = vsel %vm1052_vm2, %v1343_v33, %v1344_v30 }
 0x1d9   : > { %v4071_v22 = vpack.i.bf16 %v1291_v20, %v1288_v19 }
 0x1db   : > { %4072 = vrot.lane.b32.xlu1 %v4071_v22, %s5951_s30 }
 0x1dd   : > { %v1180_v25 = vpop.permute.xlu1 %1179 }
 0x1de   : > { %v1197_v26 = vadd.f32 %v1180_v25, %v4882_v54  ;;  %v1325_v54 = vrot.slane %v4968_v23, 2 }
 0x1e0   : > { %v4973_v28 = vmul.f32 0.18215, %v1197_v26  ;;  %v4988_v47 = vsel %vm1052_vm2, %v1325_v54, %v1326_v40 }
 0x1e1   : > { %1352 = vrot.lane.b32.xlu2 %v4988_v47, %s5953_s21 }
 0x1e2   : > { %v1223_v29 = vrot.slane %v4973_v28, 7 }
 0x1e4   : > { %v4981_v34 = vsel %vm1234_vm12, 0.0, %v1223_v29  ;;  %v1251_v38 = vsel %vm1234_vm12, %v1223_v29, 0.0 }
 0x1e5   : > { %v1293_v41 = vrot.slane %v1251_v38, 1  ;;  %v1347_v42 = vrot.slane %v1251_v38, 2  ;;  %v1292_v44 = vrot.slane %v4981_v34, 1  ;;  %v1346_v45 = vrot.slane %v4981_v34, 2 }
 0x1e7   : > { %v1294_v48 = vsel %vm696_vm0, %v1292_v44, %v1293_v41  ;;  %v1348_v50 = vsel %vm1052_vm2, %v1346_v45, %v1347_v42 }
 0x1e8   : > { %v4081_v8 = vpack.i.bf16 %v4977_v32, %v1294_v48  ;;  %v4086_v51 = vpack.i.bf16 %v1348_v50, %v1345_v5 }
 0x1ea   : > { %4082 = vrot.lane.b32.xlu0 %v4081_v8, %s5951_s30  ;;  %4087 = vrot.lane.b32.xlu1 %v4086_v51, %s5953_s21 }
 0x202   : > { %v1182_v52 = vpop.permute.xlu2 %1181 }
 0x203   : > { %v1198_v53 = vadd.f32 %v1182_v52, %v4888_v59 }
 0x205   : > { %v4999_v17 = vmul.f32 0.18215, %v1198_v53 }
 0x207   : > { %v1224_v55 = vrot.slane %v4999_v17, 7 }
 0x209   : > { %v5003_v31 = vsel %vm1234_vm12, 0.0, %v1224_v55  ;;  %v1252_v56 = vsel %vm1234_vm12, %v1224_v55, 0.0 }
 0x20a   : > { %v1295_v57 = vrot.slane %v5003_v31, 1  ;;  %v1296_v58 = vrot.slane %v1252_v56, 1  ;;  %v1349_v16 = vrot.slane %v5003_v31, 2  ;;  %v1350_v18 = vrot.slane %v1252_v56, 2  ;;  %v3833_v56 = vld [vmem:[%s5927_s4 + $0x8] sm:$0xff] }
 0x20c   : > { %v1297_v61 = vsel %vm696_vm0, %v1295_v57, %v1296_v58  ;;  %v4068_v62 = vpop.permute.xlu2 %4067  ;;  %v1351_v19 = vsel %vm1052_vm2, %v1349_v16, %v1350_v18  ;;  %v3832_v57 = vld [vmem:[%s5927_s4] sm:$0xff] }
 0x20d   : > { %1314 = vrot.lane.b32.xlu2 %v1297_v61, %s5951_s30  ;;  %v4070_v2 = vunpack.i.h.bf16 %v4068_v62  ;;  %v4069_v3 = vunpack.i.l.bf16 %v4068_v62 }
 0x223   : > { %v4078_v24 = vpop.permute.xlu2 %4077 }
 0x224   : > { %v4058_v63 = vpop.permute.xlu0 %4057  ;;  %v4079_v27 = vunpack.i.l.bf16 %v4078_v24  ;;  %v4080_v33 = vunpack.i.h.bf16 %v4078_v24 }
 0x225   : > { %v4060_v59 = vunpack.i.h.bf16 %v4058_v63  ;;  %v4059_v0 = vunpack.i.l.bf16 %v4058_v63 }
 0x227   : > { %v1382_v4 = vsel %vm1379_vm13, %v4909_v21, %v4060_v59  ;;  %v1381_v7 = vsel %vm1379_vm13, %v4897_v12, %v4059_v0 }
 0x228   : > { %v5014_v60 = vsel %vm1389_vm14, %v1381_v7, %v4069_v3  ;;  %v5017_v9 = vsel %vm1389_vm14, %v1382_v4, %v4070_v2 }
 0x229   : > { %v4091_v13 = vpack.i.bf16 %v5017_v9, %v5014_v60 }
 0x22b   : > { %4092 = vrot.lane.b32.xlu0 %v4091_v13, %s5949_s23 }
 0x22c   : > { %v1359_v20 = vpop.permute.xlu0 %1358 }
 0x233   : > { %1368 = vrot.lane.b32.xlu0 %v1351_v19, %s5953_s21 }
 0x23b   : > { %v4063_v21 = vpop.permute.xlu1 %4062  ;;  %v1353_v58 = vpop.permute.xlu2 %1352 }
 0x23c   : > { %v4064_v12 = vunpack.i.l.bf16 %v4063_v21  ;;  %v4065_v46 = vunpack.i.h.bf16 %v4063_v21 }
 0x23e   : > { %v1383_v15 = vsel %vm1379_vm13, %v4920_v37, %v4064_v12  ;;  %v1384_v26 = vsel %vm1379_vm13, %v4943_v36, %v4065_v46 }
 0x23f   : > { %v5028_v22 = vsel %vm1389_vm14, %v1383_v15, %v1359_v20  ;;  %v5036_v35 = vsel %vm1389_vm14, %v1384_v26, %v4079_v27 }
 0x240   : > { %v4096_v25 = vpack.i.bf16 %v5028_v22, %v5017_v9  ;;  %v4101_v29 = vpack.i.bf16 %v5036_v35, %v5028_v22 }
 0x242   : > { %4097 = vrot.lane.b32.xlu1 %v4096_v25, %s5947_s26 }
 0x24a   : > { %4102 = vrot.lane.b32.xlu1 %v4101_v29, %s5949_s23 }
 0x24d   : > { %v4073_v37 = vpop.permute.xlu1 %4072 }
 0x24e   : > { %v4074_v30 = vunpack.i.l.bf16 %v4073_v37  ;;  %v4075_v40 = vunpack.i.h.bf16 %v4073_v37 }
 0x250   : > { %v1385_v38 = vsel %vm1379_vm13, %v4934_v49, %v4074_v30  ;;  %v1386_v5 = vsel %vm1379_vm13, %v4960_v10, %v4075_v40  ;;  %v1480_v10 = vld [vmem:[%s5927_s4 + $0x10] sm:$0x3] }
 0x251   : > { %v5044_v54 = vsel %vm1389_vm14, %v1385_v38, %v4080_v33 }
 0x252   : > { %v4106_v36 = vpack.i.bf16 %v5044_v54, %v5036_v35 }
 0x254   : > { %4107 = vrot.lane.b32.xlu2 %v4106_v36, %s5947_s26 }
 0x25c   : > { %v4088_v41 = vpop.permute.xlu1 %4087  ;;  %v4083_v42 = vpop.permute.xlu0 %4082 }
 0x25d   : > { %v4090_v44 = vunpack.i.h.bf16 %v4088_v41  ;;  %v4089_v45 = vunpack.i.l.bf16 %v4088_v41  ;;  %v4084_v48 = vunpack.i.l.bf16 %v4083_v42  ;;  %v4085_v62 = vunpack.i.h.bf16 %v4083_v42 }
 0x25f   : > { %v1387_v49 = vsel %vm1379_vm13, %v4981_v34, %v4084_v48  ;;  %v5054_v50 = vsel %vm1389_vm14, %v1386_v5, %v4089_v45  ;;  %v1494_v34 = vunpack.c.l.b16 %v1480_v10  ;;  %v1380_v59 = vsel %vm1379_vm13, %v4968_v23, %v4085_v62 }
 0x260   : > { %v4111_v8 = vpack.i.bf16 %v5054_v50, %v5044_v54  ;;  %v5059_v51 = vsel %vm1389_vm14, %v1387_v49, %v4090_v44  ;;  %v5080_v3 = vsel %vm1389_vm14, %v1380_v59, %v1353_v58 }
 0x261   : > { %v4116_v52 = vpack.i.bf16 %v5059_v51, %v5054_v50  ;;  %v1497_v53 = vpack.c.b16 %v1494_v34, %v1494_v34 }
 0x262   : > { %4112 = vrot.lane.b32.xlu0 %v4111_v8, %s5949_s23 }
 0x263   : > { %4117 = vrot.lane.b32.xlu1 %v4116_v52, %s5947_s26  ;;  %v1515_v55 = vsel %vm1513_vm15, %v1497_v53, 0 }
 0x264   : > { %1522 = vmatpush.bf16.msra.mxu1 %v1515_v55 }
 0x267   : > { %v1315_v63 = vpop.permute.xlu2 %1314 }
 0x268   : > { %1523 = vmatpush.bf16.msra.mxu1 %v3833_v56  ;;  %v1388_v0 = vsel %vm1379_vm13, %v5003_v31, %v1315_v63  ;;  %v5124_v63 = vld [vmem:[%s5928_s5] ss:$0 sm:$0xff] }
 0x26c   : > { %1524 = vmatpush.bf16.msra.mxu1 %v3832_v57 }
 0x29d   : > { %v4093_v61 = vpop.permute.xlu0 %4092 }
 0x29e   : > { %v4095_v16 = vunpack.i.h.bf16 %v4093_v61  ;;  %v4094_v18 = vunpack.i.l.bf16 %v4093_v61 }
 0x2a0   : > { %v1457_v31 = vsel %vm970_vm6, %v5014_v60, %v4095_v16  ;;  %v1456_v20 = vsel %vm970_vm6, %v5080_v3, %v4094_v18 }
 0x2a5   : > { %v1369_v2 = vpop.permute.xlu0 %1368 }
 0x2a6   : > { %v1398_v4 = vsel %vm1389_vm14, %v1388_v0, %v1369_v2  ;;  %v3835_v0 = vld [vmem:[%s5929_s6 + $0x8] sm:$0xff] }
 0x2a7   : > { %v4126_v7 = vpack.i.bf16 %v5080_v3, %v1398_v4  ;;  %v4121_v13 = vpack.i.bf16 %v1398_v4, %v5059_v51  ;;  %1749 = vmatpush.bf16.msra.mxu2 %v3835_v0  ;;  %v3834_v4 = vld [vmem:[%s5929_s6] sm:$0xff] }
 0x2a9   : > { %4127 = vrot.lane.b32.xlu0 %v4126_v7, %s5947_s26  ;;  %4122 = vrot.lane.b32.xlu2 %v4121_v13, %s5949_s23 }
 0x2ab   : > { %1750 = vmatpush.bf16.msra.mxu2 %v3834_v4 }
 0x2ae   : > { %v4108_v29 = vpop.permute.xlu2 %4107 }
 0x2af   : > { %v4110_v30 = vunpack.i.h.bf16 %v4108_v29  ;;  %v4109_v33 = vunpack.i.l.bf16 %v4108_v29 }
 0x2b4   : > { %v4098_v19 = vpop.permute.xlu1 %4097 }
 0x2b5   : > { %v4100_v21 = vunpack.i.h.bf16 %v4098_v19  ;;  %v4099_v12 = vunpack.i.l.bf16 %v4098_v19 }
 0x2b7   : > { %v1464_v46 = vsel %vm5944_vm10, %v1456_v20, %v4099_v12  ;;  %v1465_v15 = vsel %vm5944_vm10, %v1457_v31, %v4100_v21 }
 0x2b8   : > { %v1472_v24 = vpack.c.bf16 %v1465_v15, %v1464_v46 }
 0x2ba   : > { %3622 = vmatmul.msk.bf16.vlgmr.msra.gmra.mxu1 %vm5943_vm1, %v1472_v24 }
 0x2bc   : > { %v4103_v25 = vpop.permute.xlu1 %4102 }
 0x2bd   : > { %v4105_v26 = vunpack.i.h.bf16 %v4103_v25  ;;  %v4104_v27 = vunpack.i.l.bf16 %v4103_v25 }
 0x2bf   : > { %v1459_v37 = vsel %vm970_vm6, %v5028_v22, %v4105_v26  ;;  %v1458_v60 = vsel %vm970_vm6, %v5017_v9, %v4104_v27 }
 0x2c0   : > { %v1466_v38 = vsel %vm5944_vm10, %v1458_v60, %v4109_v33  ;;  %v1467_v36 = vsel %vm5944_vm10, %v1459_v37, %v4110_v30 }
 0x2c1   : > { %v1473_v40 = vpack.c.bf16 %v1467_v36, %v1466_v38 }
 0x2ca   : > { %3623 = vmatmul.msk.bf16.gmra.mxu1 %vm5943_vm1, %v1473_v40 }
 0x2d4   : > { %v4113_v41 = vpop.permute.xlu0 %4112 }
 0x2d5   : > { %v4115_v42 = vunpack.i.h.bf16 %v4113_v41  ;;  %v4114_v44 = vunpack.i.l.bf16 %v4113_v41  ;;  %v4118_v45 = vpop.permute.xlu1 %4117 }
 0x2d6   : > { %v4120_v48 = vunpack.i.h.bf16 %v4118_v45  ;;  %v4119_v5 = vunpack.i.l.bf16 %v4118_v45 }
 0x2d7   : > { %v1461_v22 = vsel %vm970_vm6, %v5044_v54, %v4115_v42  ;;  %v1460_v9 = vsel %vm970_vm6, %v5036_v35, %v4114_v44 }
 0x2d8   : > { %v1468_v49 = vsel %vm5944_vm10, %v1460_v9, %v4119_v5  ;;  %v1469_v8 = vsel %vm5944_vm10, %v1461_v22, %v4120_v48 }
 0x2d9   : > { %v1474_v52 = vpack.c.bf16 %v1469_v8, %v1468_v49 }
 0x2db   : > { %3624 = vmatmul.msk.bf16.gmra.mxu1 %vm5943_vm1, %v1474_v52 }
 0x303   : > { %v4123_v10 = vpop.permute.xlu2 %4122 }
 0x304   : > { %v4125_v34 = vunpack.i.h.bf16 %v4123_v10  ;;  %v4124_v53 = vunpack.i.l.bf16 %v4123_v10 }
 0x306   : > { %v1463_v54 = vsel %vm970_vm6, %v5059_v51, %v4125_v34  ;;  %v1462_v35 = vsel %vm970_vm6, %v5054_v50, %v4124_v53 }
 0x31b   : > { %v5108_v55 = vpop.permute.xlu0 %4127 }
 0x31c   : > { %v4130_v56 = vunpack.i.h.bf16 %v5108_v55  ;;  %v4129_v57 = vunpack.i.l.bf16 %v5108_v55 }
 0x31e   : > { %v1470_v58 = vsel %vm5944_vm10, %v1462_v35, %v4129_v57  ;;  %v1471_v61 = vsel %vm5944_vm10, %v1463_v54, %v4130_v56 }
 0x31f   : > { %v1475_v62 = vpack.c.bf16 %v1471_v61, %v1470_v58 }
 0x321   : > { %3625 = vmatmul.msk.bf16.gmra.mxu1 %vm5943_vm1, %v1475_v62 }
 0x337   : > { %v1526_v59 = vpop.f32.mrf.mxu1 }
 0x338   : > { %v5127_v51 = vadd.f32 %v5124_v63, %v1526_v59 }
 0x33a   : > { %v3626_v50 = vmul.f32 -1.442695, %v5127_v51 }
 0x33c   : > { %4374 = vpow2.f32 %v3626_v50 }
 0x33f   : > { %v1528_v2 = vpop.f32.mrf.mxu1 }
 0x340   : > { %v1529_v7 = vadd.f32 %v5124_v63, %v1528_v2 }
 0x342   : > { %v4375_v13 = vpop.eup %4374  ;;  %v3627_v16 = vmul.f32 -1.442695, %v1529_v7 }
 0x343   : > { %v1570_v18 = vadd.f32 1.0, %v4375_v13 }
 0x344   : > { %4376 = vpow2.f32 %v3627_v16 }
 0x345   : > { %4378 = vrcp.f32 %v1570_v18  ;;  %v1589_v36 = vand.u32 2147483648, %v1570_v18  ;;  %vm1583_vm4 = vweird.f32 %v1570_v18  ;;  %v1587_v40 = vand.u32 2147483647, %v1570_v18 }
 0x347   : > { %v1531_v19 = vpop.f32.mrf.mxu1  ;;  %v1590_v22 = vor.u32 1.1754944e-38, %v1589_v36  ;;  %vm1588_vm8 = vcmp.eq.f32.partialorder %v1587_v40, 8.507059e+37 }
 0x348   : > { %v5138_v21 = vadd.f32 %v5124_v63, %v1531_v19 }
 0x34a   : > { %v4377_v12 = vpop.eup %4376  ;;  %v3628_v31 = vmul.f32 -1.442695, %v5138_v21 }
 0x34b   : > { %v4379_v20 = vpop.eup %4378  ;;  %v1571_v46 = vadd.f32 1.0, %v4377_v12 }
 0x34c   : > { %v1579_v15 = vmul.f32 %v4379_v20, %v1570_v18  ;;  %4380 = vpow2.f32 %v3628_v31  ;;  %vm1584_vm3 = vweird.f32 %v4379_v20 }
 0x34d   : > { %4382 = vrcp.f32 %v1571_v46  ;;  %vm1585_vm5 = vmor %vm1583_vm4, %vm1584_vm3  ;;  %v1604_v42 = vand.u32 2147483648, %v1571_v46  ;;  %v1602_v48 = vand.u32 2147483647, %v1571_v46  ;;  %vm1598_vm9 = vweird.f32 %v1571_v46 }
 0x34e   : > { %v1580_v24 = vsub.f32 1.0, %v1579_v15  ;;  %vm1730_vm4 = vcmask 261120  }
 0x34f   : > { %v1533_v25 = vpop.f32.mrf.mxu1  ;;  %v1605_v34 = vor.u32 1.1754944e-38, %v1604_v42  ;;  %vm1603_vm3 = vcmp.eq.f32.partialorder %v1602_v48, 8.507059e+37 }
 0x350   : > { %v1581_v26 = vmul.f32 %v4379_v20, %v1580_v24  ;;  %v5142_v27 = vadd.f32 %v5124_v63, %v1533_v25 }
 0x352   : > { %v4381_v29 = vpop.eup %4380  ;;  %v3629_v37 = vmul.f32 -1.442695, %v5142_v27  ;;  %v1582_v33 = vadd.f32 %v4379_v20, %v1581_v26 }
 0x353   : > { %v4383_v60 = vpop.eup %4382  ;;  %v5145_v30 = vadd.f32 1.0, %v4381_v29 }
 0x354   : > { %v1594_v38 = vmul.f32 %v4383_v60, %v1571_v46  ;;  %4384 = vpow2.f32 %v3629_v37  ;;  %v1586_v44 = vsel %vm1585_vm5, %v4379_v20, %v1582_v33  ;;  %vm1599_vm7 = vweird.f32 %v4383_v60 }
 0x355   : > { %4386 = vrcp.f32 %v5145_v30  ;;  %v1591_v10 = vsel %vm1588_vm8, %v1590_v22, %v1586_v44  ;;  %vm1600_vm11 = vmor %vm1598_vm9, %vm1599_vm7  ;;  %v1619_v19 = vand.u32 2147483648, %v5145_v30  ;;  %vm1613_vm7 = vweird.f32 %v5145_v30 }
 0x356   : > { %v1595_v41 = vsub.f32 1.0, %v1594_v38  ;;  %v5154_v61 = vmul.f32 %v1591_v10, %v5127_v51  ;;  %v1617_v31 = vand.u32 2147483647, %v5145_v30 }
 0x357   : > { %v1620_v26 = vor.u32 1.1754944e-38, %v1619_v19 }
 0x358   : > { %v1596_v45 = vmul.f32 %v4383_v60, %v1595_v41  ;;  %v1536_v5 = vpop.f32.mrf.mxu1 }
 0x359   : > { %v5149_v9 = vadd.f32 %v5124_v63, %v1536_v5 }
 0x35a   : > { %v4385_v49 = vpop.eup %4384  ;;  %v1597_v8 = vadd.f32 %v4383_v60, %v1596_v45 }
 0x35b   : > { %v4387_v52 = vpop.eup %4386  ;;  %v1573_v53 = vadd.f32 1.0, %v4385_v49  ;;  %v3630_v57 = vmul.f32 -1.442695, %v5149_v9 }
 0x35c   : > { %v1601_v54 = vsel %vm1600_vm11, %v4383_v60, %v1597_v8  ;;  %v1609_v35 = vmul.f32 %v4387_v52, %v5145_v30  ;;  %vm1614_vm5 = vweird.f32 %v4387_v52  ;;  %vm1618_vm11 = vcmp.eq.f32.partialorder %v1617_v31, 8.507059e+37 }
 0x35d   : > { %v1606_v58 = vsel %vm1603_vm3, %v1605_v34, %v1601_v54  ;;  %4388 = vrcp.f32 %v1573_v53  ;;  %vm1615_vm8 = vmor %vm1613_vm7, %vm1614_vm5  ;;  %v1634_v46 = vand.u32 2147483648, %v1573_v53  ;;  %v1632_v25 = vand.u32 2147483647, %v1573_v53 }
 0x35e   : > { %v5156_v62 = vmul.f32 %v1606_v58, %v1529_v7  ;;  %v1610_v59 = vsub.f32 1.0, %v1609_v35  ;;  %4390 = vpow2.f32 %v3630_v57  ;;  %vm1628_vm3 = vweird.f32 %v1573_v53 }
 0x35f   : > { %v1635_v33 = vor.u32 1.1754944e-38, %v1634_v46  ;;  %vm1633_vm10 = vcmp.eq.f32.partialorder %v1632_v25, 8.507059e+37 }
 0x360   : > { %v1611_v50 = vmul.f32 %v4387_v52, %v1610_v59  ;;  %v1538_v0 = vpop.f32.mrf.mxu1  ;;  %v1706_v2 = vpack.c.bf16 %v5156_v62, %v5154_v61 }
 0x361   : > { %v5161_v4 = vadd.f32 %v5124_v63, %v1538_v0 }
 0x362   : > { %3642 = vmatmul.msk.bf16.vlgmr.msra.gmra.mxu2 %vm1730_vm4, %v1706_v2  ;;  %v1612_v18 = vadd.f32 %v4387_v52, %v1611_v50 }
 0x363   : > { %v4389_v13 = vpop.eup %4388  ;;  %v3631_v16 = vmul.f32 -1.442695, %v5161_v4 }
 0x364   : > { %v4391_v51 = vpop.eup %4390  ;;  %v1624_v7 = vmul.f32 %v4389_v13, %v1573_v53  ;;  %v1616_v15 = vsel %vm1615_vm8, %v4387_v52, %v1612_v18  ;;  %vm1629_vm9 = vweird.f32 %v4389_v13 }
 0x365   : > { %v1574_v12 = vadd.f32 1.0, %v4391_v51  ;;  %4392 = vpow2.f32 %v3631_v16  ;;  %v1621_v60 = vsel %vm1618_vm11, %v1620_v26, %v1616_v15  ;;  %vm1630_vm1 = vmor %vm1628_vm3, %vm1629_vm9 }
 0x366   : > { %v1625_v20 = vsub.f32 1.0, %v1624_v7  ;;  %v5169_v41 = vmul.f32 %v1621_v60, %v5138_v21 }
 0x367   : > { %4394 = vrcp.f32 %v1574_v12  ;;  %v1649_v52 = vand.u32 2147483648, %v1574_v12  ;;  %v1647_v21 = vand.u32 2147483647, %v1574_v12 }
 0x368   : > { %v1626_v24 = vmul.f32 %v4389_v13, %v1625_v20 }
 0x369   : > { %v1650_v54 = vor.u32 1.1754944e-38, %v1649_v52  ;;  %vm1648_vm8 = vcmp.eq.f32.partialorder %v1647_v21, 8.507059e+37 }
 0x36a   : > { %v1627_v29 = vadd.f32 %v4389_v13, %v1626_v24 }
 0x36b   : > { %v4393_v37 = vpop.eup %4392 }
 0x36c   : > { %v1631_v38 = vsel %vm1630_vm1, %v4389_v13, %v1627_v29  ;;  %v1575_v36 = vadd.f32 1.0, %v4393_v37 }
 0x36d   : > { %v4395_v30 = vpop.eup %4394  ;;  %v1636_v40 = vsel %vm1633_vm10, %v1635_v33, %v1631_v38  ;;  %vm1643_vm10 = vweird.f32 %v1574_v12 }
 0x36e   : > { %v5172_v42 = vmul.f32 %v1636_v40, %v5142_v27  ;;  %v1639_v44 = vmul.f32 %v4395_v30, %v1574_v12  ;;  %4396 = vrcp.f32 %v1575_v36  ;;  %vm1644_vm1 = vweird.f32 %v4395_v30 }
 0x36f   : > { %vm1645_vm5 = vmor %vm1643_vm10, %vm1644_vm1  ;;  %v1664_v27 = vand.u32 2147483648, %v1575_v36  ;;  %v1662_v57 = vand.u32 2147483647, %v1575_v36  ;;  %vm1658_vm9 = vweird.f32 %v1575_v36 }
 0x370   : > { %v1640_v45 = vsub.f32 1.0, %v1639_v44  ;;  %v1707_v48 = vpack.c.bf16 %v5172_v42, %v5169_v41 }
 0x371   : > { %v1665_v59 = vor.u32 1.1754944e-38, %v1664_v27  ;;  %vm1663_vm3 = vcmp.eq.f32.partialorder %v1662_v57, 8.507059e+37  ;;  %v4353_v57 = vld [vmem:[%s5930_s7] ss:$0 sm:$0xff] }
 0x372   : > { %v1641_v5 = vmul.f32 %v4395_v30, %v1640_v45  ;;  %3643 = vmatmul.msk.bf16.gmra.mxu2 %vm1730_vm4, %v1707_v48 }
 0x374   : > { %v4397_v22 = vpop.eup %4396  ;;  %v1642_v49 = vadd.f32 %v4395_v30, %v1641_v5 }
 0x375   : > { %v1654_v8 = vmul.f32 %v4397_v22, %v1575_v36  ;;  %vm1659_vm7 = vweird.f32 %v4397_v22 }
 0x376   : > { %v1646_v34 = vsel %vm1645_vm5, %v4395_v30, %v1642_v49  ;;  %vm1660_vm11 = vmor %vm1658_vm9, %vm1659_vm7 }
 0x377   : > { %v1655_v10 = vsub.f32 1.0, %v1654_v8  ;;  %v1651_v58 = vsel %vm1648_vm8, %v1650_v54, %v1646_v34  ;;  %v3836_v34 = vld [vmem:[%s5931_s8] sm:$0xff] }
 0x378   : > { %v5178_v2 = vmul.f32 %v1651_v58, %v5149_v9 }
 0x379   : > { %v1656_v53 = vmul.f32 %v4397_v22, %v1655_v10  ;;  %v3837_v10 = vld [vmem:[%s5931_s8 + $0x8] sm:$0xff] }
 0x37a   : > { %1810 = vmatpush.bf16.msra.mxu3 %v3837_v10 }
 0x37b   : > { %v1657_v35 = vadd.f32 %v4397_v22, %v1656_v53 }
 0x37d   : > { %v1661_v50 = vsel %vm1660_vm11, %v4397_v22, %v1657_v35 }
 0x37e   : > { %v1666_v0 = vsel %vm1663_vm3, %v1665_v59, %v1661_v50  ;;  %1811 = vmatpush.bf16.msra.mxu3 %v3836_v34 }
 0x37f   : > { %v5181_v13 = vmul.f32 %v1666_v0, %v5161_v4 }
 0x381   : > { %v1708_v16 = vpack.c.bf16 %v5181_v13, %v5178_v2 }
 0x383   : > { %3644 = vmatmul.msk.bf16.gmra.mxu2 %vm1730_vm4, %v1708_v16 }
 0x39e   : > { %v1541_v51 = vpop.f32.mrf.mxu1 }
 0x39f   : > { %v1542_v18 = vadd.f32 %v5124_v63, %v1541_v51 }
 0x3a1   : > { %v3632_v7 = vmul.f32 -1.442695, %v1542_v18 }
 0x3a3   : > { %4398 = vpow2.f32 %v3632_v7 }
 0x3a6   : > { %v1543_v19 = vpop.f32.mrf.mxu1 }
 0x3a7   : > { %v1544_v12 = vadd.f32 %v5124_v63, %v1543_v19 }
 0x3a9   : > { %v4399_v31 = vpop.eup %4398  ;;  %v3633_v20 = vmul.f32 -1.442695, %v1544_v12 }
 0x3aa   : > { %v1576_v9 = vadd.f32 1.0, %v4399_v31 }
 0x3ab   : > { %4400 = vpow2.f32 %v3633_v20 }
 0x3ac   : > { %4402 = vrcp.f32 %v1576_v9  ;;  %v1679_v33 = vand.u32 2147483648, %v1576_v9  ;;  %vm1673_vm10 = vweird.f32 %v1576_v9  ;;  %v1677_v38 = vand.u32 2147483647, %v1576_v9 }
 0x3ae   : > { %v1680_v45 = vor.u32 1.1754944e-38, %v1679_v33  ;;  %vm1678_vm8 = vcmp.eq.f32.partialorder %v1677_v38, 8.507059e+37 }
 0x3b1   : > { %v4401_v4 = vpop.eup %4400 }
 0x3b2   : > { %v4403_v46 = vpop.eup %4402  ;;  %v1577_v15 = vadd.f32 1.0, %v4401_v4 }
 0x3b3   : > { %v1669_v24 = vmul.f32 %v4403_v46, %v1576_v9  ;;  %vm1674_vm1 = vweird.f32 %v4403_v46 }
 0x3b4   : > { %4404 = vrcp.f32 %v1577_v15  ;;  %vm1675_vm5 = vmor %vm1673_vm10, %vm1674_vm1  ;;  %v1694_v36 = vand.u32 2147483648, %v1577_v15  ;;  %v1692_v44 = vand.u32 2147483647, %v1577_v15  ;;  %vm1688_vm9 = vweird.f32 %v1577_v15 }
 0x3b5   : > { %v1670_v25 = vsub.f32 1.0, %v1669_v24  ;;  %vm1938_vm1 = vcmask 1043456   ;;  %vm2278_vm10 = vcmask 785408  }
 0x3b6   : > { %v1695_v22 = vor.u32 1.1754944e-38, %v1694_v36  ;;  %vm1693_vm3 = vcmp.eq.f32.partialorder %v1692_v44, 8.507059e+37 }
 0x3b7   : > { %v1671_v26 = vmul.f32 %v4403_v46, %v1670_v25 }
 0x3b9   : > { %v1672_v37 = vadd.f32 %v4403_v46, %v1671_v26 }
 0x3ba   : > { %v4405_v29 = vpop.eup %4404 }
 0x3bb   : > { %v1684_v60 = vmul.f32 %v4405_v29, %v1577_v15  ;;  %v1676_v30 = vsel %vm1675_vm5, %v4403_v46, %v1672_v37  ;;  %vm1689_vm7 = vweird.f32 %v4405_v29  ;;  %vm5971_vm5 = vcmask 195584  }
 0x3bc   : > { %v1681_v5 = vsel %vm1678_vm8, %v1680_v45, %v1676_v30  ;;  %vm1690_vm11 = vmor %vm1688_vm9, %vm1689_vm7 }
 0x3bd   : > { %v1685_v63 = vsub.f32 1.0, %v1684_v60  ;;  %v5188_v52 = vmul.f32 %v1681_v5, %v1542_v18  ;;  %vm5974_vm7 = vmmov %vm5971_vm5 }
 0x3be   : > { %vm5975_vm8 = vmmov %vm5971_vm5 }
 0x3bf   : > { %v1686_v40 = vmul.f32 %v4405_v29, %v1685_v63 }
 0x3c1   : > { %v1687_v48 = vadd.f32 %v4405_v29, %v1686_v40 }
 0x3c3   : > { %v1691_v49 = vsel %vm1690_vm11, %v4405_v29, %v1687_v48  ;;  %vm5977_vm11 = vmmov %vm5971_vm5 }
 0x3c4   : > { %v1696_v8 = vsel %vm1693_vm3, %v1695_v22, %v1691_v49  ;;  %vm5978_vm3 = vmmov %vm5971_vm5 }
 0x3c5   : > { %v5190_v21 = vmul.f32 %v1696_v8, %v1544_v12 }
 0x3c7   : > { %v1709_v27 = vpack.c.bf16 %v5190_v21, %v5188_v52 }
 0x3c9   : > { %3645 = vmatmul.msk.bf16.gmra.mxu2 %vm1730_vm4, %v1709_v27 }
 0x3e5   : > { %v1752_v53 = vpop.f32.mrf.mxu2 }
 0x3e6   : > { %v1753_v35 = vadd.f32 %v4353_v57, %v1752_v53 }
 0x3ed   : > { %v1754_v54 = vpop.f32.mrf.mxu2 }
 0x3ee   : > { %v1755_v58 = vadd.f32 %v4353_v57, %v1754_v54 }
 0x3f0   : > { %v1772_v59 = vpack.c.bf16 %v1755_v58, %v1753_v35 }
 0x3f2   : > { %3654 = vmatmul.msk.bf16.vlgmr.msra.gmra.mxu3 %vm1730_vm4, %v1772_v59 }
 0x3f5   : > { %v1757_v50 = vpop.f32.mrf.mxu2 }
 0x3f6   : > { %v1758_v16 = vadd.f32 %v4353_v57, %v1757_v50 }
 0x3fd   : > { %v1759_v0 = vpop.f32.mrf.mxu2 }
 0x3fe   : > { %v1760_v51 = vadd.f32 %v4353_v57, %v1759_v0 }
 0x400   : > { %v1773_v18 = vpack.c.bf16 %v1760_v51, %v1758_v16  ;;  %v1925_v16 = vld [vmem:[%s5932_s9] sm:$0xf] }
 0x401   : > { %v1940_v51 = vsel %vm1938_vm1, %v1925_v16, 0 }
 0x402   : > { %3655 = vmatmul.msk.bf16.gmra.mxu3 %vm1730_vm4, %v1773_v18  ;;  %1949 = vmatpush.bf16.msrb.mxu0 %v1940_v51 }
 0x406   : > { %v1762_v7 = vpop.f32.mrf.mxu2 }
 0x407   : > { %v1763_v12 = vadd.f32 %v4353_v57, %v1762_v7 }
 0x40e   : > { %v1764_v19 = vpop.f32.mrf.mxu2 }
 0x40f   : > { %v1765_v31 = vadd.f32 %v4353_v57, %v1764_v19 }
 0x411   : > { %v1774_v20 = vpack.c.bf16 %v1765_v31, %v1763_v12 }
 0x413   : > { %3656 = vmatmul.msk.bf16.gmra.mxu3 %vm1730_vm4, %v1774_v20 }
 0x44c   : > { %v1767_v9 = vpop.f32.mrf.mxu2 }
 0x44d   : > { %v1768_v46 = vadd.f32 %v4353_v57, %v1767_v9 }
 0x454   : > { %v1769_v4 = vpop.f32.mrf.mxu2 }
 0x455   : > { %v1770_v15 = vadd.f32 %v4353_v57, %v1769_v4 }
 0x457   : > { %v1775_v24 = vpack.c.bf16 %v1770_v15, %v1768_v46 }
 0x459   : > { %3657 = vmatmul.msk.bf16.gmra.mxu3 %vm1730_vm4, %v1775_v24 }
 0x475   : > { %v1813_v25 = vpop.f32.mrf.mxu3 }
 0x476   : > { %v1833_v26 = vsel %vm1389_vm14, %v1813_v25, -inf }
 0x477   : > { %1834 = vmax.xlane.f32.xlu1 %v1833_v26 }
 0x47d   : > { %v1815_v29 = vpop.f32.mrf.mxu3 }
 0x47e   : > { %v1836_v37 = vsel %vm1389_vm14, %v1815_v29, -inf }
 0x47f   : > { %1837 = vmax.xlane.f32.xlu2 %v1836_v37 }
 0x485   : > { %v1818_v60 = vpop.f32.mrf.mxu3 }
 0x486   : > { %v1839_v33 = vsel %vm1389_vm14, %v1818_v60, -inf }
 0x487   : > { %1840 = vmax.xlane.f32.xlu0 %v1839_v33 }
 0x48d   : > { %v1820_v38 = vpop.f32.mrf.mxu3 }
 0x48e   : > { %v1842_v63 = vsel %vm1389_vm14, %v1820_v38, -inf }
 0x48f   : > { %1843 = vmax.xlane.f32.xlu2 %v1842_v63 }
 0x496   : > { %v1823_v36 = vpop.f32.mrf.mxu3 }
 0x497   : > { %v1845_v30 = vsel %vm1389_vm14, %v1823_v36, -inf }
 0x498   : > { %1846 = vmax.xlane.f32.xlu1 %v1845_v30 }
 0x49e   : > { %v1825_v40 = vpop.f32.mrf.mxu3 }
 0x49f   : > { %v1848_v44 = vsel %vm1389_vm14, %v1825_v40, -inf }
 0x4a0   : > { %1849 = vmax.xlane.f32.xlu2 %v1848_v44 }
 0x4dc   : > { %v1828_v45 = vpop.f32.mrf.mxu3 }
 0x4dd   : > { %v1851_v48 = vsel %vm1389_vm14, %v1828_v45, -inf }
 0x4de   : > { %1852 = vmax.xlane.f32.xlu0 %v1851_v48 }
 0x4e4   : > { %v1830_v5 = vpop.f32.mrf.mxu3 }
 0x4e5   : > { %v1854_v22 = vsel %vm1389_vm14, %v1830_v5, -inf }
 0x4e6   : > { %1855 = vmax.xlane.f32.xlu1 %v1854_v22 }
 0x4ea   : > { %v1835_v49 = vpop.xlane.xlu1 %1834 }
 0x4eb   : > { %v1857_v8 = vsub.f32 %v1813_v25, %v1835_v49 }
 0x4ed   : > { %v1865_v10 = vmul.f32 1.442695, %v1857_v8 }
 0x4ef   : > { %4406 = vpow2.f32 %v1865_v10 }
 0x4f2   : > { %v1838_v27 = vpop.xlane.xlu2 %1837 }
 0x4f3   : > { %v1858_v34 = vsub.f32 %v1815_v29, %v1838_v27 }
 0x4f5   : > { %v4407_v53 = vpop.eup %4406  ;;  %v1867_v57 = vmul.f32 1.442695, %v1858_v34 }
 0x4f6   : > { %v1881_v54 = vsel %vm1389_vm14, %v4407_v53, 0.0 }
 0x4f7   : > { %4408 = vpow2.f32 %v1867_v57  ;;  %1882 = vadd.xlane.f32.xlu2 %v1881_v54 }
 0x4fa   : > { %v1841_v35 = vpop.xlane.xlu0 %1840 }
 0x4fb   : > { %v1859_v58 = vsub.f32 %v1818_v60, %v1841_v35 }
 0x4fd   : > { %v4409_v59 = vpop.eup %4408  ;;  %v1869_v50 = vmul.f32 1.442695, %v1859_v58  ;;  %v3839_v58 = vld [vmem:[%s5933_s10 + $0x8] sm:$0xff] }
 0x4fe   : > { %v1884_v0 = vsel %vm1389_vm14, %v4409_v59, 0.0  ;;  %2013 = vmatpush.bf16.msrb.mxu2 %v3839_v58 }
 0x4ff   : > { %4410 = vpow2.f32 %v1869_v50  ;;  %1885 = vadd.xlane.f32.xlu0 %v1884_v0 }
 0x502   : > { %v1844_v18 = vpop.xlane.xlu2 %1843 }
 0x503   : > { %v1860_v7 = vsub.f32 %v1820_v38, %v1844_v18 }
 0x505   : > { %v4411_v19 = vpop.eup %4410  ;;  %v1871_v12 = vmul.f32 1.442695, %v1860_v7 }
 0x506   : > { %v1887_v31 = vsel %vm1389_vm14, %v4411_v19, 0.0 }
 0x507   : > { %4412 = vpow2.f32 %v1871_v12  ;;  %1888 = vadd.xlane.f32.xlu1 %v1887_v31 }
 0x50b   : > { %v1847_v20 = vpop.xlane.xlu1 %1846 }
 0x50c   : > { %v1861_v9 = vsub.f32 %v1823_v36, %v1847_v20 }
 0x50d   : > { %v4413_v4 = vpop.eup %4412 }
 0x50e   : > { %v1873_v46 = vmul.f32 1.442695, %v1861_v9  ;;  %v1890_v15 = vsel %vm1389_vm14, %v4413_v4, 0.0 }
 0x50f   : > { %1891 = vadd.xlane.f32.xlu2 %v1890_v15  ;;  %v2872_v15 = vld [vmem:[%s5937_s14 + $0x10] sm:$0x3] }
 0x510   : > { %4414 = vpow2.f32 %v1873_v46 }
 0x513   : > { %v1850_v24 = vpop.xlane.xlu2 %1849 }
 0x514   : > { %v1862_v25 = vsub.f32 %v1825_v40, %v1850_v24 }
 0x516   : > { %v4415_v26 = vpop.eup %4414  ;;  %v1875_v29 = vmul.f32 1.442695, %v1862_v25  ;;  %v3838_v25 = vld [vmem:[%s5933_s10] sm:$0xff] }
 0x517   : > { %v1893_v37 = vsel %vm1389_vm14, %v4415_v26, 0.0  ;;  %2014 = vmatpush.bf16.msrb.mxu2 %v3838_v25 }
 0x518   : > { %4416 = vpow2.f32 %v1875_v29  ;;  %1894 = vadd.xlane.f32.xlu0 %v1893_v37 }
 0x51e   : > { %v4417_v60 = vpop.eup %4416 }
 0x51f   : > { %v1896_v33 = vsel %vm1389_vm14, %v4417_v60, 0.0 }
 0x520   : > { %1897 = vadd.xlane.f32.xlu1 %v1896_v33 }
 0x551   : > { %v1853_v38 = vpop.xlane.xlu0 %1852 }
 0x552   : > { %v1863_v63 = vsub.f32 %v1828_v45, %v1853_v38 }
 0x554   : > { %v1877_v36 = vmul.f32 1.442695, %v1863_v63 }
 0x556   : > { %4418 = vpow2.f32 %v1877_v36 }
 0x559   : > { %v1856_v30 = vpop.xlane.xlu1 %1855 }
 0x55a   : > { %v1864_v44 = vsub.f32 %v1830_v5, %v1856_v30 }
 0x55c   : > { %v4419_v48 = vpop.eup %4418  ;;  %v1879_v22 = vmul.f32 1.442695, %v1864_v44 }
 0x55d   : > { %v1899_v40 = vsel %vm1389_vm14, %v4419_v48, 0.0 }
 0x55e   : > { %4420 = vpow2.f32 %v1879_v22  ;;  %1900 = vadd.xlane.f32.xlu2 %v1899_v40 }
 0x564   : > { %v4421_v49 = vpop.eup %4420 }
 0x565   : > { %v1902_v8 = vsel %vm1389_vm14, %v4421_v49, 0.0 }
 0x566   : > { %1903 = vadd.xlane.f32.xlu0 %v1902_v8 }
 0x56a   : > { %v1883_v10 = vpop.xlane.xlu2 %1882 }
 0x56b   : > { %4422 = vrcp.f32 %v1883_v10 }
 0x571   : > { %v4423_v34 = vpop.eup %4422 }
 0x572   : > { %v1886_v27 = vpop.xlane.xlu0 %1885  ;;  %v1913_v57 = vmul.f32 %v4423_v34, %v4407_v53 }
 0x573   : > { %4424 = vrcp.f32 %v1886_v27 }
 0x579   : > { %v4425_v45 = vpop.eup %4424 }
 0x57a   : > { %v1914_v54 = vmul.f32 %v4425_v45, %v4409_v59  ;;  %v1889_v5 = vpop.xlane.xlu1 %1888 }
 0x57b   : > { %4426 = vrcp.f32 %v1889_v5 }
 0x57c   : > { %v1921_v35 = vpack.c.bf16 %v1914_v54, %v1913_v57  ;;  %v5248_v57 = vld [vmem:[%s5934_s11] ss:$0 sm:$0xff] }
 0x57e   : > { %3658 = vmatmul.msk.bf16.vlgmr.msrb.gmra.mxu0 %vm1389_vm14, %v1921_v35 }
 0x581   : > { %v4427_v0 = vpop.eup %4426 }
 0x582   : > { %v1892_v50 = vpop.xlane.xlu2 %1891  ;;  %v1915_v51 = vmul.f32 %v4427_v0, %v4411_v19  ;;  %v2886_v19 = vunpack.c.l.b16 %v2872_v15 }
 0x583   : > { %4428 = vrcp.f32 %v1892_v50 }
 0x589   : > { %v4429_v16 = vpop.eup %4428 }
 0x58a   : > { %v1916_v18 = vmul.f32 %v4429_v16, %v4413_v4  ;;  %v2889_v4 = vpack.c.b16 %v2886_v19, %v2886_v19 }
 0x58b   : > { %v1895_v53 = vpop.xlane.xlu0 %1894 }
 0x58c   : > { %v1922_v7 = vpack.c.bf16 %v1916_v18, %v1915_v51  ;;  %4430 = vrcp.f32 %v1895_v53  ;;  %v2905_v24 = vsel %vm1513_vm15, %v2889_v4, 0  ;;  %vm2211_vm15 = vcmask 523264  }
 0x58d   : > { %2912 = vmatpush.bf16.msra.mxu2 %v2905_v24 }
 0x58e   : > { %3659 = vmatmul.msk.bf16.gmra.mxu0 %vm1389_vm14, %v1922_v7 }
 0x592   : > { %v4431_v12 = vpop.eup %4430 }
 0x593   : > { %v1898_v59 = vpop.xlane.xlu1 %1897  ;;  %v1917_v20 = vmul.f32 %v4431_v12, %v4415_v26 }
 0x594   : > { %4432 = vrcp.f32 %v1898_v59 }
 0x59a   : > { %v4433_v31 = vpop.eup %4432 }
 0x59b   : > { %v1918_v9 = vmul.f32 %v4433_v31, %v4417_v60 }
 0x59d   : > { %v1923_v46 = vpack.c.bf16 %v1918_v9, %v1917_v20 }
 0x59f   : > { %3660 = vmatmul.msk.bf16.gmra.mxu0 %vm1389_vm14, %v1923_v46 }
 0x5d1   : > { %v1901_v29 = vpop.xlane.xlu2 %1900 }
 0x5d2   : > { %4434 = vrcp.f32 %v1901_v29 }
 0x5d8   : > { %v4435_v37 = vpop.eup %4434 }
 0x5d9   : > { %v1904_v26 = vpop.xlane.xlu0 %1903  ;;  %v1919_v33 = vmul.f32 %v4435_v37, %v4419_v48 }
 0x5da   : > { %4436 = vrcp.f32 %v1904_v26 }
 0x5e0   : > { %v4437_v60 = vpop.eup %4436 }
 0x5e1   : > { %v1920_v38 = vmul.f32 %v4437_v60, %v4421_v49 }
 0x5e3   : > { %v1924_v63 = vpack.c.bf16 %v1920_v38, %v1919_v33 }
 0x5e5   : > { %3661 = vmatmul.msk.bf16.gmra.mxu0 %vm1389_vm14, %v1924_v63 }
 0x5fb   : > { %v1951_v36 = vpop.f32.mrf.mxu0 }
 0x603   : > { %v1953_v30 = vpop.f32.mrf.mxu0 }
 0x604   : > { %v1971_v44 = vpack.c.bf16 %v1953_v30, %v1951_v36 }
 0x606   : > { %3670 = vmatmul.msk.bf16.vlgmr.msrb.gmra.mxu2 %vm1730_vm4, %v1971_v44 }
 0x60b   : > { %v1956_v22 = vpop.f32.mrf.mxu0 }
 0x613   : > { %v1958_v40 = vpop.f32.mrf.mxu0 }
 0x614   : > { %v1972_v8 = vpack.c.bf16 %v1958_v40, %v1956_v22 }
 0x616   : > { %3671 = vmatmul.msk.bf16.gmra.mxu2 %vm1730_vm4, %v1972_v8 }
 0x61c   : > { %v1961_v10 = vpop.f32.mrf.mxu0 }
 0x624   : > { %v1963_v27 = vpop.f32.mrf.mxu0 }
 0x625   : > { %v1973_v34 = vpack.c.bf16 %v1963_v27, %v1961_v10 }
 0x627   : > { %3672 = vmatmul.msk.bf16.gmra.mxu2 %vm1730_vm4, %v1973_v34 }
 0x662   : > { %v1966_v48 = vpop.f32.mrf.mxu0 }
 0x66a   : > { %v1968_v49 = vpop.f32.mrf.mxu0 }
 0x66b   : > { %v1974_v45 = vpack.c.bf16 %v1968_v49, %v1966_v48 }
 0x66d   : > { %3673 = vmatmul.msk.bf16.gmra.mxu2 %vm1730_vm4, %v1974_v45 }
 0x689   : > { %v2016_v54 = vpop.f32.mrf.mxu2 }
 0x68a   : > { %v2017_v35 = vadd.f32 %v5248_v57, %v2016_v54 }
 0x68c   : > { %v2036_v5 = vadd.f32 %v2017_v35, %v5154_v61 }
 0x68e   : > { %v2052_v58 = vrot.slane %v2036_v5, 7 }
 0x690   : > { %v5254_v16 = vsel %vm1234_vm12, 0.0, %v2052_v58  ;;  %v2076_v51 = vsel %vm1234_vm12, %v2052_v58, 0.0 }
 0x691   : > { %v2018_v50 = vpop.f32.mrf.mxu2  ;;  %v2100_v53 = vrot.slane %v5254_v16, 1  ;;  %v2101_v59 = vrot.slane %v2076_v51, 1  ;;  %v2151_v12 = vrot.slane %v5254_v16, 2  ;;  %v2152_v31 = vrot.slane %v2076_v51, 2 }
 0x692   : > { %v2019_v0 = vadd.f32 %v5248_v57, %v2018_v50 }
 0x693   : > { %v2153_v24 = vsel %vm1052_vm2, %v2151_v12, %v2152_v31  ;;  %v2102_v29 = vsel %vm696_vm0, %v2100_v53, %v2101_v59 }
 0x694   : > { %v2037_v18 = vadd.f32 %v2019_v0, %v5156_v62 }
 0x696   : > { %v2053_v7 = vrot.slane %v2037_v18, 7 }
 0x698   : > { %v5261_v61 = vsel %vm1234_vm12, 0.0, %v2053_v7  ;;  %v2077_v20 = vsel %vm1234_vm12, %v2053_v7, 0.0 }
 0x699   : > { %v2103_v9 = vrot.slane %v5261_v61, 1  ;;  %v2104_v46 = vrot.slane %v2077_v20, 1  ;;  %v2154_v15 = vrot.slane %v5261_v61, 2  ;;  %v2155_v19 = vrot.slane %v2077_v20, 2  ;;  %v2021_v4 = vpop.f32.mrf.mxu2 }
 0x69a   : > { %v2022_v62 = vadd.f32 %v5248_v57, %v2021_v4 }
 0x69b   : > { %v2156_v25 = vsel %vm1052_vm2, %v2154_v15, %v2155_v19  ;;  %v2105_v26 = vsel %vm696_vm0, %v2103_v9, %v2104_v46 }
 0x69c   : > { %v2038_v37 = vadd.f32 %v2022_v62, %v5169_v41  ;;  %v4136_v60 = vpack.i.bf16 %v2156_v25, %v2153_v24  ;;  %v4131_v33 = vpack.i.bf16 %v2105_v26, %v2102_v29 }
 0x69e   : > { %4137 = vrot.lane.b32.xlu2 %v4136_v60, %s5957_s22  ;;  %4132 = vrot.lane.b32.xlu1 %v4131_v33, %s5945_s2  ;;  %v2054_v38 = vrot.slane %v2038_v37, 7 }
 0x6a0   : > { %v5276_v30 = vsel %vm1234_vm12, 0.0, %v2054_v38  ;;  %v2078_v44 = vsel %vm1234_vm12, %v2054_v38, 0.0 }
 0x6a1   : > { %v2023_v63 = vpop.f32.mrf.mxu2  ;;  %v2157_v41 = vrot.slane %v5276_v30, 2  ;;  %v2158_v40 = vrot.slane %v2078_v44, 2  ;;  %v2106_v10 = vrot.slane %v5276_v30, 1  ;;  %v2107_v27 = vrot.slane %v2078_v44, 1 }
 0x6a2   : > { %v2024_v36 = vadd.f32 %v5248_v57, %v2023_v63 }
 0x6a3   : > { %v2108_v0 = vsel %vm696_vm0, %v2106_v10, %v2107_v27 }
 0x6a4   : > { %v2039_v22 = vadd.f32 %v2024_v36, %v5172_v42  ;;  %v2159_v42 = vsel %vm1052_vm2, %v2157_v41, %v2158_v40 }
 0x6a6   : > { %v2055_v8 = vrot.slane %v2039_v22, 7 }
 0x6a8   : > { %v5283_v34 = vsel %vm1234_vm12, 0.0, %v2055_v8  ;;  %v2079_v48 = vsel %vm1234_vm12, %v2055_v8, 0.0 }
 0x6a9   : > { %v2109_v49 = vrot.slane %v5283_v34, 1  ;;  %v2110_v45 = vrot.slane %v2079_v48, 1  ;;  %v2160_v54 = vrot.slane %v5283_v34, 2  ;;  %v2161_v35 = vrot.slane %v2079_v48, 2 }
 0x6aa   : > { %v2026_v5 = vpop.f32.mrf.mxu2 }
 0x6ab   : > { %v2027_v58 = vadd.f32 %v5248_v57, %v2026_v5  ;;  %v2162_v50 = vsel %vm1052_vm2, %v2160_v54, %v2161_v35  ;;  %v2111_v51 = vsel %vm696_vm0, %v2109_v49, %v2110_v45 }
 0x6ac   : > { %v4146_v18 = vpack.i.bf16 %v2162_v50, %v2159_v42  ;;  %v4141_v7 = vpack.i.bf16 %v2111_v51, %v2108_v0 }
 0x6ad   : > { %v2040_v53 = vadd.f32 %v2027_v58, %v5178_v2 }
 0x6ae   : > { %4147 = vrot.lane.b32.xlu1 %v4146_v18, %s5957_s22  ;;  %4142 = vrot.lane.b32.xlu0 %v4141_v7, %s5945_s2 }
 0x6af   : > { %v2056_v59 = vrot.slane %v2040_v53, 7 }
 0x6b1   : > { %v5298_v20 = vsel %vm1234_vm12, 0.0, %v2056_v59  ;;  %v2080_v9 = vsel %vm1234_vm12, %v2056_v59, 0.0 }
 0x6b2   : > { %v2028_v12 = vpop.f32.mrf.mxu2  ;;  %v2112_v19 = vrot.slane %v5298_v20, 1  ;;  %v2113_v4 = vrot.slane %v2080_v9, 1  ;;  %v2163_v2 = vrot.slane %v5298_v20, 2  ;;  %v2164_v62 = vrot.slane %v2080_v9, 2 }
 0x6b3   : > { %v2029_v31 = vadd.f32 %v5248_v57, %v2028_v12 }
 0x6b4   : > { %v2114_v38 = vsel %vm696_vm0, %v2112_v19, %v2113_v4 }
 0x6b5   : > { %v2041_v46 = vadd.f32 %v2029_v31, %v5181_v13  ;;  %v2165_v13 = vsel %vm1052_vm2, %v2163_v2, %v2164_v62 }
 0x6b7   : > { %v2057_v15 = vrot.slane %v2041_v46, 7 }
 0x6b9   : > { %v5305_v24 = vsel %vm1234_vm12, 0.0, %v2057_v15  ;;  %v2081_v25 = vsel %vm1234_vm12, %v2057_v15, 0.0 }
 0x6ba   : > { %v2115_v29 = vrot.slane %v5305_v24, 1  ;;  %v2116_v26 = vrot.slane %v2081_v25, 1  ;;  %v2166_v37 = vrot.slane %v5305_v24, 2  ;;  %v2167_v60 = vrot.slane %v2081_v25, 2 }
 0x6bc   : > { %v2168_v33 = vsel %vm1052_vm2, %v2166_v37, %v2167_v60  ;;  %v2117_v63 = vsel %vm696_vm0, %v2115_v29, %v2116_v26 }
 0x6bd   : > { %v4156_v36 = vpack.i.bf16 %v2168_v33, %v2165_v13  ;;  %v4151_v44 = vpack.i.bf16 %v2117_v63, %v2114_v38  ;;  %v3857_v13 = vld [vmem:[%s5935_s12 + $0x88] sm:$0xff]  ;;  %v3846_v33 = vld [vmem:[%s5935_s12 + $0x30] sm:$0xff] }
 0x6be   : > { %v3854_v38 = vld [vmem:[%s5935_s12 + $0x70] sm:$0xff]  ;;  %2531 = vmatpush.bf16.msra.mxu0 %v3857_v13  ;;  %v3845_v63 = vld [vmem:[%s5935_s12 + $0x28] sm:$0xff] }
 0x6bf   : > { %4157 = vrot.lane.b32.xlu2 %v4156_v36, %s5957_s22  ;;  %4152 = vrot.lane.b32.xlu0 %v4151_v44, %s5945_s2  ;;  %v3853_v36 = vld [vmem:[%s5935_s12 + $0x68] sm:$0xff] }
 0x6f0   : > { %v2031_v22 = vpop.f32.mrf.mxu2 }
 0x6f1   : > { %v2032_v41 = vadd.f32 %v5248_v57, %v2031_v22 }
 0x6f3   : > { %v2042_v40 = vadd.f32 %v2032_v41, %v5188_v52 }
 0x6f5   : > { %v2058_v8 = vrot.slane %v2042_v40, 7 }
 0x6f7   : > { %v5319_v10 = vsel %vm1234_vm12, 0.0, %v2058_v8  ;;  %v2082_v27 = vsel %vm1234_vm12, %v2058_v8, 0.0 }
 0x6f8   : > { %v2118_v48 = vrot.slane %v5319_v10, 1  ;;  %v2119_v49 = vrot.slane %v2082_v27, 1  ;;  %v2169_v45 = vrot.slane %v5319_v10, 2  ;;  %v2170_v54 = vrot.slane %v2082_v27, 2  ;;  %v2033_v35 = vpop.f32.mrf.mxu2 }
 0x6f9   : > { %v2034_v5 = vadd.f32 %v5248_v57, %v2033_v35 }
 0x6fa   : > { %v2171_v42 = vsel %vm1052_vm2, %v2169_v45, %v2170_v54  ;;  %v2120_v58 = vsel %vm696_vm0, %v2118_v48, %v2119_v49  ;;  %v3844_v48 = vld [vmem:[%s5935_s12 + $0x20] sm:$0xff] }
 0x6fb   : > { %v2043_v52 = vadd.f32 %v2034_v5, %v5190_v21  ;;  %v4166_v50 = vpack.i.bf16 %v2171_v42, %v4988_v47  ;;  %v4161_v0 = vpack.i.bf16 %v2120_v58, %v4977_v32  ;;  %v4138_v21 = vpop.permute.xlu2 %4137 }
 0x6fc   : > { %v4140_v19 = vunpack.i.h.bf16 %v4138_v21  ;;  %v4139_v4 = vunpack.i.l.bf16 %v4138_v21 }
 0x6fd   : > { %v2059_v51 = vrot.slane %v2043_v52, 7  ;;  %4167 = vrot.lane.b32.xlu0 %v4166_v50, %s5957_s22  ;;  %4162 = vrot.lane.b32.xlu1 %v4161_v0, %s5945_s2 }
 0x6ff   : > { %v5333_v18 = vsel %vm1234_vm12, 0.0, %v2059_v51  ;;  %v2083_v57 = vsel %vm1234_vm12, %v2059_v51, 0.0 }
 0x700   : > { %v2122_v7 = vrot.slane %v2083_v57, 1  ;;  %v2121_v53 = vrot.slane %v5333_v18, 1  ;;  %v2172_v12 = vrot.slane %v5333_v18, 2  ;;  %v2173_v31 = vrot.slane %v2083_v57, 2 }
 0x702   : > { %v2123_v59 = vsel %vm696_vm0, %v2121_v53, %v2122_v7  ;;  %v2174_v25 = vsel %vm1052_vm2, %v2172_v12, %v2173_v31  ;;  %v3852_v31 = vld [vmem:[%s5935_s12 + $0x60] sm:$0xff] }
 0x705   : > { %2140 = vrot.lane.b32.xlu1 %v2123_v59, %s5945_s2 }
 0x710   : > { %v4133_v9 = vpop.permute.xlu1 %4132 }
 0x711   : > { %v4135_v46 = vunpack.i.h.bf16 %v4133_v9  ;;  %v4134_v15 = vunpack.i.l.bf16 %v4133_v9  ;;  %v3851_v9 = vld [vmem:[%s5935_s12 + $0x58] sm:$0xff] }
 0x713   : > { %v2204_v2 = vsel %vm1730_vm4, %v5261_v61, %v4135_v46  ;;  %v2203_v62 = vsel %vm1730_vm4, %v5254_v16, %v4134_v15  ;;  %v3847_v16 = vld [vmem:[%s5935_s12 + $0x38] sm:$0xff]  ;;  %v3856_v46 = vld [vmem:[%s5935_s12 + $0x80] sm:$0xff]  ;;  %v3850_v15 = vld [vmem:[%s5935_s12 + $0x50] sm:$0xff] }
 0x714   : > { %v5346_v29 = vsel %vm2211_vm15, %v2204_v2, %v4140_v19  ;;  %v5349_v26 = vsel %vm2211_vm15, %v2203_v62, %v4139_v4  ;;  %v3855_v61 = vld [vmem:[%s5935_s12 + $0x78] sm:$0xff]  ;;  %2467 = vmatpush.bf16.msrb.mxu3 %v3847_v16  ;;  %2532 = vmatpush.bf16.msra.mxu0 %v3856_v46  ;;  %v3849_v19 = vld [vmem:[%s5935_s12 + $0x48] sm:$0xff]  ;;  %v3848_v4 = vld [vmem:[%s5935_s12 + $0x40] sm:$0xff] }
 0x715   : > { %v4176_v37 = vpack.i.bf16 %v5346_v29, %v2174_v25  ;;  %v4171_v60 = vpack.i.bf16 %v5346_v29, %v5349_v26  ;;  %2496 = vmatpush.bf16.msrb.mxu1 %v3855_v61 }
 0x717   : > { %4177 = vrot.lane.b32.xlu0 %v4176_v37, %s5957_s22  ;;  %4172 = vrot.lane.b32.xlu2 %v4171_v60, %s5955_s24  ;;  %s5965_s24 = smov 96  }
 0x718   : > { %2468 = vmatpush.bf16.msrb.mxu3 %v3846_v33 }
 0x719   : > { %2497 = vmatpush.bf16.msrb.mxu1 %v3854_v38  ;;  %v4158_v42 = vpop.permute.xlu2 %4157 }
 0x71a   : > { %v4160_v0 = vunpack.i.h.bf16 %v4158_v42  ;;  %v4159_v51 = vunpack.i.l.bf16 %v4158_v42 }
 0x71c   : > { %2469 = vmatpush.bf16.msrb.mxu3 %v3845_v63 }
 0x71d   : > { %2498 = vmatpush.bf16.msrb.mxu1 %v3853_v36 }
 0x720   : > { %v4143_v44 = vpop.permute.xlu0 %4142  ;;  %v4148_v22 = vpop.permute.xlu1 %4147  ;;  %2470 = vmatpush.bf16.msrb.mxu3 %v3844_v48 }
 0x721   : > { %v4145_v41 = vunpack.i.h.bf16 %v4143_v44  ;;  %v4144_v40 = vunpack.i.l.bf16 %v4143_v44  ;;  %v4150_v8 = vunpack.i.h.bf16 %v4148_v22  ;;  %v4149_v27 = vunpack.i.l.bf16 %v4148_v22  ;;  %2499 = vmatpush.bf16.msrb.mxu1 %v3852_v31 }
 0x723   : > { %v2206_v49 = vsel %vm1730_vm4, %v5283_v34, %v4145_v41  ;;  %v2205_v45 = vsel %vm1730_vm4, %v5276_v30, %v4144_v40  ;;  %v3843_v34 = vld [vmem:[%s5935_s12 + $0x18] sm:$0xff]  ;;  %v3842_v30 = vld [vmem:[%s5935_s12 + $0x10] sm:$0xff] }
 0x724   : > { %v5385_v54 = vsel %vm2211_vm15, %v2205_v45, %v4149_v27  ;;  %v5388_v35 = vsel %vm2211_vm15, %v2206_v49, %v4150_v8  ;;  %2471 = vmatpush.bf16.msrb.mxu3 %v3843_v34 }
 0x725   : > { %2256 = vrot.lane.b32.xlu2 %v5385_v54, %s5957_s22  ;;  %v4181_v5 = vpack.i.bf16 %v5388_v35, %v5385_v54  ;;  %2500 = vmatpush.bf16.msrb.mxu1 %v3851_v9 }
 0x727   : > { %4182 = vrot.lane.b32.xlu1 %v4181_v5, %s5965_s24 }
 0x728   : > { %2472 = vmatpush.bf16.msrb.mxu3 %v3842_v30 }
 0x729   : > { %2501 = vmatpush.bf16.msrb.mxu1 %v3850_v15 }
 0x72d   : > { %2502 = vmatpush.bf16.msrb.mxu1 %v3849_v19 }
 0x731   : > { %v4153_v58 = vpop.permute.xlu0 %4152  ;;  %2503 = vmatpush.bf16.msrb.mxu1 %v3848_v4 }
 0x732   : > { %v4155_v52 = vunpack.i.h.bf16 %v4153_v58  ;;  %v4154_v50 = vunpack.i.l.bf16 %v4153_v58 }
 0x734   : > { %v2208_v57 = vsel %vm1730_vm4, %v5305_v24, %v4155_v52  ;;  %v2207_v7 = vsel %vm1730_vm4, %v5298_v20, %v4154_v50  ;;  %v3841_v20 = vld [vmem:[%s5935_s12 + $0x8] sm:$0xff]  ;;  %v3840_v24 = vld [vmem:[%s5935_s12] sm:$0xff] }
 0x735   : > { %v5406_v53 = vsel %vm2211_vm15, %v2207_v7, %v4159_v51  ;;  %v5409_v59 = vsel %vm2211_vm15, %v2208_v57, %v4160_v0  ;;  %2473 = vmatpush.bf16.msrb.mxu3 %v3841_v20 }
 0x736   : > { %v4186_v21 = vpack.i.bf16 %v5406_v53, %v5388_v35  ;;  %v4191_v12 = vpack.i.bf16 %v5409_v59, %v5406_v53 }
 0x738   : > { %4187 = vrot.lane.b32.xlu0 %v4186_v21, %s5957_s22  ;;  %4192 = vrot.lane.b32.xlu2 %v4191_v12, %s5965_s24  ;;  %s5966_s22 = smov 64  }
 0x739   : > { %2474 = vmatpush.bf16.msrb.mxu3 %v3840_v24 }
 0x76f   : > { %v4168_v2 = vpop.permute.xlu0 %4167  ;;  %v4163_v62 = vpop.permute.xlu1 %4162 }
 0x770   : > { %v4170_v25 = vunpack.i.h.bf16 %v4168_v2  ;;  %v4169_v37 = vunpack.i.l.bf16 %v4168_v2  ;;  %v4165_v60 = vunpack.i.h.bf16 %v4163_v62  ;;  %v4164_v16 = vunpack.i.l.bf16 %v4163_v62 }
 0x771   : > { %v4173_v61 = vpop.permute.xlu2 %4172 }
 0x772   : > { %v2209_v13 = vsel %vm1730_vm4, %v5319_v10, %v4165_v60  ;;  %v2202_v33 = vsel %vm1730_vm4, %v4968_v23, %v4164_v16  ;;  %v4175_v38 = vunpack.i.h.bf16 %v4173_v61  ;;  %v4174_v63 = vunpack.i.l.bf16 %v4173_v61 }
 0x773   : > { %v5446_v36 = vsel %vm2211_vm15, %v2209_v13, %v4170_v25  ;;  %v2212_v44 = vsel %vm2211_vm15, %v2202_v33, %v4169_v37 }
 0x774   : > { %v4196_v22 = vpack.i.bf16 %v5446_v36, %v5409_v59  ;;  %v2279_v41 = vsel %vm2278_vm10, %v2212_v44, %v4174_v63  ;;  %v2280_v40 = vsel %vm2278_vm10, %v5349_v26, %v4175_v38 }
 0x775   : > { %v2295_v8 = vpack.c.bf16 %v2280_v40, %v2279_v41 }
 0x776   : > { %4197 = vrot.lane.b32.xlu1 %v4196_v22, %s5966_s22 }
 0x777   : > { %2475 = vmatmul.bf16.vlgmr.msrb.gmra.mxu3 %v2295_v8  ;;  %v2141_v10 = vpop.permute.xlu1 %2140 }
 0x778   : > { %v2210_v5 = vsel %vm1730_vm4, %v5333_v18, %v2141_v10 }
 0x77f   : > { %v2257_v27 = vpop.permute.xlu2 %2256 }
 0x780   : > { %v2288_v34 = vsel %vm2211_vm15, %v4175_v38, %v2257_v27 }
 0x789   : > { %v4178_v48 = vpop.permute.xlu0 %4177 }
 0x78a   : > { %v4180_v49 = vunpack.i.h.bf16 %v4178_v48  ;;  %v4179_v45 = vunpack.i.l.bf16 %v4178_v48 }
 0x78c   : > { %v2297_v30 = vpack.c.bf16 %v2257_v27, %v4180_v49  ;;  %v2220_v42 = vsel %vm2211_vm15, %v2210_v5, %v4179_v45  ;;  %v2287_v58 = vsel %vm2211_vm15, %v4174_v63, %v4180_v49  ;;  %v5488_v5 = vld [vmem:[%s5936_s13] ss:$0 sm:$0xff] }
 0x78d   : > { %v4201_v26 = vpack.i.bf16 %v2220_v42, %v5446_v36  ;;  %v4206_v52 = vpack.i.bf16 %v2212_v44, %v2220_v42  ;;  %v2296_v50 = vpack.c.bf16 %v2288_v34, %v2287_v58 }
 0x78e   : > { %3746 = vmatmul.msk.bf16.vlgmr.msra.gmra.mxu0 %vm1730_vm4, %v2297_v30 }
 0x78f   : > { %4202 = vrot.lane.b32.xlu0 %v4201_v26, %s5965_s24  ;;  %4207 = vrot.lane.b32.xlu2 %v4206_v52, %s5966_s22  ;;  %v3750_v52 = vld [vmem:[%s4768_s29 + $0x40] sm:$0xff] }
 0x790   : > { %2504 = vmatmul.bf16.vlgmr.msrb.gmra.mxu1 %v2296_v50 }
 0x792   : > { %v4193_v12 = vpop.permute.xlu2 %4192 }
 0x793   : > { %v4195_v20 = vunpack.i.h.bf16 %v4193_v12  ;;  %v4194_v24 = vunpack.i.l.bf16 %v4193_v12 }
 0x795   : > { %v2283_v9 = vsel %vm2278_vm10, %v5388_v35, %v4194_v24  ;;  %v2284_v46 = vsel %vm2278_vm10, %v5406_v53, %v4195_v20 }
 0x796   : > { %v2301_v2 = vpack.c.bf16 %v2284_v46, %v2283_v9  ;;  %v3751_v46 = vld [vmem:[%s4768_s29 + $0x48] sm:$0xff] }
 0x799   : > { %v4183_v0 = vpop.permute.xlu1 %4182 }
 0x79a   : > { %v4185_v18 = vunpack.i.h.bf16 %v4183_v0  ;;  %v4184_v51 = vunpack.i.l.bf16 %v4183_v0 }
 0x79c   : > { %v2281_v57 = vsel %vm2278_vm10, %v5346_v29, %v4184_v51  ;;  %v2282_v7 = vsel %vm2278_vm10, %v5385_v54, %v4185_v18 }
 0x79d   : > { %v2298_v21 = vpack.c.bf16 %v2282_v7, %v2281_v57  ;;  %v2603_v7 = vmul.f32 1e-10, %v3750_v52  ;;  %v2589_v52 = vmul.f32 0.0, %v4903_v14 }
 0x79f   : > { %2480 = vmatmul.bf16.gmra.mxu3 %v2298_v21 }
 0x7aa   : > { %v4188_v31 = vpop.permute.xlu0 %4187 }
 0x7ab   : > { %v4190_v15 = vunpack.i.h.bf16 %v4188_v31  ;;  %v4189_v19 = vunpack.i.l.bf16 %v4188_v31 }
 0x7ad   : > { %v2300_v4 = vpack.c.bf16 %v4190_v15, %v4189_v19  ;;  %v2289_v29 = vsel %vm2211_vm15, %v4184_v51, %v4189_v19  ;;  %v2290_v54 = vsel %vm2211_vm15, %v4185_v18, %v4190_v15  ;;  %v2587_v51 = vmul.f32 0.0, %v4892_v1 }
 0x7ae   : > { %v2299_v62 = vpack.c.bf16 %v2290_v54, %v2289_v29  ;;  %v2604_v29 = vmul.f32 1e-10, %v3751_v46 }
 0x7af   : > { %2485 = vmatmul.bf16.gmra.mxu3 %v2301_v2  ;;  %3747 = vmatmul.msk.bf16.gmra.mxu0 %vm1730_vm4, %v2300_v4  ;;  %v2588_v4 = vmul.f32 0.0, %v4900_v11 }
 0x7b0   : > { %2509 = vmatmul.bf16.gmra.mxu1 %v2299_v62 }
 0x7e8   : > { %v4198_v25 = vpop.permute.xlu1 %4197 }
 0x7e9   : > { %v4200_v37 = vunpack.i.h.bf16 %v4198_v25  ;;  %v4199_v60 = vunpack.i.l.bf16 %v4198_v25  ;;  %v4208_v13 = vpop.permute.xlu2 %4207 }
 0x7ea   : > { %v4210_v33 = vunpack.i.h.bf16 %v4208_v13  ;;  %v4209_v38 = vunpack.i.l.bf16 %v4208_v13 }
 0x7eb   : > { %v2303_v35 = vpack.c.bf16 %v4200_v37, %v4199_v60  ;;  %v2291_v16 = vsel %vm2211_vm15, %v4194_v24, %v4199_v60  ;;  %v2292_v53 = vsel %vm2211_vm15, %v4195_v20, %v4200_v37 }
 0x7ec   : > { %v2302_v61 = vpack.c.bf16 %v2292_v53, %v2291_v16  ;;  %v2306_v63 = vpack.c.bf16 %v4210_v33, %v4209_v38 }
 0x7ed   : > { %3748 = vmatmul.msk.bf16.gmra.mxu0 %vm1730_vm4, %v2303_v35 }
 0x7ee   : > { %2514 = vmatmul.bf16.gmra.mxu1 %v2302_v61 }
 0x7fa   : > { %v2476_v45 = vpop.f32.mrf.mxu3 }
 0x7fd   : > { %3749 = vmatmul.msk.bf16.gmra.mxu0 %vm1730_vm4, %v2306_v63 }
 0x801   : > { %v4203_v44 = vpop.permute.xlu0 %4202 }
 0x802   : > { %v4205_v22 = vunpack.i.h.bf16 %v4203_v44  ;;  %v4204_v41 = vunpack.i.l.bf16 %v4203_v44  ;;  %v2478_v58 = vpop.f32.mrf.mxu3 }
 0x803   : > { %v2479_v50 = vadd.f32 %v5488_v5, %v2478_v58  ;;  %v3752_v58 = vld [vmem:[%s4768_s29 + $0x50] sm:$0xff] }
 0x804   : > { %v2285_v40 = vsel %vm2278_vm10, %v5409_v59, %v4204_v41  ;;  %v2286_v8 = vsel %vm2278_vm10, %v5446_v36, %v4205_v22  ;;  %v2293_v10 = vsel %vm2211_vm15, %v4204_v41, %v4209_v38  ;;  %v2294_v27 = vsel %vm2211_vm15, %v4205_v22, %v4210_v33  ;;  %vm5980_vm15 = vmmov %vm5978_vm3 }
 0x805   : > { %v2304_v48 = vpack.c.bf16 %v2286_v8, %v2285_v40  ;;  %v2305_v49 = vpack.c.bf16 %v2294_v27, %v2293_v10  ;;  %v2477_v59 = vadd.f32 %v5488_v5, %v2476_v45 }
 0x807   : > { %2490 = vmatmul.bf16.gmra.mxu3 %v2304_v48  ;;  %2519 = vmatmul.bf16.gmra.mxu1 %v2305_v49 }
 0x80b   : > { %v2534_v34 = vpop.f32.mrf.mxu0 }
 0x80d   : > { %v2505_v30 = vpop.f32.mrf.mxu1 }
 0x80e   : > { %v2506_v36 = vadd.f32 %v2505_v30, %v2477_v59 }
 0x810   : > { %v2535_v42 = vadd.f32 %v2534_v34, %v2506_v36 }
 0x812   : > { %v2563_v26 = vmul.f32 0.99766725, %v2535_v42 }
 0x813   : > { %v2536_v12 = vpop.f32.mrf.mxu0 }
 0x814   : > { %v2571_v0 = vsub.f32 %v4892_v1, %v2563_v26 }
 0x815   : > { %v2507_v18 = vpop.f32.mrf.mxu1 }
 0x816   : > { %v2579_v57 = vmul.f32 14.648813, %v2571_v0  ;;  %v2508_v21 = vadd.f32 %v2507_v18, %v2479_v50  ;;  %v2605_v0 = vmul.f32 1e-10, %v3752_v58 }
 0x818   : > { %v2595_v20 = vadd.f32 %v2587_v51, %v2579_v57  ;;  %v2537_v24 = vadd.f32 %v2536_v12, %v2508_v21 }
 0x81a   : > { %v2611_v31 = vadd.f32 %v2603_v7, %v2595_v20  ;;  %v2564_v9 = vmul.f32 0.99766725, %v2537_v24 }
 0x81c   : > { %v2619_v15 = vmul.f32 5.4899807, %v2611_v31  ;;  %v2572_v19 = vsub.f32 %v4900_v11, %v2564_v9 }
 0x81e   : > { %v2580_v2 = vmul.f32 14.648813, %v2572_v19  ;;  %v2635_v54 = vrot.slane %v2619_v15, 7 }
 0x820   : > { %v2596_v62 = vadd.f32 %v2588_v4, %v2580_v2  ;;  %v5499_v37 = vsel %vm1234_vm12, 0.0, %v2635_v54  ;;  %v2659_v60 = vsel %vm1234_vm12, %v2635_v54, 0.0 }
 0x821   : > { %v2731_v16 = vrot.slane %v5499_v37, 2  ;;  %v2732_v53 = vrot.slane %v2659_v60, 2  ;;  %v2683_v61 = vrot.slane %v5499_v37, 1  ;;  %v2684_v13 = vrot.slane %v2659_v60, 1 }
 0x822   : > { %v2612_v25 = vadd.f32 %v2604_v29, %v2596_v62  ;;  %v2481_v38 = vpop.f32.mrf.mxu3 }
 0x823   : > { %v2733_v40 = vsel %vm1052_vm2, %v2731_v16, %v2732_v53  ;;  %v2685_v10 = vsel %vm696_vm0, %v2683_v61, %v2684_v13  ;;  %v2482_v48 = vadd.f32 %v5488_v5, %v2481_v38  ;;  %v2590_v16 = vmul.f32 0.0, %v4937_v39 }
 0x824   : > { %v2620_v1 = vmul.f32 5.4899807, %v2612_v25 }
 0x826   : > { %v2636_v35 = vrot.slane %v2620_v1, 7 }
 0x828   : > { %v5505_v11 = vsel %vm1234_vm12, 0.0, %v2636_v35  ;;  %v2660_v33 = vsel %vm1234_vm12, %v2636_v35, 0.0  ;;  %v3753_v35 = vld [vmem:[%s4768_s29 + $0x58] sm:$0xff] }
 0x829   : > { %v2734_v63 = vrot.slane %v5505_v11, 2  ;;  %v2735_v44 = vrot.slane %v2660_v33, 2  ;;  %v2686_v22 = vrot.slane %v5505_v11, 1  ;;  %v2687_v41 = vrot.slane %v2660_v33, 1 }
 0x82a   : > { %v2483_v15 = vpop.f32.mrf.mxu3  ;;  %v2606_v13 = vmul.f32 1e-10, %v3753_v35 }
 0x82b   : > { %v2736_v8 = vsel %vm1052_vm2, %v2734_v63, %v2735_v44  ;;  %v2688_v27 = vsel %vm696_vm0, %v2686_v22, %v2687_v41  ;;  %v2484_v4 = vadd.f32 %v5488_v5, %v2483_v15 }
 0x82c   : > { %v4216_v49 = vpack.i.bf16 %v2736_v8, %v2733_v40  ;;  %v4211_v45 = vpack.i.bf16 %v2688_v27, %v2685_v10  ;;  %v2539_v30 = vpop.f32.mrf.mxu0  ;;  %v3754_v8 = vld [vmem:[%s4768_s29 + $0x60] sm:$0xff] }
 0x82d   : > { %v2510_v59 = vpop.f32.mrf.mxu1 }
 0x82e   : > { %v2511_v34 = vadd.f32 %v2510_v59, %v2482_v48  ;;  %4217 = vrot.lane.b32.xlu2 %v4216_v49, %s5967_s25  ;;  %4212 = vrot.lane.b32.xlu1 %v4211_v45, %s5968_s19  ;;  %v2591_v49 = vmul.f32 0.0, %v4927_v43  ;;  %v2607_v59 = vmul.f32 1e-10, %v3754_v8 }
 0x830   : > { %v2540_v36 = vadd.f32 %v2539_v30, %v2511_v34 }
 0x832   : > { %v2565_v42 = vmul.f32 0.99766725, %v2540_v36  ;;  %v2486_v60 = vpop.f32.mrf.mxu3 }
 0x833   : > { %v2487_v53 = vadd.f32 %v5488_v5, %v2486_v60  ;;  %v2592_v60 = vmul.f32 0.0, %v4955_v6 }
 0x834   : > { %v2573_v26 = vsub.f32 %v4903_v14, %v2565_v42  ;;  %v2541_v29 = vpop.f32.mrf.mxu0 }
 0x835   : > { %v2512_v19 = vpop.f32.mrf.mxu1 }
 0x836   : > { %v2581_v50 = vmul.f32 14.648813, %v2573_v26  ;;  %v2513_v2 = vadd.f32 %v2512_v19, %v2484_v4 }
 0x838   : > { %v2597_v18 = vadd.f32 %v2589_v52, %v2581_v50  ;;  %v2542_v54 = vadd.f32 %v2541_v29, %v2513_v2 }
 0x83a   : > { %v2613_v51 = vadd.f32 %v2605_v0, %v2597_v18  ;;  %v2566_v62 = vmul.f32 0.99766725, %v2542_v54  ;;  %v2488_v40 = vpop.f32.mrf.mxu3 }
 0x83c   : > { %v2621_v57 = vmul.f32 5.4899807, %v2613_v51  ;;  %v2574_v25 = vsub.f32 %v4937_v39, %v2566_v62  ;;  %v2489_v39 = vadd.f32 %v5488_v5, %v2488_v40 }
 0x83e   : > { %v2637_v7 = vrot.slane %v2621_v57, 7  ;;  %v2582_v1 = vmul.f32 14.648813, %v2574_v25 }
 0x840   : > { %v5521_v21 = vsel %vm1234_vm12, 0.0, %v2637_v7  ;;  %v2661_v12 = vsel %vm1234_vm12, %v2637_v7, 0.0  ;;  %v2598_v61 = vadd.f32 %v2590_v16, %v2582_v1  ;;  %v3755_v1 = vld [vmem:[%s4768_s29 + $0x68] sm:$0xff] }
 0x841   : > { %v2689_v20 = vrot.slane %v5521_v21, 1  ;;  %v2690_v24 = vrot.slane %v2661_v12, 1  ;;  %v2737_v31 = vrot.slane %v5521_v21, 2  ;;  %v2738_v9 = vrot.slane %v2661_v12, 2 }
 0x842   : > { %v2614_v44 = vadd.f32 %v2606_v13, %v2598_v61  ;;  %v2608_v61 = vmul.f32 1e-10, %v3755_v1 }
 0x843   : > { %v2691_v14 = vsel %vm696_vm0, %v2689_v20, %v2690_v24  ;;  %v2739_v46 = vsel %vm1052_vm2, %v2737_v31, %v2738_v9 }
 0x844   : > { %2711 = vrot.lane.b32.xlu0 %v2691_v14, %s5968_s19  ;;  %2759 = vrot.lane.b32.xlu1 %v2739_v46, %s5967_s25  ;;  %v2622_v10 = vmul.f32 5.4899807, %v2614_v44 }
 0x846   : > { %v2638_v34 = vrot.slane %v2622_v10, 7 }
 0x848   : > { %v5540_v50 = vsel %vm1234_vm12, 0.0, %v2638_v34  ;;  %v2662_v0 = vsel %vm1234_vm12, %v2638_v34, 0.0 }
 0x849   : > { %v2692_v51 = vrot.slane %v5540_v50, 1  ;;  %v2740_v57 = vrot.slane %v5540_v50, 2  ;;  %v2741_v7 = vrot.slane %v2662_v0, 2 }
 0x84b   : > { %v2742_v4 = vsel %vm1052_vm2, %v2740_v57, %v2741_v7 }
 0x86a   : > { %v2544_v63 = vpop.f32.mrf.mxu0 }
 0x86b   : > { %v2515_v33 = vpop.f32.mrf.mxu1 }
 0x86c   : > { %v2516_v38 = vadd.f32 %v2515_v33, %v2487_v53 }
 0x86e   : > { %v2545_v22 = vadd.f32 %v2544_v63, %v2516_v38 }
 0x870   : > { %v2567_v41 = vmul.f32 0.99766725, %v2545_v22 }
 0x872   : > { %v2575_v27 = vsub.f32 %v4927_v43, %v2567_v41  ;;  %v2546_v58 = vpop.f32.mrf.mxu0  ;;  %v2693_v43 = vrot.slane %v2662_v0, 1  ;;  %v3756_v41 = vld [vmem:[%s4768_s29 + $0x70] sm:$0xff] }
 0x873   : > { %v2517_v48 = vpop.f32.mrf.mxu1 }
 0x874   : > { %v2583_v45 = vmul.f32 14.648813, %v2575_v27  ;;  %v2518_v36 = vadd.f32 %v2517_v48, %v2489_v39  ;;  %v2694_v15 = vsel %vm696_vm0, %v2692_v51, %v2693_v43  ;;  %v2593_v48 = vmul.f32 0.0, %v4973_v28 }
 0x875   : > { %v2609_v39 = vmul.f32 1e-10, %v3756_v41 }
 0x876   : > { %v2599_v30 = vadd.f32 %v2591_v49, %v2583_v45  ;;  %v2547_v52 = vadd.f32 %v2546_v58, %v2518_v36 }
 0x878   : > { %v2615_v42 = vadd.f32 %v2607_v59, %v2599_v30  ;;  %v2568_v12 = vmul.f32 0.99766725, %v2547_v52 }
 0x87a   : > { %v2623_v26 = vmul.f32 5.4899807, %v2615_v42  ;;  %v2576_v62 = vsub.f32 %v4955_v6, %v2568_v12  ;;  %v2549_v33 = vpop.f32.mrf.mxu0 }
 0x87c   : > { %v2639_v18 = vrot.slane %v2623_v26, 7  ;;  %v2584_v25 = vmul.f32 14.648813, %v2576_v62  ;;  %v3757_v26 = vld [vmem:[%s4768_s29 + $0x78] sm:$0xff]  ;;  %s5969_s29 = smov 12  }
 0x87d   : > { %v2610_v7 = vmul.f32 1e-10, %v3757_v26 }
 0x87e   : > { %v5546_v20 = vsel %vm1234_vm12, 0.0, %v2639_v18  ;;  %v2663_v24 = vsel %vm1234_vm12, %v2639_v18, 0.0  ;;  %v2600_v53 = vadd.f32 %v2592_v60, %v2584_v25 }
 0x87f   : > { %v2695_v31 = vrot.slane %v5546_v20, 1  ;;  %v2696_v9 = vrot.slane %v2663_v24, 1  ;;  %v2743_v14 = vrot.slane %v5546_v20, 2  ;;  %v2744_v46 = vrot.slane %v2663_v24, 2 }
 0x880   : > { %v2616_v63 = vadd.f32 %v2608_v61, %v2600_v53 }
 0x881   : > { %v2697_v19 = vsel %vm696_vm0, %v2695_v31, %v2696_v9  ;;  %v2745_v2 = vsel %vm1052_vm2, %v2743_v14, %v2744_v46 }
 0x882   : > { %v4221_v29 = vpack.i.bf16 %v2697_v19, %v2694_v15  ;;  %v4226_v54 = vpack.i.bf16 %v2745_v2, %v2742_v4  ;;  %v2624_v8 = vmul.f32 5.4899807, %v2616_v63  ;;  %v2551_v59 = vpop.f32.mrf.mxu0 }
 0x884   : > { %4222 = vrot.lane.b32.xlu0 %v4221_v29, %s5968_s19  ;;  %4227 = vrot.lane.b32.xlu2 %v4226_v54, %s5967_s25  ;;  %v2520_v35 = vpop.f32.mrf.mxu1  ;;  %v2640_v34 = vrot.slane %v2624_v8, 7 }
 0x886   : > { %v5568_v18 = vsel %vm1234_vm12, 0.0, %v2640_v34 }
 0x887   : > { %v2746_v12 = vrot.slane %v5568_v18, 2  ;;  %v2698_v31 = vrot.slane %v5568_v18, 1 }
 0x888   : > { %v4218_v51 = vpop.permute.xlu2 %4217 }
 0x889   : > { %v4220_v14 = vunpack.i.h.bf16 %v4218_v51  ;;  %v4219_v62 = vunpack.i.l.bf16 %v4218_v51 }
 0x88a   : > { %v2491_v16 = vpop.f32.mrf.mxu3 }
 0x88b   : > { %v2492_v13 = vadd.f32 %v5488_v5, %v2491_v16 }
 0x88c   : > { %v2522_v6 = vpop.f32.mrf.mxu1 }
 0x88d   : > { %v2521_v38 = vadd.f32 %v2520_v35, %v2492_v13 }
 0x88f   : > { %v2550_v44 = vadd.f32 %v2549_v33, %v2521_v38 }
 0x891   : > { %v2569_v22 = vmul.f32 0.99766725, %v2550_v44 }
 0x892   : > { %v2493_v40 = vpop.f32.mrf.mxu3 }
 0x893   : > { %v2577_v10 = vsub.f32 %v4973_v28, %v2569_v22  ;;  %v2494_v27 = vadd.f32 %v5488_v5, %v2493_v40  ;;  %v2664_v5 = vsel %vm1234_vm12, %v2640_v34, 0.0  ;;  %v2594_v28 = vmul.f32 0.0, %v4999_v17 }
 0x894   : > { %v2747_v24 = vrot.slane %v2664_v5, 2  ;;  %v2699_v9 = vrot.slane %v2664_v5, 1 }
 0x895   : > { %v2585_v49 = vmul.f32 14.648813, %v2577_v10  ;;  %v2523_v45 = vadd.f32 %v2522_v6, %v2494_v27 }
 0x896   : > { %v2748_v35 = vsel %vm1052_vm2, %v2746_v12, %v2747_v24  ;;  %v2700_v53 = vsel %vm696_vm0, %v2698_v31, %v2699_v9 }
 0x897   : > { %v2601_v30 = vadd.f32 %v2593_v48, %v2585_v49  ;;  %v2552_v36 = vadd.f32 %v2551_v59, %v2523_v45 }
 0x899   : > { %v2617_v42 = vadd.f32 %v2609_v39, %v2601_v30  ;;  %v2570_v58 = vmul.f32 0.99766725, %v2552_v36 }
 0x89b   : > { %v2625_v52 = vmul.f32 5.4899807, %v2617_v42  ;;  %v2578_v0 = vsub.f32 %v4999_v17, %v2570_v58  ;;  %v3859_v42 = vld [vmem:[%s5937_s14 + $0x8] sm:$0xff] }
 0x89c   : > { %2913 = vmatpush.bf16.msra.mxu2 %v3859_v42 }
 0x89d   : > { %v2586_v43 = vmul.f32 14.648813, %v2578_v0  ;;  %v2641_v57 = vrot.slane %v2625_v52, 7 }
 0x89f   : > { %v2602_v46 = vadd.f32 %v2594_v28, %v2586_v43  ;;  %v5575_v15 = vsel %vm1234_vm12, 0.0, %v2641_v57  ;;  %v2665_v19 = vsel %vm1234_vm12, %v2641_v57, 0.0 }
 0x8a0   : > { %v4213_v4 = vpop.permute.xlu1 %4212  ;;  %v2749_v2 = vrot.slane %v5575_v15, 2  ;;  %v2750_v17 = vrot.slane %v2665_v19, 2  ;;  %v2701_v29 = vrot.slane %v5575_v15, 1  ;;  %v2702_v54 = vrot.slane %v2665_v19, 1 }
 0x8a1   : > { %v4215_v25 = vunpack.i.h.bf16 %v4213_v4  ;;  %v4214_v1 = vunpack.i.l.bf16 %v4213_v4  ;;  %v2618_v60 = vadd.f32 %v2610_v7, %v2602_v46  ;;  %v3858_v7 = vld [vmem:[%s5937_s14] sm:$0xff] }
 0x8a2   : > { %v2751_v16 = vsel %vm1052_vm2, %v2749_v2, %v2750_v17  ;;  %v2703_v61 = vsel %vm696_vm0, %v2701_v29, %v2702_v54  ;;  %2914 = vmatpush.bf16.msra.mxu2 %v3858_v7 }
 0x8a3   : > { %v2780_v13 = vsel %vm1379_vm13, %v5505_v11, %v4215_v25  ;;  %v2779_v33 = vsel %vm1379_vm13, %v5499_v37, %v4214_v1  ;;  %v4236_v38 = vpack.i.bf16 %v2751_v16, %v2748_v35  ;;  %v4231_v63 = vpack.i.bf16 %v2703_v61, %v2700_v53 }
 0x8a4   : > { %v5589_v44 = vsel %vm1389_vm14, %v2779_v33, %v4219_v62  ;;  %v5592_v22 = vsel %vm1389_vm14, %v2780_v13, %v4220_v14  ;;  %v2626_v41 = vmul.f32 5.4899807, %v2618_v60 }
 0x8a5   : > { %4237 = vrot.lane.b32.xlu0 %v4236_v38, %s5967_s25  ;;  %4232 = vrot.lane.b32.xlu1 %v4231_v63, %s5968_s19  ;;  %v4241_v40 = vpack.i.bf16 %v5592_v22, %v5589_v44 }
 0x8a6   : > { %v2642_v11 = vrot.slane %v2626_v41, 7 }
 0x8a7   : > { %4242 = vrot.lane.b32.xlu2 %v4241_v40, %s5969_s29 }
 0x8a8   : > { %v2658_v37 = vsel %vm1234_vm12, 0.0, %v2642_v11  ;;  %v2666_v8 = vsel %vm1234_vm12, %v2642_v11, 0.0 }
 0x8a9   : > { %v2704_v10 = vrot.slane %v2658_v37, 1  ;;  %v2705_v27 = vrot.slane %v2666_v8, 1  ;;  %v2752_v6 = vrot.slane %v2658_v37, 2  ;;  %v2753_v48 = vrot.slane %v2666_v8, 2 }
 0x8ab   : > { %v2706_v49 = vsel %vm696_vm0, %v2704_v10, %v2705_v27  ;;  %v2754_v39 = vsel %vm1052_vm2, %v2752_v6, %v2753_v48 }
 0x8ad   : > { %2721 = vrot.lane.b32.xlu0 %v2706_v49, %s5968_s19  ;;  %s4495_s19 = smov 48  }
 0x8af   : > { %2769 = vrot.lane.b32.xlu2 %v2754_v39, %s5967_s25  ;;  %s4494_s25 = smov 16  }
 0x8b6   : > { %v2712_v45 = vpop.permute.xlu0 %2711  ;;  %v2760_v59 = vpop.permute.xlu1 %2759 }
 0x8b7   : > { %v2781_v34 = vsel %vm1379_vm13, %v5521_v21, %v2712_v45 }
 0x8b8   : > { %v2789_v30 = vsel %vm1389_vm14, %v2781_v34, %v2760_v59 }
 0x8b9   : > { %v4246_v36 = vpack.i.bf16 %v2789_v30, %v5592_v22 }
 0x8bb   : > { %4247 = vrot.lane.b32.xlu1 %v4246_v36, %s5970_s20 }
 0x8de   : > { %v4228_v58 = vpop.permute.xlu2 %4227 }
 0x8df   : > { %v4230_v5 = vunpack.i.h.bf16 %v4228_v58  ;;  %v4229_v51 = vunpack.i.l.bf16 %v4228_v58 }
 0x8f6   : > { %v4223_v26 = vpop.permute.xlu0 %4222 }
 0x8f7   : > { %v4225_v52 = vunpack.i.h.bf16 %v4223_v26  ;;  %v4224_v0 = vunpack.i.l.bf16 %v4223_v26 }
 0x8f9   : > { %v2783_v21 = vsel %vm1379_vm13, %v5546_v20, %v4225_v52  ;;  %v2782_v28 = vsel %vm1379_vm13, %v5540_v50, %v4224_v0 }
 0x8fa   : > { %v2790_v43 = vsel %vm1389_vm14, %v2782_v28, %v4229_v51  ;;  %v2791_v57 = vsel %vm1389_vm14, %v2783_v21, %v4230_v5 }
 0x8fb   : > { %v4256_v12 = vpack.i.bf16 %v2791_v57, %v2790_v43  ;;  %v4251_v24 = vpack.i.bf16 %v2790_v43, %v2789_v30 }
 0x8fd   : > { %4257 = vrot.lane.b32.xlu0 %v4256_v12, %s5970_s20  ;;  %4252 = vrot.lane.b32.xlu1 %v4251_v24, %s5969_s29 }
 0x901   : > { %v4243_v31 = vpop.permute.xlu2 %4242 }
 0x902   : > { %v4244_v16 = vunpack.i.l.bf16 %v4243_v31 }
 0x904   : > { %v2848_v38 = vsel %vm970_vm6, %v5080_v3, %v4244_v16 }
 0x909   : > { %v2770_v1 = vpop.permute.xlu2 %2769 }
 0x917   : > { %v4238_v20 = vpop.permute.xlu0 %4237  ;;  %v4233_v9 = vpop.permute.xlu1 %4232 }
 0x918   : > { %v4240_v14 = vunpack.i.h.bf16 %v4238_v20  ;;  %v4239_v50 = vunpack.i.l.bf16 %v4238_v20  ;;  %v4235_v46 = vunpack.i.h.bf16 %v4233_v9  ;;  %v4234_v19 = vunpack.i.l.bf16 %v4233_v9 }
 0x91a   : > { %v2785_v4 = vsel %vm1379_vm13, %v5575_v15, %v4235_v46  ;;  %v2784_v2 = vsel %vm1379_vm13, %v5568_v18, %v4234_v19  ;;  %v4245_v18 = vunpack.i.h.bf16 %v4243_v31  ;;  %v5664_v31 = vld [vmem:[%s5938_s15] ss:$0 sm:$0xff] }
 0x91b   : > { %v2792_v17 = vsel %vm1389_vm14, %v2784_v2, %v4239_v50  ;;  %v2793_v29 = vsel %vm1389_vm14, %v2785_v4, %v4240_v14 }
 0x91c   : > { %v4266_v54 = vpack.i.bf16 %v2793_v29, %v2792_v17  ;;  %v4261_v62 = vpack.i.bf16 %v2792_v17, %v2791_v57  ;;  %v2849_v33 = vsel %vm970_vm6, %v5589_v44, %v4245_v18 }
 0x91e   : > { %4267 = vrot.lane.b32.xlu1 %v4266_v54, %s5970_s20  ;;  %4262 = vrot.lane.b32.xlu2 %v4261_v62, %s5969_s29 }
 0x91f   : > { %v2722_v25 = vpop.permute.xlu0 %2721 }
 0x920   : > { %v2786_v60 = vsel %vm1379_vm13, %v2658_v37, %v2722_v25  ;;  %vm5972_vm13 = vmmov %vm5971_vm5 }
 0x921   : > { %v2794_v35 = vsel %vm1389_vm14, %v2786_v60, %v2770_v1  ;;  %vm5973_vm14 = vcmask 293888  }
 0x922   : > { %v4271_v15 = vpack.i.bf16 %v2794_v35, %v2793_v29  ;;  %vm5976_vm9 = vmmov %vm5973_vm14 }
 0x923   : > { %vm5979_vm1 = vmmov %vm5976_vm9 }
 0x924   : > { %4272 = vrot.lane.b32.xlu0 %v4271_v15, %s5969_s29 }
 0x926   : > { %2839 = vrot.lane.b32.xlu2 %v2794_v35, %s5970_s20 }
 0x92d   : > { %v4248_v53 = vpop.permute.xlu1 %4247 }
 0x92e   : > { %v4250_v61 = vunpack.i.h.bf16 %v4248_v53  ;;  %v4249_v13 = vunpack.i.l.bf16 %v4248_v53 }
 0x930   : > { %v2856_v63 = vsel %vm5971_vm5, %v2848_v38, %v4249_v13  ;;  %v2857_v41 = vsel %vm5972_vm13, %v2849_v33, %v4250_v61  ;;  %vm5981_vm5 = vmmov %vm5978_vm3 }
 0x931   : > { %v2864_v40 = vpack.c.bf16 %v2857_v41, %v2856_v63  ;;  %vm5982_vm13 = vmmov %vm5979_vm1 }
 0x933   : > { %3766 = vmatmul.msk.bf16.vlgmr.msra.gmra.mxu2 %vm5973_vm14, %v2864_v40 }
 0x96f   : > { %v4258_v11 = vpop.permute.xlu0 %4257  ;;  %v4253_v37 = vpop.permute.xlu1 %4252 }
 0x970   : > { %v4260_v8 = vunpack.i.h.bf16 %v4258_v11  ;;  %v4259_v10 = vunpack.i.l.bf16 %v4258_v11  ;;  %v4255_v27 = vunpack.i.h.bf16 %v4253_v37  ;;  %v4254_v6 = vunpack.i.l.bf16 %v4253_v37 }
 0x972   : > { %v2851_v48 = vsel %vm970_vm6, %v2789_v30, %v4255_v27  ;;  %v2850_v44 = vsel %vm970_vm6, %v5592_v22, %v4254_v6 }
 0x973   : > { %v2858_v3 = vsel %vm5974_vm7, %v2850_v44, %v4259_v10  ;;  %v2859_v49 = vsel %vm5975_vm8, %v2851_v48, %v4260_v8 }
 0x974   : > { %v2865_v39 = vpack.c.bf16 %v2859_v49, %v2858_v3 }
 0x976   : > { %3767 = vmatmul.msk.bf16.gmra.mxu2 %vm5976_vm9, %v2865_v39 }
 0x978   : > { %v4263_v45 = vpop.permute.xlu2 %4262 }
 0x979   : > { %v4265_v59 = vunpack.i.h.bf16 %v4263_v45  ;;  %v4264_v34 = vunpack.i.l.bf16 %v4263_v45 }
 0x97b   : > { %v2853_v26 = vsel %vm970_vm6, %v2791_v57, %v4265_v59  ;;  %v2852_v30 = vsel %vm970_vm6, %v2790_v43, %v4264_v34 }
 0x980   : > { %v2840_v12 = vpop.permute.xlu2 %2839 }
 0x990   : > { %v4268_v36 = vpop.permute.xlu1 %4267 }
 0x991   : > { %v4270_v42 = vunpack.i.h.bf16 %v4268_v36  ;;  %v4269_v58 = vunpack.i.l.bf16 %v4268_v36 }
 0x993   : > { %v2860_v52 = vsel %vm5977_vm11, %v2852_v30, %v4269_v58  ;;  %v2861_v22 = vsel %vm5978_vm3, %v2853_v26, %v4270_v42 }
 0x994   : > { %v2866_v0 = vpack.c.bf16 %v2861_v22, %v2860_v52 }
 0x996   : > { %3768 = vmatmul.msk.bf16.gmra.mxu2 %vm5979_vm1, %v2866_v0  ;;  %v4273_v5 = vpop.permute.xlu0 %4272 }
 0x997   : > { %v4275_v51 = vunpack.i.h.bf16 %v4273_v5  ;;  %v4274_v21 = vunpack.i.l.bf16 %v4273_v5 }
 0x999   : > { %v2855_v28 = vsel %vm970_vm6, %v2793_v29, %v4275_v51  ;;  %v2854_v7 = vsel %vm970_vm6, %v2792_v17, %v4274_v21 }
 0x99a   : > { %v2862_v24 = vsel %vm5980_vm15, %v2854_v7, %v2840_v12  ;;  %v2863_v43 = vsel %vm5981_vm5, %v2855_v28, %v4130_v56 }
 0x99b   : > { %v2867_v57 = vpack.c.bf16 %v2863_v43, %v2862_v24 }
 0x9a6   : > { %3769 = vmatmul.msk.bf16.gmra.mxu2 %vm5982_vm13, %v2867_v57 }
 0x9b6   : > { %v2916_v20 = vpop.f32.mrf.mxu2 }
 0x9b7   : > { %v2917_v9 = vadd.f32 %v5664_v31, %v2916_v20 }
 0x9b9   : > { %v3770_v14 = vmul.f32 -1.442695, %v2917_v9 }
 0x9bb   : > { %4438 = vpow2.f32 %v3770_v14 }
 0x9be   : > { %v2918_v50 = vpop.f32.mrf.mxu2 }
 0x9bf   : > { %v2919_v46 = vadd.f32 %v5664_v31, %v2918_v50 }
 0x9c1   : > { %v4439_v19 = vpop.eup %4438  ;;  %v3771_v55 = vmul.f32 -1.442695, %v2919_v46 }
 0x9c2   : > { %v2960_v4 = vadd.f32 1.0, %v4439_v19 }
 0x9c3   : > { %4440 = vpow2.f32 %v3771_v55 }
 0x9c4   : > { %4442 = vrcp.f32 %v2960_v4  ;;  %v2979_v62 = vand.u32 2147483648, %v2960_v4  ;;  %v2977_v1 = vand.u32 2147483647, %v2960_v4  ;;  %vm2973_vm7 = vweird.f32 %v2960_v4 }
 0x9c6   : > { %v2980_v15 = vor.u32 1.1754944e-38, %v2979_v62  ;;  %vm2978_vm9 = vcmp.eq.f32.partialorder %v2977_v1, 8.507059e+37 }
 0x9c9   : > { %v4441_v56 = vpop.eup %4440 }
 0x9ca   : > { %v4443_v2 = vpop.eup %4442  ;;  %v2961_v17 = vadd.f32 1.0, %v4441_v56 }
 0x9cb   : > { %v2969_v29 = vmul.f32 %v4443_v2, %v2960_v4  ;;  %vm2974_vm14 = vweird.f32 %v4443_v2 }
 0x9cc   : > { %4444 = vrcp.f32 %v2961_v17  ;;  %vm2975_vm8 = vmor %vm2973_vm7, %vm2974_vm14  ;;  %v2994_v33 = vand.u32 2147483648, %v2961_v17  ;;  %v2992_v63 = vand.u32 2147483647, %v2961_v17  ;;  %vm2988_vm3 = vweird.f32 %v2961_v17 }
 0x9cd   : > { %v2970_v54 = vsub.f32 1.0, %v2969_v29 }
 0x9ce   : > { %v2995_v11 = vor.u32 1.1754944e-38, %v2994_v33  ;;  %vm2993_vm15 = vcmp.eq.f32.partialorder %v2992_v63, 8.507059e+37 }
 0x9cf   : > { %v2971_v25 = vmul.f32 %v4443_v2, %v2970_v54 }
 0x9d1   : > { %v2972_v60 = vadd.f32 %v4443_v2, %v2971_v25 }
 0x9d2   : > { %v4445_v35 = vpop.eup %4444 }
 0x9d3   : > { %v2976_v18 = vsel %vm2975_vm8, %v4443_v2, %v2972_v60  ;;  %v2984_v16 = vmul.f32 %v4445_v35, %v2961_v17  ;;  %vm2989_vm11 = vweird.f32 %v4445_v35 }
 0x9d4   : > { %v2981_v53 = vsel %vm2978_vm9, %v2980_v15, %v2976_v18  ;;  %vm2990_vm1 = vmor %vm2988_vm3, %vm2989_vm11 }
 0x9d5   : > { %v3088_v61 = vmul.f32 %v2981_v53, %v2917_v9  ;;  %v2985_v13 = vsub.f32 1.0, %v2984_v16 }
 0x9d7   : > { %v2986_v38 = vmul.f32 %v4445_v35, %v2985_v13  ;;  %v3104_v41 = vrot.slane %v3088_v61, 7 }
 0x9d9   : > { %v2987_v40 = vadd.f32 %v4445_v35, %v2986_v38  ;;  %v5669_v10 = vsel %vm1234_vm12, 0.0, %v3104_v41  ;;  %v3128_v27 = vsel %vm1234_vm12, %v3104_v41, 0.0 }
 0x9da   : > { %v3152_v44 = vrot.slane %v5669_v10, 1  ;;  %v3153_v3 = vrot.slane %v3128_v27, 1  ;;  %v3203_v49 = vrot.slane %v5669_v10, 2  ;;  %v3204_v39 = vrot.slane %v3128_v27, 2 }
 0x9db   : > { %v2991_v37 = vsel %vm2990_vm1, %v4445_v35, %v2987_v40 }
 0x9dc   : > { %v2996_v8 = vsel %vm2993_vm15, %v2995_v11, %v2991_v37  ;;  %v3205_v26 = vsel %vm1052_vm2, %v3203_v49, %v3204_v39  ;;  %v3154_v52 = vsel %vm696_vm0, %v3152_v44, %v3153_v3 }
 0x9dd   : > { %v3089_v6 = vmul.f32 %v2996_v8, %v2919_v46 }
 0x9df   : > { %v3105_v48 = vrot.slane %v3089_v6, 7 }
 0x9e1   : > { %v5675_v45 = vsel %vm1234_vm12, 0.0, %v3105_v48  ;;  %v3129_v59 = vsel %vm1234_vm12, %v3105_v48, 0.0 }
 0x9e2   : > { %v3155_v34 = vrot.slane %v5675_v45, 1  ;;  %v3156_v36 = vrot.slane %v3129_v59, 1  ;;  %v3206_v42 = vrot.slane %v5675_v45, 2  ;;  %v3207_v58 = vrot.slane %v3129_v59, 2 }
 0x9e4   : > { %v3208_v30 = vsel %vm1052_vm2, %v3206_v42, %v3207_v58  ;;  %v3157_v22 = vsel %vm696_vm0, %v3155_v34, %v3156_v36 }
 0x9e5   : > { %v4286_v0 = vpack.i.bf16 %v3208_v30, %v3205_v26  ;;  %v4276_v5 = vpack.i.bf16 %v3157_v22, %v3154_v52 }
 0x9e7   : > { %4287 = vrot.lane.b32.xlu2 %v4286_v0, %s5983_s1  ;;  %4277 = vrot.lane.b32.xlu1 %v4276_v5, %s4494_s25 }
 0x9f9   : > { %v2921_v51 = vpop.f32.mrf.mxu2 }
 0x9fa   : > { %v2922_v21 = vadd.f32 %v5664_v31, %v2921_v51 }
 0x9fc   : > { %v3772_v28 = vmul.f32 -1.442695, %v2922_v21 }
 0x9fe   : > { %4446 = vpow2.f32 %v3772_v28 }
 0xa01   : > { %v2923_v7 = vpop.f32.mrf.mxu2 }
 0xa02   : > { %v2924_v12 = vadd.f32 %v5664_v31, %v2923_v7 }
 0xa04   : > { %v4447_v24 = vpop.eup %4446  ;;  %v3773_v43 = vmul.f32 -1.442695, %v2924_v12 }
 0xa05   : > { %v2962_v57 = vadd.f32 1.0, %v4447_v24 }
 0xa06   : > { %4448 = vpow2.f32 %v3773_v43 }
 0xa07   : > { %4450 = vrcp.f32 %v2962_v57  ;;  %v3009_v19 = vand.u32 2147483648, %v2962_v57  ;;  %v3007_v4 = vand.u32 2147483647, %v2962_v57  ;;  %vm3003_vm13 = vweird.f32 %v2962_v57 }
 0xa09   : > { %v3010_v17 = vor.u32 1.1754944e-38, %v3009_v19  ;;  %vm3008_vm7 = vcmp.eq.f32.partialorder %v3007_v4, 8.507059e+37 }
 0xa0c   : > { %v4449_v20 = vpop.eup %4448 }
 0xa0d   : > { %v4451_v9 = vpop.eup %4450  ;;  %v2963_v14 = vadd.f32 1.0, %v4449_v20 }
 0xa0e   : > { %v2999_v50 = vmul.f32 %v4451_v9, %v2962_v57  ;;  %vm3004_vm5 = vweird.f32 %v4451_v9 }
 0xa0f   : > { %4452 = vrcp.f32 %v2963_v14  ;;  %vm3005_vm14 = vmor %vm3003_vm13, %vm3004_vm5  ;;  %v3022_v60 = vand.u32 2147483647, %v2963_v14  ;;  %v3024_v35 = vand.u32 2147483648, %v2963_v14  ;;  %vm3018_vm9 = vweird.f32 %v2963_v14 }
 0xa10   : > { %v3000_v46 = vsub.f32 1.0, %v2999_v50 }
 0xa11   : > { %v3025_v41 = vor.u32 1.1754944e-38, %v3024_v35  ;;  %vm3023_vm3 = vcmp.eq.f32.partialorder %v3022_v60, 8.507059e+37 }
 0xa12   : > { %v3001_v55 = vmul.f32 %v4451_v9, %v3000_v46 }
 0xa14   : > { %v3002_v56 = vadd.f32 %v4451_v9, %v3001_v55 }
 0xa15   : > { %v4453_v2 = vpop.eup %4452 }
 0xa16   : > { %v3006_v29 = vsel %vm3005_vm14, %v4451_v9, %v3002_v56  ;;  %v3014_v54 = vmul.f32 %v4453_v2, %v2963_v14  ;;  %vm3019_vm8 = vweird.f32 %v4453_v2 }
 0xa17   : > { %v3011_v62 = vsel %vm3008_vm7, %v3010_v17, %v3006_v29  ;;  %vm3020_vm11 = vmor %vm3018_vm9, %vm3019_vm8 }
 0xa18   : > { %v3090_v25 = vmul.f32 %v3011_v62, %v2922_v21  ;;  %v3015_v1 = vsub.f32 1.0, %v3014_v54 }
 0xa19   : > { %v2926_v15 = vpop.f32.mrf.mxu2 }
 0xa1a   : > { %v3106_v18 = vrot.slane %v3090_v25, 7  ;;  %v3016_v16 = vmul.f32 %v4453_v2, %v3015_v1  ;;  %v5689_v53 = vadd.f32 %v5664_v31, %v2926_v15 }
 0xa1c   : > { %v5692_v61 = vsel %vm1234_vm12, 0.0, %v3106_v18  ;;  %v3130_v13 = vsel %vm1234_vm12, %v3106_v18, 0.0  ;;  %v3017_v33 = vadd.f32 %v4453_v2, %v3016_v16  ;;  %v3774_v38 = vmul.f32 -1.442695, %v5689_v53 }
 0xa1d   : > { %v3210_v63 = vrot.slane %v3130_v13, 2  ;;  %v3209_v40 = vrot.slane %v5692_v61, 2  ;;  %v3158_v3 = vrot.slane %v5692_v61, 1  ;;  %v3159_v39 = vrot.slane %v3130_v13, 1 }
 0xa1e   : > { %v3021_v11 = vsel %vm3020_vm11, %v4453_v2, %v3017_v33  ;;  %4454 = vpow2.f32 %v3774_v38 }
 0xa1f   : > { %v3026_v37 = vsel %vm3023_vm3, %v3025_v41, %v3021_v11  ;;  %v3211_v8 = vsel %vm1052_vm2, %v3209_v40, %v3210_v63  ;;  %v3160_v52 = vsel %vm696_vm0, %v3158_v3, %v3159_v39 }
 0xa20   : > { %v3091_v27 = vmul.f32 %v3026_v37, %v2924_v12  ;;  %3233 = vrot.lane.b32.xlu1 %v3211_v8, %s5983_s1 }
 0xa21   : > { %v2928_v6 = vpop.f32.mrf.mxu2 }
 0xa22   : > { %v3107_v48 = vrot.slane %v3091_v27, 7  ;;  %v5700_v44 = vadd.f32 %v5664_v31, %v2928_v6 }
 0xa24   : > { %v4455_v49 = vpop.eup %4454  ;;  %v5704_v59 = vsel %vm1234_vm12, 0.0, %v3107_v48  ;;  %v5707_v34 = vsel %vm1234_vm12, %v3107_v48, 0.0  ;;  %v3775_v36 = vmul.f32 -1.442695, %v5700_v44 }
 0xa25   : > { %v3161_v42 = vrot.slane %v5704_v59, 1  ;;  %v3162_v58 = vrot.slane %v5707_v34, 1  ;;  %v2964_v26 = vadd.f32 1.0, %v4455_v49  ;;  %v3212_v15 = vrot.slane %v5704_v59, 2 }
 0xa26   : > { %4456 = vpow2.f32 %v3775_v36 }
 0xa27   : > { %v3163_v30 = vsel %vm696_vm0, %v3161_v42, %v3162_v58  ;;  %4458 = vrcp.f32 %v2964_v26  ;;  %v3039_v57 = vand.u32 2147483648, %v2964_v26  ;;  %v3037_v14 = vand.u32 2147483647, %v2964_v26 }
 0xa28   : > { %v4281_v0 = vpack.i.bf16 %v3163_v30, %v3160_v52  ;;  %vm3033_vm15 = vweird.f32 %v2964_v26 }
 0xa29   : > { %v2931_v22 = vpop.f32.mrf.mxu2  ;;  %v3040_v56 = vor.u32 1.1754944e-38, %v3039_v57  ;;  %vm3038_vm13 = vcmp.eq.f32.partialorder %v3037_v14, 8.507059e+37 }
 0xa2a   : > { %v5715_v5 = vadd.f32 %v5664_v31, %v2931_v22  ;;  %4282 = vrot.lane.b32.xlu0 %v4281_v0, %s4494_s25 }
 0xa2c   : > { %v4457_v51 = vpop.eup %4456  ;;  %v3776_v21 = vmul.f32 -1.442695, %v5715_v5 }
 0xa2d   : > { %v2965_v28 = vadd.f32 1.0, %v4457_v51  ;;  %v4459_v7 = vpop.eup %4458 }
 0xa2e   : > { %4460 = vpow2.f32 %v3776_v21  ;;  %v3029_v12 = vmul.f32 %v4459_v7, %v2964_v26  ;;  %vm3034_vm1 = vweird.f32 %v4459_v7 }
 0xa2f   : > { %4462 = vrcp.f32 %v2965_v28  ;;  %vm3035_vm5 = vmor %vm3033_vm15, %vm3034_vm1  ;;  %v3054_v25 = vand.u32 2147483648, %v2965_v28  ;;  %v3052_v60 = vand.u32 2147483647, %v2965_v28  ;;  %vm3048_vm7 = vweird.f32 %v2965_v28 }
 0xa30   : > { %v3030_v24 = vsub.f32 1.0, %v3029_v12 }
 0xa31   : > { %v2933_v43 = vpop.f32.mrf.mxu2  ;;  %v3055_v40 = vor.u32 1.1754944e-38, %v3054_v25  ;;  %vm3053_vm9 = vcmp.eq.f32.partialorder %v3052_v60, 8.507059e+37 }
 0xa32   : > { %v5720_v20 = vadd.f32 %v5664_v31, %v2933_v43  ;;  %v3031_v9 = vmul.f32 %v4459_v7, %v3030_v24 }
 0xa34   : > { %v4461_v50 = vpop.eup %4460  ;;  %v3777_v46 = vmul.f32 -1.442695, %v5720_v20  ;;  %v3032_v55 = vadd.f32 %v4459_v7, %v3031_v9 }
 0xa35   : > { %v4463_v19 = vpop.eup %4462  ;;  %v2966_v4 = vadd.f32 1.0, %v4461_v50 }
 0xa36   : > { %v3044_v2 = vmul.f32 %v4463_v19, %v2965_v28  ;;  %4464 = vpow2.f32 %v3777_v46  ;;  %v3036_v17 = vsel %vm3035_vm5, %v4459_v7, %v3032_v55  ;;  %vm3049_vm14 = vweird.f32 %v4463_v19 }
 0xa37   : > { %4466 = vrcp.f32 %v2966_v4  ;;  %v3041_v29 = vsel %vm3038_vm13, %v3040_v56, %v3036_v17  ;;  %vm3050_vm8 = vmor %vm3048_vm7, %vm3049_vm14  ;;  %v3067_v3 = vand.u32 2147483647, %v2966_v4  ;;  %v3069_v49 = vand.u32 2147483648, %v2966_v4 }
 0xa38   : > { %v3045_v31 = vsub.f32 1.0, %v3044_v2  ;;  %v3092_v54 = vmul.f32 %v3041_v29, %v5689_v53  ;;  %v3213_v53 = vrot.slane %v5707_v34, 2  ;;  %vm3063_vm3 = vweird.f32 %v2966_v4 }
 0xa39   : > { %v3070_v21 = vor.u32 1.1754944e-38, %v3069_v49  ;;  %vm3068_vm15 = vcmp.eq.f32.partialorder %v3067_v3, 8.507059e+37 }
 0xa3a   : > { %v3046_v62 = vmul.f32 %v4463_v19, %v3045_v31  ;;  %v3108_v1 = vrot.slane %v3092_v54, 7  ;;  %v3214_v39 = vsel %vm1052_vm2, %v3212_v15, %v3213_v53 }
 0xa3c   : > { %v4465_v35 = vpop.eup %4464  ;;  %v3047_v18 = vadd.f32 %v4463_v19, %v3046_v62  ;;  %v5726_v13 = vsel %vm1234_vm12, 0.0, %v3108_v1  ;;  %v3132_v33 = vsel %vm1234_vm12, %v3108_v1, 0.0 }
 0xa3d   : > { %v4467_v16 = vpop.eup %4466  ;;  %v5729_v38 = vadd.f32 1.0, %v4465_v35  ;;  %v3215_v63 = vrot.slane %v5726_v13, 2  ;;  %v3216_v41 = vrot.slane %v3132_v33, 2  ;;  %v3164_v58 = vrot.slane %v5726_v13, 1 }
 0xa3e   : > { %v3051_v11 = vsel %vm3050_vm8, %v4463_v19, %v3047_v18  ;;  %v3059_v37 = vmul.f32 %v4467_v16, %v2966_v4  ;;  %vm3064_vm11 = vweird.f32 %v4467_v16  ;;  %v3165_v26 = vrot.slane %v3132_v33, 1 }
 0xa3f   : > { %4468 = vrcp.f32 %v5729_v38  ;;  %v3056_v8 = vsel %vm3053_vm9, %v3055_v40, %v3051_v11  ;;  %v3217_v48 = vsel %vm1052_vm2, %v3215_v63, %v3216_v41  ;;  %vm3065_vm1 = vmor %vm3063_vm3, %vm3064_vm11  ;;  %v3084_v14 = vand.u32 2147483648, %v5729_v38 }
 0xa40   : > { %v3093_v27 = vmul.f32 %v3056_v8, %v5700_v44  ;;  %v3060_v6 = vsub.f32 1.0, %v3059_v37  ;;  %v4296_v42 = vpack.i.bf16 %v3217_v48, %v3214_v39  ;;  %v3166_v24 = vsel %vm696_vm0, %v3164_v58, %v3165_v26 }
 0xa41   : > { %v3082_v55 = vand.u32 2147483647, %v5729_v38  ;;  %vm3078_vm13 = vweird.f32 %v5729_v38  ;;  %v3085_v29 = vor.u32 1.1754944e-38, %v3084_v14  ;;  %v4288_v11 = vpop.permute.xlu2 %4287  ;;  %vm3254_vm8 = vcmask 130048   ;;  %v3866_v14 = vld [vmem:[%s5939_s16 + $0x30] sm:$0xff] }
 0xa42   : > { %v3109_v34 = vrot.slane %v3093_v27, 7  ;;  %v3061_v36 = vmul.f32 %v4467_v16, %v3060_v6  ;;  %4297 = vrot.lane.b32.xlu2 %v4296_v42, %s5983_s1  ;;  %v4290_v27 = vunpack.i.h.bf16 %v4288_v11  ;;  %v4289_v6 = vunpack.i.l.bf16 %v4288_v11 }
 0xa43   : > { %vm3083_vm7 = vcmp.eq.f32.partialorder %v3082_v55, 8.507059e+37 }
 0xa44   : > { %v5739_v52 = vsel %vm1234_vm12, 0.0, %v3109_v34  ;;  %v3133_v44 = vsel %vm1234_vm12, %v3109_v34, 0.0  ;;  %v3062_v22 = vadd.f32 %v4467_v16, %v3061_v36 }
 0xa45   : > { %v4469_v30 = vpop.eup %4468  ;;  %v3167_v0 = vrot.slane %v5739_v52, 1  ;;  %v3168_v51 = vrot.slane %v3133_v44, 1  ;;  %v3218_v4 = vrot.slane %v5739_v52, 2  ;;  %v3219_v56 = vrot.slane %v3133_v44, 2 }
 0xa46   : > { %v3066_v28 = vsel %vm3065_vm1, %v4467_v16, %v3062_v22  ;;  %v3074_v7 = vmul.f32 %v4469_v30, %v5729_v38  ;;  %vm3079_vm5 = vweird.f32 %v4469_v30 }
 0xa47   : > { %v3071_v12 = vsel %vm3068_vm15, %v3070_v21, %v3066_v28  ;;  %v3169_v43 = vsel %vm696_vm0, %v3167_v0, %v3168_v51  ;;  %vm3080_vm14 = vmor %vm3078_vm13, %vm3079_vm5  ;;  %v3220_v35 = vsel %vm1052_vm2, %v3218_v4, %v3219_v56 }
 0xa48   : > { %v3094_v57 = vmul.f32 %v3071_v12, %v5715_v5  ;;  %v3075_v9 = vsub.f32 1.0, %v3074_v7  ;;  %v4291_v50 = vpack.i.bf16 %v3169_v43, %v3166_v24  ;;  %v3867_v43 = vld [vmem:[%s5939_s16 + $0x38] sm:$0xff] }
 0xa49   : > { %3443 = vmatpush.bf16.msra.mxu3 %v3867_v43 }
 0xa4a   : > { %v3110_v46 = vrot.slane %v3094_v57, 7  ;;  %v3076_v19 = vmul.f32 %v4469_v30, %v3075_v9  ;;  %4292 = vrot.lane.b32.xlu0 %v4291_v50, %s4494_s25  ;;  %3227 = vrot.lane.b32.xlu2 %v4988_v47, %s5983_s1 }
 0xa4c   : > { %v5754_v2 = vsel %vm1234_vm12, 0.0, %v3110_v46  ;;  %v3134_v5 = vsel %vm1234_vm12, %v3110_v46, 0.0  ;;  %v3077_v17 = vadd.f32 %v4469_v30, %v3076_v19 }
 0xa4d   : > { %v3170_v31 = vrot.slane %v5754_v2, 1  ;;  %v3171_v54 = vrot.slane %v3134_v5, 1  ;;  %v3221_v62 = vrot.slane %v5754_v2, 2  ;;  %v3222_v25 = vrot.slane %v3134_v5, 2  ;;  %3444 = vmatpush.bf16.msra.mxu3 %v3866_v14 }
 0xa4e   : > { %v3081_v1 = vsel %vm3080_vm14, %v4469_v30, %v3077_v17 }
 0xa4f   : > { %v3086_v60 = vsel %vm3083_vm7, %v3085_v29, %v3081_v1  ;;  %v3223_v15 = vsel %vm1052_vm2, %v3221_v62, %v3222_v25  ;;  %v3172_v18 = vsel %vm696_vm0, %v3170_v31, %v3171_v54  ;;  %v3864_v62 = vld [vmem:[%s5939_s16 + $0x20] sm:$0xff] }
 0xa50   : > { %v3095_v16 = vmul.f32 %v3086_v60, %v5720_v20  ;;  %v4306_v47 = vpack.i.bf16 %v3223_v15, %v3220_v35  ;;  %v4301_v33 = vpack.i.bf16 %v4977_v32, %v3172_v18  ;;  %v3862_v35 = vld [vmem:[%s5939_s16 + $0x10] sm:$0xff] }
 0xa52   : > { %v3111_v38 = vrot.slane %v3095_v16, 7  ;;  %4307 = vrot.lane.b32.xlu0 %v4306_v47, %s5983_s1  ;;  %4302 = vrot.lane.b32.xlu1 %v4301_v33, %s4494_s25  ;;  %v3861_v16 = vld [vmem:[%s5939_s16 + $0x8] sm:$0xff] }
 0xa54   : > { %v5770_v53 = vsel %vm1234_vm12, 0.0, %v3111_v38  ;;  %v3135_v63 = vsel %vm1234_vm12, %v3111_v38, 0.0 }
 0xa55   : > { %v3174_v41 = vrot.slane %v3135_v63, 1  ;;  %v3173_v40 = vrot.slane %v5770_v53, 1  ;;  %v3225_v36 = vrot.slane %v3135_v63, 2  ;;  %v3224_v42 = vrot.slane %v5770_v53, 2 }
 0xa57   : > { %v3175_v37 = vsel %vm696_vm0, %v3173_v40, %v3174_v41  ;;  %vm3330_vm0 = vcmask 392192  }
 0xa58   : > { %3192 = vrot.lane.b32.xlu2 %v3175_v37, %s4494_s25 }
 0xa59   : > { %v4278_v32 = vpop.permute.xlu1 %4277 }
 0xa5a   : > { %v4280_v20 = vunpack.i.h.bf16 %v4278_v32  ;;  %v4279_v8 = vunpack.i.l.bf16 %v4278_v32 }
 0xa5c   : > { %v3257_v48 = vsel %vm3254_vm8, %v5675_v45, %v4280_v20  ;;  %v3256_v3 = vsel %vm3254_vm8, %v5669_v10, %v4279_v8  ;;  %v3226_v45 = vsel %vm1052_vm2, %v3224_v42, %v3225_v36 }
 0xa5d   : > { %v5781_v49 = vsel %vm1730_vm4, %v3256_v3, %v4289_v6  ;;  %v5784_v39 = vsel %vm1730_vm4, %v3257_v48, %v4290_v27 }
 0xa5e   : > { %v4311_v34 = vpack.i.bf16 %v5784_v39, %v5781_v49 }
 0xa60   : > { %4312 = vrot.lane.b32.xlu1 %v4311_v34, %s4495_s19 }
 0xa68   : > { %3243 = vrot.lane.b32.xlu1 %v3226_v45, %s5983_s1  ;;  %s3829_s1 = sshll.u32 %s5985_s28, 6 }
 0xa69   : > { %s5902_s20 = scalar_lea.vmem %s5941_s18, %s3829_s1 }
 0xa92   : > { %v3234_v26 = vpop.permute.xlu1 %3233 }
 0xa9c   : > { %v4283_v10 = vpop.permute.xlu0 %4282  ;;  %v4298_v22 = vpop.permute.xlu2 %4297 }
 0xa9d   : > { %v4284_v58 = vunpack.i.l.bf16 %v4283_v10  ;;  %v4285_v30 = vunpack.i.h.bf16 %v4283_v10  ;;  %v4299_v21 = vunpack.i.l.bf16 %v4298_v22  ;;  %v4300_v57 = vunpack.i.h.bf16 %v4298_v22 }
 0xa9f   : > { %v3258_v44 = vsel %vm3254_vm8, %v5692_v61, %v4284_v58  ;;  %v3259_v28 = vsel %vm3254_vm8, %v5704_v59, %v4285_v30  ;;  %v3868_v59 = vld [vmem:[%s5939_s16 + $0x40] sm:$0xff] }
 0xaa0   : > { %v5795_v0 = vsel %vm1730_vm4, %v3258_v44, %v3234_v26  ;;  %v5803_v7 = vsel %vm1730_vm4, %v3259_v28, %v4299_v21  ;;  %3479 = vmatpush.bf16.msra.mxu1 %v3868_v59 }
 0xaa1   : > { %v4316_v51 = vpack.i.bf16 %v5795_v0, %v5784_v39  ;;  %v4321_v12 = vpack.i.bf16 %v5803_v7, %v5795_v0 }
 0xaa3   : > { %4317 = vrot.lane.b32.xlu0 %v4316_v51, %s5965_s24 }
 0xaa4   : > { %v3228_v60 = vpop.permute.xlu2 %3227 }
 0xaab   : > { %4322 = vrot.lane.b32.xlu0 %v4321_v12, %s4495_s19 }
 0xab2   : > { %v3193_v47 = vpop.permute.xlu2 %3192 }
 0xab3   : > { %v3263_v38 = vsel %vm3254_vm8, %v5770_v53, %v3193_v47 }
 0xabc   : > { %v4293_v61 = vpop.permute.xlu0 %4292 }
 0xabd   : > { %v4294_v24 = vunpack.i.l.bf16 %v4293_v61  ;;  %v4295_v19 = vunpack.i.h.bf16 %v4293_v61 }
 0xabf   : > { %v3260_v9 = vsel %vm3254_vm8, %v5726_v13, %v4294_v24  ;;  %v3865_v13 = vld [vmem:[%s5939_s16 + $0x28] sm:$0xff]  ;;  %v3261_v29 = vsel %vm3254_vm8, %v5739_v52, %v4295_v19 }
 0xac0   : > { %v5820_v50 = vsel %vm1730_vm4, %v3260_v9, %v4300_v57  ;;  %3445 = vmatpush.bf16.msra.mxu3 %v3865_v13 }
 0xac1   : > { %v4326_v46 = vpack.i.bf16 %v5820_v50, %v5803_v7 }
 0xac3   : > { %4327 = vrot.lane.b32.xlu2 %v4326_v46, %s5965_s24 }
 0xac4   : > { %v4308_v55 = vpop.permute.xlu0 %4307  ;;  %v4303_v4 = vpop.permute.xlu1 %4302  ;;  %3446 = vmatpush.bf16.msra.mxu3 %v3864_v62 }
 0xac5   : > { %v4310_v56 = vunpack.i.h.bf16 %v4308_v55  ;;  %v4309_v5 = vunpack.i.l.bf16 %v4308_v55  ;;  %v4304_v17 = vunpack.i.l.bf16 %v4303_v4  ;;  %v4305_v18 = vunpack.i.h.bf16 %v4303_v4 }
 0xac7   : > { %v3262_v31 = vsel %vm3254_vm8, %v5754_v2, %v4304_v17  ;;  %v5833_v54 = vsel %vm1730_vm4, %v3261_v29, %v4309_v5  ;;  %v3863_v2 = vld [vmem:[%s5939_s16 + $0x18] sm:$0xff]  ;;  %v3255_v33 = vsel %vm3254_vm8, %v4968_v23, %v4305_v18  ;;  %v3860_v23 = vld [vmem:[%s5939_s16] sm:$0xff] }
 0xac8   : > { %v4331_v25 = vpack.i.bf16 %v5833_v54, %v5820_v50  ;;  %v5841_v1 = vsel %vm1730_vm4, %v3262_v31, %v4310_v56  ;;  %3447 = vmatpush.bf16.msra.mxu3 %v3863_v2  ;;  %v3264_v41 = vsel %vm1730_vm4, %v3255_v33, %v3228_v60  ;;  %v4357_v60 = vld [vmem:[%s5940_s17] ss:$0 sm:$0xff] }
 0xac9   : > { %v4336_v52 = vpack.i.bf16 %v5841_v1, %v5833_v54 }
 0xaca   : > { %4332 = vrot.lane.b32.xlu1 %v4331_v25, %s4495_s19 }
 0xacb   : > { %4337 = vrot.lane.b32.xlu0 %v4336_v52, %s5965_s24 }
 0xacc   : > { %3448 = vmatpush.bf16.msra.mxu3 %v3862_v35 }
 0xad0   : > { %3449 = vmatpush.bf16.msra.mxu3 %v3861_v16 }
 0xad2   : > { %v4313_v15 = vpop.permute.xlu1 %4312 }
 0xad3   : > { %v4315_v32 = vunpack.i.h.bf16 %v4313_v15  ;;  %v4314_v20 = vunpack.i.l.bf16 %v4313_v15 }
 0xad4   : > { %3450 = vmatpush.bf16.msra.mxu3 %v3860_v23 }
 0xad5   : > { %v3332_v6 = vsel %vm3330_vm0, %v5781_v49, %v4315_v32  ;;  %v3331_v48 = vsel %vm3330_vm0, %v3264_v41, %v4314_v20 }
 0xada   : > { %v3244_v63 = vpop.permute.xlu1 %3243 }
 0xadb   : > { %v3272_v40 = vsel %vm1730_vm4, %v3263_v38, %v3244_v63 }
 0xadc   : > { %v4346_v11 = vpack.i.bf16 %v3264_v41, %v3272_v40  ;;  %v4341_v37 = vpack.i.bf16 %v3272_v40, %v5841_v1 }
 0xade   : > { %4347 = vrot.lane.b32.xlu1 %v4346_v11, %s5965_s24  ;;  %4342 = vrot.lane.b32.xlu2 %v4341_v37, %s4495_s19 }
 0xb15   : > { %v4318_v53 = vpop.permute.xlu0 %4317 }
 0xb16   : > { %v4320_v8 = vunpack.i.h.bf16 %v4318_v53  ;;  %v4319_v27 = vunpack.i.l.bf16 %v4318_v53 }
 0xb18   : > { %v3339_v3 = vsel %vm2278_vm10, %v3331_v48, %v4319_v27  ;;  %v3340_v34 = vsel %vm2278_vm10, %v3332_v6, %v4320_v8  ;;  %v3348_v36 = vpack.c.bf16 %v4320_v8, %v4319_v27 }
 0xb19   : > { %v3347_v42 = vpack.c.bf16 %v3340_v34, %v3339_v3 }
 0xb1a   : > { %3814 = vmatmul.msk.bf16.vlgmr.msra.gmra.mxu1 %vm3254_vm8, %v3348_v36 }
 0xb1b   : > { %3451 = vmatmul.bf16.vlgmr.msra.gmra.mxu3 %v3347_v42 }
 0xb1d   : > { %v4323_v45 = vpop.permute.xlu0 %4322  ;;  %v4328_v10 = vpop.permute.xlu2 %4327 }
 0xb1e   : > { %v4325_v58 = vunpack.i.h.bf16 %v4323_v45  ;;  %v4324_v26 = vunpack.i.l.bf16 %v4323_v45  ;;  %v4330_v30 = vunpack.i.h.bf16 %v4328_v10  ;;  %v4329_v44 = vunpack.i.l.bf16 %v4328_v10 }
 0xb20   : > { %v3333_v49 = vsel %vm3330_vm0, %v5784_v39, %v4324_v26  ;;  %v3334_v22 = vsel %vm3330_vm0, %v5795_v0, %v4325_v58  ;;  %v3350_v28 = vpack.c.bf16 %v4330_v30, %v4329_v44 }
 0xb21   : > { %v3341_v51 = vsel %vm2278_vm10, %v3333_v49, %v4329_v44  ;;  %v3342_v21 = vsel %vm2278_vm10, %v3334_v22, %v4330_v30 }
 0xb22   : > { %v3349_v12 = vpack.c.bf16 %v3342_v21, %v3341_v51 }
 0xb2a   : > { %3815 = vmatmul.msk.bf16.gmra.mxu1 %vm3254_vm8, %v3350_v28 }
 0xb2b   : > { %3456 = vmatmul.bf16.gmra.mxu3 %v3349_v12 }
 0xb38   : > { %v4343_v55 = vpop.permute.xlu2 %4342 }
 0xb39   : > { %v4345_v4 = vunpack.i.h.bf16 %v4343_v55  ;;  %v4344_v56 = vunpack.i.l.bf16 %v4343_v55 }
 0xb3c   : > { %v4333_v61 = vpop.permute.xlu1 %4332 }
 0xb3d   : > { %v4335_v24 = vunpack.i.h.bf16 %v4333_v61  ;;  %v4334_v43 = vunpack.i.l.bf16 %v4333_v61  ;;  %v4338_v59 = vpop.permute.xlu0 %4337 }
 0xb3e   : > { %v4340_v57 = vunpack.i.h.bf16 %v4338_v59  ;;  %v4339_v9 = vunpack.i.l.bf16 %v4338_v59 }
 0xb3f   : > { %v3335_v39 = vsel %vm3330_vm0, %v5803_v7, %v4334_v43  ;;  %v3336_v0 = vsel %vm3330_vm0, %v5820_v50, %v4335_v24  ;;  %v3337_v7 = vsel %vm3330_vm0, %v5833_v54, %v4344_v56  ;;  %v3338_v50 = vsel %vm3330_vm0, %v5841_v1, %v4345_v4 }
 0xb40   : > { %v3352_v14 = vpack.c.bf16 %v4340_v57, %v4339_v9  ;;  %v3343_v46 = vsel %vm2278_vm10, %v3335_v39, %v4339_v9  ;;  %v3344_v19 = vsel %vm2278_vm10, %v3336_v0, %v4340_v57 }
 0xb41   : > { %v3351_v13 = vpack.c.bf16 %v3344_v19, %v3343_v46 }
 0xb42   : > { %3816 = vmatmul.msk.bf16.gmra.mxu1 %vm3254_vm8, %v3352_v14 }
 0xb43   : > { %3461 = vmatmul.bf16.gmra.mxu3 %v3351_v13 }
 0xb50   : > { %v4348_v5 = vpop.permute.xlu1 %4347 }
 0xb51   : > { %v4350_v17 = vunpack.i.h.bf16 %v4348_v5  ;;  %v4349_v29 = vunpack.i.l.bf16 %v4348_v5 }
 0xb53   : > { %v3354_v31 = vpack.c.bf16 %v4350_v17, %v4349_v29  ;;  %v3345_v62 = vsel %vm2278_vm10, %v3337_v7, %v4349_v29  ;;  %v3346_v25 = vsel %vm2278_vm10, %v3338_v50, %v4350_v17 }
 0xb54   : > { %v3353_v52 = vpack.c.bf16 %v3346_v25, %v3345_v62 }
 0xb55   : > { %3817 = vmatmul.msk.bf16.gmra.mxu1 %vm3254_vm8, %v3354_v31 }
 0xb56   : > { %3466 = vmatmul.bf16.gmra.mxu3 %v3353_v52 }
 0xb97   : > { %v3481_v2 = vpop.f32.mrf.mxu1 }
 0xb9e   : > { %v3452_v35 = vpop.f32.mrf.mxu3 }
 0xb9f   : > { %v3453_v54 = vadd.f32 %v4357_v60, %v3452_v35  ;;  %v3483_v18 = vpop.f32.mrf.mxu1 }
 0xba1   : > { %v3482_v15 = vadd.f32 %v3481_v2, %v3453_v54 }
 0xba3   : > { %v3818_v1 = vclamps-f32 %v3482_v15, 1.0 }
 0xba5   : > { %3517 = vst.msk [vmem:[%s5902_s20] sm:$0xff] %vm970_vm6, %v3818_v1 }
 0xba6   : > { %v3454_v16 = vpop.f32.mrf.mxu3 }
 0xba7   : > { %v3455_v47 = vadd.f32 %v4357_v60, %v3454_v16  ;;  %v3486_v63 = vpop.f32.mrf.mxu1 }
 0xba9   : > { %v3484_v33 = vadd.f32 %v3483_v18, %v3455_v47 }
 0xbab   : > { %v3819_v38 = vclamps-f32 %v3484_v33, 1.0 }
 0xbad   : > { %3518 = vst.msk [vmem:[%s5902_s20 + $0x8] sm:$0xff] %vm970_vm6, %v3819_v38 }
 0xbae   : > { %v3457_v41 = vpop.f32.mrf.mxu3 }
 0xbaf   : > { %v3458_v40 = vadd.f32 %v4357_v60, %v3457_v41  ;;  %v3488_v20 = vpop.f32.mrf.mxu1 }
 0xbb1   : > { %v3487_v11 = vadd.f32 %v3486_v63, %v3458_v40 }
 0xbb3   : > { %v3820_v37 = vclamps-f32 %v3487_v11, 1.0 }
 0xbb5   : > { %3519 = vst.msk [vmem:[%s5902_s20 + $0x10] sm:$0xff] %vm970_vm6, %v3820_v37 }
 0xbb6   : > { %v3459_v23 = vpop.f32.mrf.mxu3 }
 0xbb7   : > { %v3460_v32 = vadd.f32 %v4357_v60, %v3459_v23 }
 0xbb9   : > { %v3489_v53 = vadd.f32 %v3488_v20, %v3460_v32 }
 0xbbb   : > { %v3821_v8 = vclamps-f32 %v3489_v53, 1.0 }
 0xbbd   : > { %3520 = vst.msk [vmem:[%s5902_s20 + $0x18] sm:$0xff] %vm970_vm6, %v3821_v8 }
 0xbbf   : > { %v3491_v27 = vpop.f32.mrf.mxu1 }
 0xbc6   : > { %v3462_v6 = vpop.f32.mrf.mxu3 }
 0xbc7   : > { %v3463_v48 = vadd.f32 %v4357_v60, %v3462_v6  ;;  %v3493_v45 = vpop.f32.mrf.mxu1 }
 0xbc9   : > { %v3492_v3 = vadd.f32 %v3491_v27, %v3463_v48 }
 0xbcb   : > { %v3822_v34 = vclamps-f32 %v3492_v3, 1.0 }
 0xbcd   : > { %3521 = vst.msk [vmem:[%s5902_s20 + $0x20] sm:$0xff] %vm970_vm6, %v3822_v34 }
 0xbce   : > { %v3464_v36 = vpop.f32.mrf.mxu3 }
 0xbcf   : > { %v3465_v42 = vadd.f32 %v4357_v60, %v3464_v36 }
 0xbd1   : > { %v3494_v10 = vadd.f32 %v3493_v45, %v3465_v42 }
 0xbd2   : > { %v3496_v26 = vpop.f32.mrf.mxu1 }
 0xbd3   : > { %v3823_v58 = vclamps-f32 %v3494_v10, 1.0 }
 0xbd5   : > { %3522 = vst.msk [vmem:[%s5902_s20 + $0x28] sm:$0xff] %vm970_vm6, %v3823_v58 }
 0xbd9   : > { %v3467_v30 = vpop.f32.mrf.mxu3 }
 0xbda   : > { %v3468_v44 = vadd.f32 %v4357_v60, %v3467_v30  ;;  %v3498_v28 = vpop.f32.mrf.mxu1 }
 0xbdc   : > { %v3497_v49 = vadd.f32 %v3496_v26, %v3468_v44 }
 0xbde   : > { %v3824_v22 = vclamps-f32 %v3497_v49, 1.0 }
 0xbe0   : > { %3523 = vst.msk [vmem:[%s5902_s20 + $0x30] sm:$0xff] %vm970_vm6, %v3824_v22 }
 0xbe1   : > { %v3469_v51 = vpop.f32.mrf.mxu3 }
 0xbe2   : > { %v3470_v21 = vadd.f32 %v4357_v60, %v3469_v51 }
 0xbe4   : > { %v3499_v12 = vadd.f32 %v3498_v28, %v3470_v21 }
 0xbe6   : > { %v3825_v61 = vclamps-f32 %v3499_v12, 1.0 }
 0xbe8   : > { %3524 = vst.msk [vmem:[%s5902_s20 + $0x38] sm:$0xff] %vm970_vm6, %v3825_v61 }
 0xbe9 PF: > { %s28_s27 = sadd.s32 1, %s4476_s27  }
 0xbea   : > { %p25_p4 = scmp.ge.s32.totalorder %s28_s27, 4  }
 0xbec   :  { %27 = sbr.rel (!%p25_p4) target bundleno = 4 (0x4), region = 126 }

</bundles_post_ra>
